<compile_context>
chip_gen: v7x
topology: tpu7x:2x2x1
jax: 0.10.0
libtpu: 0.0.40
codegen_flags: <defaults>
</compile_context>

<pallas_src>
import functools

import numpy as np
import jax
import jax.numpy as jnp
from jax.experimental import pallas as pl
from jax.experimental.pallas import tpu as pltpu


C1 = 16            # conv1 output channels
C2 = 32            # conv2 output channels
FUSE = 256         # fusion layer width
HEAD_LANES = 128   # merged [motor | sensory | pad] head width (lane-dense)
N_TAPS = 9         # 3x3 conv2 taps


# ----------------------------------------------------------------------------
# Pallas kernel: the entire forward pass, fused, bf16 MXU / f32 VPU.
# ----------------------------------------------------------------------------
def _fused_forward_kernel(g_ref, w1_ref, w2_ref, b2_ref, wf_ref, bf_ref,
                          wh_ref, bh_ref, out_ref, *, n_taps, n_oi, n_bpad):
    """All-GEMM fused forward.

    g_ref : (n_taps*n_oi*n_bpad, n_oj*K1) bf16  per-conv2-tap conv1 patches
    w1_ref: (n_oj*K1, n_oj*C1)            bf16  conv1 w+bias, block-diag / oj
    w2_ref: (n_taps, n_oj*C1, n_oj*C2)    bf16  conv2 tap weights, block-diag
    b2_ref: (1, n_oj*C2)                  f32
    wf_ref: (n_oi, n_oj*C2, FUSE)         bf16  fusion w, rows permuted (oi,oj,c)
    bf_ref: (1, FUSE)                     f32
    wh_ref: (FUSE, HEAD_LANES)            bf16  merged [motor|sensory|pad]
    bh_ref: (1, HEAD_LANES)               f32
    out_ref: (n_bpad, HEAD_LANES)         f32
    """
    rows_per_tap = n_oi * n_bpad                      # 8-sublane aligned

    # conv1 (+bias via homogeneous "valid" column) as ONE big GEMM over all
    # taps: M = n_taps * n_oi * n_bpad rows fill the MXU, w1 is pushed once.
    z = jnp.dot(g_ref[...], w1_ref[...], preferred_element_type=jnp.float32)
    z = jnp.maximum(z, 0.0)                           # f32, (T*R, n_oj*C1)

    # conv2: accumulate the 9 tap contributions (block-diagonal over oj).
    acc2 = jnp.zeros((rows_per_tap, w2_ref.shape[2]), jnp.float32)
    for t in range(n_taps):                           # unrolled (static)
        zt = z[t * rows_per_tap:(t + 1) * rows_per_tap, :]   # 8-aligned slice
        acc2 = acc2 + jnp.dot(zt.astype(jnp.bfloat16), w2_ref[t],
                              preferred_element_type=jnp.float32)
    h2 = jnp.maximum(acc2 + b2_ref[...], 0.0)         # rows (oi, b), cols (oj, c)

    # fusion Linear + ReLU: per-oi 8-row blocks against permuted weight slabs.
    accf = jnp.zeros((n_bpad, wf_ref.shape[2]), jnp.float32)
    for oi in range(n_oi):                            # unrolled (static)
        blk = h2[oi * n_bpad:(oi + 1) * n_bpad, :]    # 8-aligned slice
        accf = accf + jnp.dot(blk.astype(jnp.bfloat16), wf_ref[oi],
                              preferred_element_type=jnp.float32)
    feats = jnp.maximum(accf + bf_ref[...], 0.0)      # (n_bpad, FUSE), f32

    # merged heads: one lane-dense (n_bpad, 128) unmasked store.
    out_ref[...] = (jnp.dot(feats.astype(jnp.bfloat16), wh_ref[...],
                            preferred_element_type=jnp.float32) + bh_ref[...])


# ----------------------------------------------------------------------------
# JAX glue: padded frame + im2col patch extraction (pure data movement).
# ----------------------------------------------------------------------------
def _extract_patches(x_nhwc, *, ksize, stride, pad):
    """(B, H, W, C) -> (B, Ho, Wo, ksize*ksize*C), last dim ordered (ky,kx,c)."""
    B, H, W, C = x_nhwc.shape
    xp = jnp.pad(x_nhwc, ((0, 0), (pad, pad), (pad, pad), (0, 0)))
    Ho = (H + 2 * pad - ksize) // stride + 1
    Wo = (W + 2 * pad - ksize) // stride + 1
    cols = []
    for ky in range(ksize):
        for kx in range(ksize):
            cols.append(xp[:, ky:ky + stride * Ho:stride,
                           kx:kx + stride * Wo:stride, :])
    return jnp.concatenate(cols, axis=-1)


def _build_padded(fovea, position):
    """Position-augmented padded frame, identical to the PyTorch module."""
    B, C, H, W = fovea.shape
    # NOTE: matches torch exactly; H == 1 or W == 1 would divide by zero there too.
    pos_x = position[:, 0].astype(jnp.float32) / (W - 1) * 2.0 - 1.0
    pos_y = position[:, 1].astype(jnp.float32) / (H - 1) * 2.0 - 1.0
    bottom = jnp.broadcast_to(pos_x[:, None, None, None], (B, C, 1, W))
    right_col = jnp.concatenate(
        [jnp.broadcast_to(pos_y[:, None, None, None], (B, C, H, 1)),
         jnp.zeros((B, C, 1, 1), fovea.dtype)], axis=2)       # corner stays 0
    top = jnp.concatenate([fovea, bottom.astype(fovea.dtype)], axis=2)
    return jnp.concatenate([top, right_col.astype(fovea.dtype)], axis=3)


# ----------------------------------------------------------------------------
# Parameters: PyTorch-convention init + one-time kernel-layout preparation.
# ----------------------------------------------------------------------------
def init_params(key, in_channels, H, W, n_motor, n_sensory):
    """Deterministic synthetic parameters with PyTorch-convention shapes."""
    ks = jax.random.split(key, 10)
    scale = 0.05
    Hp, Wp = H + 1, W + 1                        # padded spatial
    H2 = (Hp + 2 - 3) // 2 + 1                   # conv2: stride 2, pad 1
    W2 = (Wp + 2 - 3) // 2 + 1
    fovea_out_size = C2 * H2 * W2
    return {
        "conv1_w": scale * jax.random.normal(ks[0], (C1, in_channels, 3, 3), jnp.float32),
        "conv1_b": scale * jax.random.normal(ks[1], (C1,), jnp.float32),
        "conv2_w": scale * jax.random.normal(ks[2], (C2, C1, 3, 3), jnp.float32),
        "conv2_b": scale * jax.random.normal(ks[3], (C2,), jnp.float32),
        "fusion_w": scale * jax.random.normal(ks[4], (FUSE, fovea_out_size), jnp.float32),
        "fusion_b": scale * jax.random.normal(ks[5], (FUSE,), jnp.float32),
        "motor_w": scale * jax.random.normal(ks[6], (n_motor, FUSE), jnp.float32),
        "motor_b": scale * jax.random.normal(ks[7], (n_motor,), jnp.float32),
        "sensory_w": scale * jax.random.normal(ks[8], (n_sensory, FUSE), jnp.float32),
        "sensory_b": scale * jax.random.normal(ks[9], (n_sensory,), jnp.float32),
    }


def prepare_params(params, in_channels, H, W, n_motor, n_sensory):
    """One-time (outside jit) repack of PyTorch weights into kernel layout."""
    k1 = 9 * in_channels + 1                     # 3x3 patch + 1 "valid" column
    Hp, Wp = H + 1, W + 1
    n_oi = (Hp - 1) // 2 + 1                     # conv2 output rows
    n_oj = (Wp - 1) // 2 + 1                     # conv2 output cols

    # conv1 weight (rows ordered (ky,kx,cin)) + bias as homogeneous row,
    # block-diagonal over the n_oj conv2 output columns.
    w1 = np.transpose(np.asarray(params["conv1_w"]), (2, 3, 1, 0)).reshape(
        9 * in_channels, C1)
    w1aug = np.concatenate([w1, np.asarray(params["conv1_b"])[None, :]], axis=0)
    w1bd = np.zeros((n_oj * k1, n_oj * C1), np.float32)
    for j in range(n_oj):
        w1bd[j * k1:(j + 1) * k1, j * C1:(j + 1) * C1] = w1aug

    # conv2: per-tap (16,32) block, block-diagonal over n_oj.
    conv2_w = np.asarray(params["conv2_w"])
    w2bd = np.zeros((N_TAPS, n_oj * C1, n_oj * C2), np.float32)
    for t in range(N_TAPS):
        ky, kx = divmod(t, 3)
        blk = conv2_w[:, :, ky, kx].T                                    # (16,32)
        for j in range(n_oj):
            w2bd[t, j * C1:(j + 1) * C1, j * C2:(j + 1) * C2] = blk
    b2t = np.tile(np.asarray(params["conv2_b"]), (n_oj,))[None, :].astype(np.float32)

    # fusion: permute K rows from PyTorch NCHW-flatten (c, oi, oj) order to the
    # kernel's native (oi, (oj, c)) order -> no activation transpose anywhere.
    wf = np.asarray(params["fusion_w"]).T.reshape(C2, n_oi, n_oj, FUSE)
    wf = np.transpose(wf, (1, 2, 0, 3)).reshape(n_oi, n_oj * C2, FUSE)
    bf = np.asarray(params["fusion_b"])[None, :].astype(np.float32)

    # merged, lane-padded heads: [motor | sensory | zeros] -> >=128 lanes.
    n_out = n_motor + n_sensory
    nh = max(HEAD_LANES, -(-n_out // 128) * 128)
    wh = np.zeros((FUSE, nh), np.float32)
    wh[:, :n_motor] = np.asarray(params["motor_w"]).T
    wh[:, n_motor:n_out] = np.asarray(params["sensory_w"]).T
    bh = np.zeros((1, nh), np.float32)
    bh[0, :n_motor] = np.asarray(params["motor_b"])
    bh[0, n_motor:n_out] = np.asarray(params["sensory_b"])

    return {
        "w1bd": jnp.asarray(w1bd, jnp.bfloat16),
        "w2bd": jnp.asarray(w2bd, jnp.bfloat16),
        "b2t": jnp.asarray(b2t, jnp.float32),
        "wf": jnp.asarray(wf, jnp.bfloat16),
        "bf": jnp.asarray(bf, jnp.float32),
        "wh": jnp.asarray(wh, jnp.bfloat16),
        "bh": jnp.asarray(bh, jnp.float32),
    }


# ----------------------------------------------------------------------------
# Forward pass (mirrors SeparatedVisionFoveaNetwork.forward).
# ----------------------------------------------------------------------------
@functools.partial(jax.jit, static_argnames=("n_motor", "n_sensory"))
def forward(prep, fovea, position, *, n_motor, n_sensory):
    B, C, H, W = fovea.shape
    n_bpad = max(8, -(-B // 8) * 8)              # sublane-aligned batch rows
    Hp, Wp = H + 1, W + 1
    n_oi = (Hp - 1) // 2 + 1
    n_oj = (Wp - 1) // 2 + 1
    k1 = 9 * C + 1

    # Pad the batch up-front so every downstream row block is 8-aligned.
    fovea_p = jnp.pad(fovea, ((0, n_bpad - B), (0, 0), (0, 0), (0, 0)))
    pos_p = jnp.pad(position, ((0, n_bpad - B), (0, 0)))

    padded = _build_padded(fovea_p, pos_p)                        # (Bp,C,Hp,Wp)
    x = jnp.transpose(padded, (0, 2, 3, 1)).astype(jnp.bfloat16)  # NHWC, bf16

    # conv1 im2col (+ homogeneous "valid" column carrying the conv1 bias).
    p1 = _extract_patches(x, ksize=3, stride=1, pad=1)            # (Bp,Hp,Wp,9C)
    p1v = jnp.concatenate(
        [p1, jnp.ones((n_bpad, Hp, Wp, 1), p1.dtype)], axis=-1)   # (Bp,Hp,Wp,K1)

    # Move batch behind the row axis so the per-tap stride-2 gathers come out
    # directly in the kernel's (oi, b, oj, K1) order -- no big 5-D transpose.
    p1v = jnp.transpose(p1v, (1, 0, 2, 3))                        # (Hp,Bp,Wp,K1)
    p1v = jnp.pad(p1v, ((1, 1), (0, 0), (1, 1), (0, 0)))          # h1 zero ring

    taps = [p1v[ky:ky + 2 * n_oi:2, :, kx:kx + 2 * n_oj:2, :]
            for ky in range(3) for kx in range(3)]                # 9x(oi,Bp,oj,K1)
    g = jnp.stack(taps, axis=0)                                   # (T,oi,Bp,oj,K1)
    g = g.reshape(N_TAPS * n_oi * n_bpad, n_oj * k1)              # tap-major rows

    nh = prep["wh"].shape[1]
    flops = 2 * (g.shape[0] * g.shape[1] * prep["w1bd"].shape[1]
                 + N_TAPS * n_oi * n_bpad * prep["w2bd"].shape[1] * prep["w2bd"].shape[2]
                 + n_oi * n_bpad * prep["wf"].shape[1] * prep["wf"].shape[2]
                 + n_bpad * FUSE * nh)
    bytes_accessed = (2 * (g.size + prep["w1bd"].size + prep["w2bd"].size
                           + prep["wf"].size + prep["wh"].size)
                      + 4 * (prep["b2t"].size + prep["bf"].size + prep["bh"].size)
                      + 4 * n_bpad * nh)

    out = pl.pallas_call(
        functools.partial(_fused_forward_kernel,
                          n_taps=N_TAPS, n_oi=n_oi, n_bpad=n_bpad),
        out_shape=jax.ShapeDtypeStruct((n_bpad, nh), jnp.float32),
        compiler_params=pltpu.CompilerParams(
            vmem_limit_bytes=32 * 1024 * 1024),
        cost_estimate=pl.CostEstimate(flops=int(flops), transcendentals=0,
                                      bytes_accessed=int(bytes_accessed)),
    )(g, prep["w1bd"], prep["w2bd"], prep["b2t"],
      prep["wf"], prep["bf"], prep["wh"], prep["bh"])

    return out[:B, :n_motor], out[:B, n_motor:n_motor + n_sensory]


# ----------------------------------------------------------------------------
# Pure-JAX f32 reference (im2col + matmuls, matches the torch module).
# ----------------------------------------------------------------------------
def reference_forward(params, fovea, position):
    B, C, H, W = fovea.shape
    padded = _build_padded(fovea, position)
    x = jnp.transpose(padded, (0, 2, 3, 1))
    p1 = _extract_patches(x, ksize=3, stride=1, pad=1)
    _, Hp, Wp, _ = p1.shape
    w1 = jnp.transpose(params["conv1_w"], (2, 3, 1, 0)).reshape(-1, C1)
    h1 = jax.nn.relu(p1.reshape(B * Hp * Wp, -1) @ w1 + params["conv1_b"])
    h1 = h1.reshape(B, Hp, Wp, C1)
    p2 = _extract_patches(h1, ksize=3, stride=2, pad=1)
    _, H2, W2, _ = p2.shape
    w2 = jnp.transpose(params["conv2_w"], (2, 3, 1, 0)).reshape(-1, C2)
    h2 = jax.nn.relu(p2.reshape(B * H2 * W2, -1) @ w2 + params["conv2_b"])
    h2 = h2.reshape(B, H2, W2, C2)
    feats_in = jnp.transpose(h2, (0, 3, 1, 2)).reshape(B, -1)     # NCHW flatten
    feats = jax.nn.relu(feats_in @ params["fusion_w"].T + params["fusion_b"])
    motor = feats @ params["motor_w"].T + params["motor_b"]
    sensory = feats @ params["sensory_w"].T + params["sensory_b"]
    return motor, sensory


if __name__ == "__main__":
    B, C, H, W = 2, 4, 16, 16
    N_MOTOR, N_SENSORY = 4, 8

    key = jax.random.PRNGKey(0)
    k_fovea, k_pos = jax.random.split(key)
    fovea = jax.random.uniform(k_fovea, (B, C, H, W), jnp.float32)
    position = jax.random.randint(k_pos, (B, 2), 0, W, dtype=jnp.int32)

    params = init_params(jax.random.PRNGKey(42), C, H, W, N_MOTOR, N_SENSORY)
    prep = prepare_params(params, C, H, W, N_MOTOR, N_SENSORY)

    motor_q, sensory_q = forward(prep, fovea, position,
                                 n_motor=N_MOTOR, n_sensory=N_SENSORY)
    jax.block_until_ready((motor_q, sensory_q))

    assert motor_q.shape == (B, N_MOTOR), motor_q.shape
    assert sensory_q.shape == (B, N_SENSORY), sensory_q.shape

    # Cross-check the fused bf16 kernel against the f32 JAX reference.
    ref_motor, ref_sensory = jax.jit(reference_forward)(params, fovea, position)
    assert jnp.allclose(motor_q, ref_motor, atol=3e-2, rtol=3e-2), \
        float(jnp.max(jnp.abs(motor_q - ref_motor)))
    assert jnp.allclose(sensory_q, ref_sensory, atol=3e-2, rtol=3e-2), \
        float(jnp.max(jnp.abs(sensory_q - ref_sensory)))

    print("KERNEL_OK")
</pallas_src>

<mosaic_0001>
module attributes {stable_mosaic.version = 11 : i64} {
  func.func @_fused_forward_kernel(%arg0: memref<648x333xbf16, #tpu.memory_space<vmem>>, %arg1: memref<333x144xbf16, #tpu.memory_space<vmem>>, %arg2: memref<9x144x288xbf16, #tpu.memory_space<vmem>>, %arg3: memref<1x288xf32, #tpu.memory_space<vmem>>, %arg4: memref<9x288x256xbf16, #tpu.memory_space<vmem>>, %arg5: memref<1x256xf32, #tpu.memory_space<vmem>>, %arg6: memref<256x128xbf16, #tpu.memory_space<vmem>>, %arg7: memref<1x128xf32, #tpu.memory_space<vmem>>, %arg8: memref<8x128xf32, #tpu.memory_space<vmem>>) attributes {dimension_semantics = [], scalar_prefetch = 0 : i64, scratch_operands = 0 : i64, tpu.core_type = #tpu.core_type<tc>} {
    %c0 = arith.constant 0 : index
    %c0_0 = arith.constant 0 : index
    %0 = vector.load %arg0[%c0, %c0_0] : memref<648x333xbf16, #tpu.memory_space<vmem>>, vector<648x333xbf16>
    %c0_1 = arith.constant 0 : index
    %c0_2 = arith.constant 0 : index
    %1 = vector.load %arg1[%c0_1, %c0_2] : memref<333x144xbf16, #tpu.memory_space<vmem>>, vector<333x144xbf16>
    %cst = arith.constant dense<0.000000e+00> : vector<648x144xf32>
    %2 = tpu.matmul %0, %1, %cst {dimension_numbers = #tpu.dot_dimension_numbers<[1], [0], [0], [1], [0, 0, 1, 1], [], []>} : vector<648x333xbf16>, vector<333x144xbf16>, vector<648x144xf32> -> vector<648x144xf32>
    %cst_3 = arith.constant 0.000000e+00 : f32
    %3 = vector.broadcast %cst_3 : f32 to vector<648x144xf32>
    %4 = arith.maximumf %2, %3 : vector<648x144xf32>
    %cst_4 = arith.constant 0.000000e+00 : f32
    %5 = vector.broadcast %cst_4 : f32 to vector<72x288xf32>
    %6 = vector.extract_strided_slice %4 {offsets = [0, 0], sizes = [72, 144], strides = [1, 1]} : vector<648x144xf32> to vector<72x144xf32>
    %7 = arith.truncf %6 : vector<72x144xf32> to vector<72x144xbf16>
    %c0_5 = arith.constant 0 : index
    %c0_6 = arith.constant 0 : index
    %c0_7 = arith.constant 0 : index
    %8 = vector.load %arg2[%c0_5, %c0_6, %c0_7] : memref<9x144x288xbf16, #tpu.memory_space<vmem>>, vector<1x144x288xbf16>
    %9 = vector.shape_cast %8 : vector<1x144x288xbf16> to vector<144x288xbf16>
    %cst_8 = arith.constant dense<0.000000e+00> : vector<72x288xf32>
    %10 = tpu.matmul %7, %9, %cst_8 {dimension_numbers = #tpu.dot_dimension_numbers<[1], [0], [0], [1], [0, 0, 1, 1], [], []>} : vector<72x144xbf16>, vector<144x288xbf16>, vector<72x288xf32> -> vector<72x288xf32>
    %11 = arith.addf %5, %10 : vector<72x288xf32>
    %12 = vector.extract_strided_slice %4 {offsets = [72, 0], sizes = [72, 144], strides = [1, 1]} : vector<648x144xf32> to vector<72x144xf32>
    %13 = arith.truncf %12 : vector<72x144xf32> to vector<72x144xbf16>
    %c1 = arith.constant 1 : index
    %c0_9 = arith.constant 0 : index
    %c0_10 = arith.constant 0 : index
    %14 = vector.load %arg2[%c1, %c0_9, %c0_10] : memref<9x144x288xbf16, #tpu.memory_space<vmem>>, vector<1x144x288xbf16>
    %15 = vector.shape_cast %14 : vector<1x144x288xbf16> to vector<144x288xbf16>
    %cst_11 = arith.constant dense<0.000000e+00> : vector<72x288xf32>
    %16 = tpu.matmul %13, %15, %cst_11 {dimension_numbers = #tpu.dot_dimension_numbers<[1], [0], [0], [1], [0, 0, 1, 1], [], []>} : vector<72x144xbf16>, vector<144x288xbf16>, vector<72x288xf32> -> vector<72x288xf32>
    %17 = arith.addf %11, %16 : vector<72x288xf32>
    %18 = vector.extract_strided_slice %4 {offsets = [144, 0], sizes = [72, 144], strides = [1, 1]} : vector<648x144xf32> to vector<72x144xf32>
    %19 = arith.truncf %18 : vector<72x144xf32> to vector<72x144xbf16>
    %c2 = arith.constant 2 : index
    %c0_12 = arith.constant 0 : index
    %c0_13 = arith.constant 0 : index
    %20 = vector.load %arg2[%c2, %c0_12, %c0_13] : memref<9x144x288xbf16, #tpu.memory_space<vmem>>, vector<1x144x288xbf16>
    %21 = vector.shape_cast %20 : vector<1x144x288xbf16> to vector<144x288xbf16>
    %cst_14 = arith.constant dense<0.000000e+00> : vector<72x288xf32>
    %22 = tpu.matmul %19, %21, %cst_14 {dimension_numbers = #tpu.dot_dimension_numbers<[1], [0], [0], [1], [0, 0, 1, 1], [], []>} : vector<72x144xbf16>, vector<144x288xbf16>, vector<72x288xf32> -> vector<72x288xf32>
    %23 = arith.addf %17, %22 : vector<72x288xf32>
    %24 = vector.extract_strided_slice %4 {offsets = [216, 0], sizes = [72, 144], strides = [1, 1]} : vector<648x144xf32> to vector<72x144xf32>
    %25 = arith.truncf %24 : vector<72x144xf32> to vector<72x144xbf16>
    %c3 = arith.constant 3 : index
    %c0_15 = arith.constant 0 : index
    %c0_16 = arith.constant 0 : index
    %26 = vector.load %arg2[%c3, %c0_15, %c0_16] : memref<9x144x288xbf16, #tpu.memory_space<vmem>>, vector<1x144x288xbf16>
    %27 = vector.shape_cast %26 : vector<1x144x288xbf16> to vector<144x288xbf16>
    %cst_17 = arith.constant dense<0.000000e+00> : vector<72x288xf32>
    %28 = tpu.matmul %25, %27, %cst_17 {dimension_numbers = #tpu.dot_dimension_numbers<[1], [0], [0], [1], [0, 0, 1, 1], [], []>} : vector<72x144xbf16>, vector<144x288xbf16>, vector<72x288xf32> -> vector<72x288xf32>
    %29 = arith.addf %23, %28 : vector<72x288xf32>
    %30 = vector.extract_strided_slice %4 {offsets = [288, 0], sizes = [72, 144], strides = [1, 1]} : vector<648x144xf32> to vector<72x144xf32>
    %31 = arith.truncf %30 : vector<72x144xf32> to vector<72x144xbf16>
    %c4 = arith.constant 4 : index
    %c0_18 = arith.constant 0 : index
    %c0_19 = arith.constant 0 : index
    %32 = vector.load %arg2[%c4, %c0_18, %c0_19] : memref<9x144x288xbf16, #tpu.memory_space<vmem>>, vector<1x144x288xbf16>
    %33 = vector.shape_cast %32 : vector<1x144x288xbf16> to vector<144x288xbf16>
    %cst_20 = arith.constant dense<0.000000e+00> : vector<72x288xf32>
    %34 = tpu.matmul %31, %33, %cst_20 {dimension_numbers = #tpu.dot_dimension_numbers<[1], [0], [0], [1], [0, 0, 1, 1], [], []>} : vector<72x144xbf16>, vector<144x288xbf16>, vector<72x288xf32> -> vector<72x288xf32>
    %35 = arith.addf %29, %34 : vector<72x288xf32>
    %36 = vector.extract_strided_slice %4 {offsets = [360, 0], sizes = [72, 144], strides = [1, 1]} : vector<648x144xf32> to vector<72x144xf32>
    %37 = arith.truncf %36 : vector<72x144xf32> to vector<72x144xbf16>
    %c5 = arith.constant 5 : index
    %c0_21 = arith.constant 0 : index
    %c0_22 = arith.constant 0 : index
    %38 = vector.load %arg2[%c5, %c0_21, %c0_22] : memref<9x144x288xbf16, #tpu.memory_space<vmem>>, vector<1x144x288xbf16>
    %39 = vector.shape_cast %38 : vector<1x144x288xbf16> to vector<144x288xbf16>
    %cst_23 = arith.constant dense<0.000000e+00> : vector<72x288xf32>
    %40 = tpu.matmul %37, %39, %cst_23 {dimension_numbers = #tpu.dot_dimension_numbers<[1], [0], [0], [1], [0, 0, 1, 1], [], []>} : vector<72x144xbf16>, vector<144x288xbf16>, vector<72x288xf32> -> vector<72x288xf32>
    %41 = arith.addf %35, %40 : vector<72x288xf32>
    %42 = vector.extract_strided_slice %4 {offsets = [432, 0], sizes = [72, 144], strides = [1, 1]} : vector<648x144xf32> to vector<72x144xf32>
    %43 = arith.truncf %42 : vector<72x144xf32> to vector<72x144xbf16>
    %c6 = arith.constant 6 : index
    %c0_24 = arith.constant 0 : index
    %c0_25 = arith.constant 0 : index
    %44 = vector.load %arg2[%c6, %c0_24, %c0_25] : memref<9x144x288xbf16, #tpu.memory_space<vmem>>, vector<1x144x288xbf16>
    %45 = vector.shape_cast %44 : vector<1x144x288xbf16> to vector<144x288xbf16>
    %cst_26 = arith.constant dense<0.000000e+00> : vector<72x288xf32>
    %46 = tpu.matmul %43, %45, %cst_26 {dimension_numbers = #tpu.dot_dimension_numbers<[1], [0], [0], [1], [0, 0, 1, 1], [], []>} : vector<72x144xbf16>, vector<144x288xbf16>, vector<72x288xf32> -> vector<72x288xf32>
    %47 = arith.addf %41, %46 : vector<72x288xf32>
    %48 = vector.extract_strided_slice %4 {offsets = [504, 0], sizes = [72, 144], strides = [1, 1]} : vector<648x144xf32> to vector<72x144xf32>
    %49 = arith.truncf %48 : vector<72x144xf32> to vector<72x144xbf16>
    %c7 = arith.constant 7 : index
    %c0_27 = arith.constant 0 : index
    %c0_28 = arith.constant 0 : index
    %50 = vector.load %arg2[%c7, %c0_27, %c0_28] : memref<9x144x288xbf16, #tpu.memory_space<vmem>>, vector<1x144x288xbf16>
    %51 = vector.shape_cast %50 : vector<1x144x288xbf16> to vector<144x288xbf16>
    %cst_29 = arith.constant dense<0.000000e+00> : vector<72x288xf32>
    %52 = tpu.matmul %49, %51, %cst_29 {dimension_numbers = #tpu.dot_dimension_numbers<[1], [0], [0], [1], [0, 0, 1, 1], [], []>} : vector<72x144xbf16>, vector<144x288xbf16>, vector<72x288xf32> -> vector<72x288xf32>
    %53 = arith.addf %47, %52 : vector<72x288xf32>
    %54 = vector.extract_strided_slice %4 {offsets = [576, 0], sizes = [72, 144], strides = [1, 1]} : vector<648x144xf32> to vector<72x144xf32>
    %55 = arith.truncf %54 : vector<72x144xf32> to vector<72x144xbf16>
    %c8 = arith.constant 8 : index
    %c0_30 = arith.constant 0 : index
    %c0_31 = arith.constant 0 : index
    %56 = vector.load %arg2[%c8, %c0_30, %c0_31] : memref<9x144x288xbf16, #tpu.memory_space<vmem>>, vector<1x144x288xbf16>
    %57 = vector.shape_cast %56 : vector<1x144x288xbf16> to vector<144x288xbf16>
    %cst_32 = arith.constant dense<0.000000e+00> : vector<72x288xf32>
    %58 = tpu.matmul %55, %57, %cst_32 {dimension_numbers = #tpu.dot_dimension_numbers<[1], [0], [0], [1], [0, 0, 1, 1], [], []>} : vector<72x144xbf16>, vector<144x288xbf16>, vector<72x288xf32> -> vector<72x288xf32>
    %59 = arith.addf %53, %58 : vector<72x288xf32>
    %c0_33 = arith.constant 0 : index
    %c0_34 = arith.constant 0 : index
    %60 = vector.load %arg3[%c0_33, %c0_34] : memref<1x288xf32, #tpu.memory_space<vmem>>, vector<1x288xf32>
    %61 = vector.broadcast %60 : vector<1x288xf32> to vector<72x288xf32>
    %62 = arith.addf %59, %61 : vector<72x288xf32>
    %cst_35 = arith.constant 0.000000e+00 : f32
    %63 = vector.broadcast %cst_35 : f32 to vector<72x288xf32>
    %64 = arith.maximumf %62, %63 : vector<72x288xf32>
    %cst_36 = arith.constant 0.000000e+00 : f32
    %65 = vector.broadcast %cst_36 : f32 to vector<8x256xf32>
    %66 = vector.extract_strided_slice %64 {offsets = [0, 0], sizes = [8, 288], strides = [1, 1]} : vector<72x288xf32> to vector<8x288xf32>
    %67 = arith.truncf %66 : vector<8x288xf32> to vector<8x288xbf16>
    %c0_37 = arith.constant 0 : index
    %c0_38 = arith.constant 0 : index
    %c0_39 = arith.constant 0 : index
    %68 = vector.load %arg4[%c0_37, %c0_38, %c0_39] : memref<9x288x256xbf16, #tpu.memory_space<vmem>>, vector<1x288x256xbf16>
    %69 = vector.shape_cast %68 : vector<1x288x256xbf16> to vector<288x256xbf16>
    %cst_40 = arith.constant dense<0.000000e+00> : vector<8x256xf32>
    %70 = tpu.matmul %67, %69, %cst_40 {dimension_numbers = #tpu.dot_dimension_numbers<[1], [0], [0], [1], [0, 0, 1, 1], [], []>} : vector<8x288xbf16>, vector<288x256xbf16>, vector<8x256xf32> -> vector<8x256xf32>
    %71 = arith.addf %65, %70 : vector<8x256xf32>
    %72 = vector.extract_strided_slice %64 {offsets = [8, 0], sizes = [8, 288], strides = [1, 1]} : vector<72x288xf32> to vector<8x288xf32>
    %73 = arith.truncf %72 : vector<8x288xf32> to vector<8x288xbf16>
    %c1_41 = arith.constant 1 : index
    %c0_42 = arith.constant 0 : index
    %c0_43 = arith.constant 0 : index
    %74 = vector.load %arg4[%c1_41, %c0_42, %c0_43] : memref<9x288x256xbf16, #tpu.memory_space<vmem>>, vector<1x288x256xbf16>
    %75 = vector.shape_cast %74 : vector<1x288x256xbf16> to vector<288x256xbf16>
    %cst_44 = arith.constant dense<0.000000e+00> : vector<8x256xf32>
    %76 = tpu.matmul %73, %75, %cst_44 {dimension_numbers = #tpu.dot_dimension_numbers<[1], [0], [0], [1], [0, 0, 1, 1], [], []>} : vector<8x288xbf16>, vector<288x256xbf16>, vector<8x256xf32> -> vector<8x256xf32>
    %77 = arith.addf %71, %76 : vector<8x256xf32>
    %78 = vector.extract_strided_slice %64 {offsets = [16, 0], sizes = [8, 288], strides = [1, 1]} : vector<72x288xf32> to vector<8x288xf32>
    %79 = arith.truncf %78 : vector<8x288xf32> to vector<8x288xbf16>
    %c2_45 = arith.constant 2 : index
    %c0_46 = arith.constant 0 : index
    %c0_47 = arith.constant 0 : index
    %80 = vector.load %arg4[%c2_45, %c0_46, %c0_47] : memref<9x288x256xbf16, #tpu.memory_space<vmem>>, vector<1x288x256xbf16>
    %81 = vector.shape_cast %80 : vector<1x288x256xbf16> to vector<288x256xbf16>
    %cst_48 = arith.constant dense<0.000000e+00> : vector<8x256xf32>
    %82 = tpu.matmul %79, %81, %cst_48 {dimension_numbers = #tpu.dot_dimension_numbers<[1], [0], [0], [1], [0, 0, 1, 1], [], []>} : vector<8x288xbf16>, vector<288x256xbf16>, vector<8x256xf32> -> vector<8x256xf32>
    %83 = arith.addf %77, %82 : vector<8x256xf32>
    %84 = vector.extract_strided_slice %64 {offsets = [24, 0], sizes = [8, 288], strides = [1, 1]} : vector<72x288xf32> to vector<8x288xf32>
    %85 = arith.truncf %84 : vector<8x288xf32> to vector<8x288xbf16>
    %c3_49 = arith.constant 3 : index
    %c0_50 = arith.constant 0 : index
    %c0_51 = arith.constant 0 : index
    %86 = vector.load %arg4[%c3_49, %c0_50, %c0_51] : memref<9x288x256xbf16, #tpu.memory_space<vmem>>, vector<1x288x256xbf16>
    %87 = vector.shape_cast %86 : vector<1x288x256xbf16> to vector<288x256xbf16>
    %cst_52 = arith.constant dense<0.000000e+00> : vector<8x256xf32>
    %88 = tpu.matmul %85, %87, %cst_52 {dimension_numbers = #tpu.dot_dimension_numbers<[1], [0], [0], [1], [0, 0, 1, 1], [], []>} : vector<8x288xbf16>, vector<288x256xbf16>, vector<8x256xf32> -> vector<8x256xf32>
    %89 = arith.addf %83, %88 : vector<8x256xf32>
    %90 = vector.extract_strided_slice %64 {offsets = [32, 0], sizes = [8, 288], strides = [1, 1]} : vector<72x288xf32> to vector<8x288xf32>
    %91 = arith.truncf %90 : vector<8x288xf32> to vector<8x288xbf16>
    %c4_53 = arith.constant 4 : index
    %c0_54 = arith.constant 0 : index
    %c0_55 = arith.constant 0 : index
    %92 = vector.load %arg4[%c4_53, %c0_54, %c0_55] : memref<9x288x256xbf16, #tpu.memory_space<vmem>>, vector<1x288x256xbf16>
    %93 = vector.shape_cast %92 : vector<1x288x256xbf16> to vector<288x256xbf16>
    %cst_56 = arith.constant dense<0.000000e+00> : vector<8x256xf32>
    %94 = tpu.matmul %91, %93, %cst_56 {dimension_numbers = #tpu.dot_dimension_numbers<[1], [0], [0], [1], [0, 0, 1, 1], [], []>} : vector<8x288xbf16>, vector<288x256xbf16>, vector<8x256xf32> -> vector<8x256xf32>
    %95 = arith.addf %89, %94 : vector<8x256xf32>
    %96 = vector.extract_strided_slice %64 {offsets = [40, 0], sizes = [8, 288], strides = [1, 1]} : vector<72x288xf32> to vector<8x288xf32>
    %97 = arith.truncf %96 : vector<8x288xf32> to vector<8x288xbf16>
    %c5_57 = arith.constant 5 : index
    %c0_58 = arith.constant 0 : index
    %c0_59 = arith.constant 0 : index
    %98 = vector.load %arg4[%c5_57, %c0_58, %c0_59] : memref<9x288x256xbf16, #tpu.memory_space<vmem>>, vector<1x288x256xbf16>
    %99 = vector.shape_cast %98 : vector<1x288x256xbf16> to vector<288x256xbf16>
    %cst_60 = arith.constant dense<0.000000e+00> : vector<8x256xf32>
    %100 = tpu.matmul %97, %99, %cst_60 {dimension_numbers = #tpu.dot_dimension_numbers<[1], [0], [0], [1], [0, 0, 1, 1], [], []>} : vector<8x288xbf16>, vector<288x256xbf16>, vector<8x256xf32> -> vector<8x256xf32>
    %101 = arith.addf %95, %100 : vector<8x256xf32>
    %102 = vector.extract_strided_slice %64 {offsets = [48, 0], sizes = [8, 288], strides = [1, 1]} : vector<72x288xf32> to vector<8x288xf32>
    %103 = arith.truncf %102 : vector<8x288xf32> to vector<8x288xbf16>
    %c6_61 = arith.constant 6 : index
    %c0_62 = arith.constant 0 : index
    %c0_63 = arith.constant 0 : index
    %104 = vector.load %arg4[%c6_61, %c0_62, %c0_63] : memref<9x288x256xbf16, #tpu.memory_space<vmem>>, vector<1x288x256xbf16>
    %105 = vector.shape_cast %104 : vector<1x288x256xbf16> to vector<288x256xbf16>
    %cst_64 = arith.constant dense<0.000000e+00> : vector<8x256xf32>
    %106 = tpu.matmul %103, %105, %cst_64 {dimension_numbers = #tpu.dot_dimension_numbers<[1], [0], [0], [1], [0, 0, 1, 1], [], []>} : vector<8x288xbf16>, vector<288x256xbf16>, vector<8x256xf32> -> vector<8x256xf32>
    %107 = arith.addf %101, %106 : vector<8x256xf32>
    %108 = vector.extract_strided_slice %64 {offsets = [56, 0], sizes = [8, 288], strides = [1, 1]} : vector<72x288xf32> to vector<8x288xf32>
    %109 = arith.truncf %108 : vector<8x288xf32> to vector<8x288xbf16>
    %c7_65 = arith.constant 7 : index
    %c0_66 = arith.constant 0 : index
    %c0_67 = arith.constant 0 : index
    %110 = vector.load %arg4[%c7_65, %c0_66, %c0_67] : memref<9x288x256xbf16, #tpu.memory_space<vmem>>, vector<1x288x256xbf16>
    %111 = vector.shape_cast %110 : vector<1x288x256xbf16> to vector<288x256xbf16>
    %cst_68 = arith.constant dense<0.000000e+00> : vector<8x256xf32>
    %112 = tpu.matmul %109, %111, %cst_68 {dimension_numbers = #tpu.dot_dimension_numbers<[1], [0], [0], [1], [0, 0, 1, 1], [], []>} : vector<8x288xbf16>, vector<288x256xbf16>, vector<8x256xf32> -> vector<8x256xf32>
    %113 = arith.addf %107, %112 : vector<8x256xf32>
    %114 = vector.extract_strided_slice %64 {offsets = [64, 0], sizes = [8, 288], strides = [1, 1]} : vector<72x288xf32> to vector<8x288xf32>
    %115 = arith.truncf %114 : vector<8x288xf32> to vector<8x288xbf16>
    %c8_69 = arith.constant 8 : index
    %c0_70 = arith.constant 0 : index
    %c0_71 = arith.constant 0 : index
    %116 = vector.load %arg4[%c8_69, %c0_70, %c0_71] : memref<9x288x256xbf16, #tpu.memory_space<vmem>>, vector<1x288x256xbf16>
    %117 = vector.shape_cast %116 : vector<1x288x256xbf16> to vector<288x256xbf16>
    %cst_72 = arith.constant dense<0.000000e+00> : vector<8x256xf32>
    %118 = tpu.matmul %115, %117, %cst_72 {dimension_numbers = #tpu.dot_dimension_numbers<[1], [0], [0], [1], [0, 0, 1, 1], [], []>} : vector<8x288xbf16>, vector<288x256xbf16>, vector<8x256xf32> -> vector<8x256xf32>
    %119 = arith.addf %113, %118 : vector<8x256xf32>
    %c0_73 = arith.constant 0 : index
    %c0_74 = arith.constant 0 : index
    %120 = vector.load %arg5[%c0_73, %c0_74] : memref<1x256xf32, #tpu.memory_space<vmem>>, vector<1x256xf32>
    %121 = vector.broadcast %120 : vector<1x256xf32> to vector<8x256xf32>
    %122 = arith.addf %119, %121 : vector<8x256xf32>
    %cst_75 = arith.constant 0.000000e+00 : f32
    %123 = vector.broadcast %cst_75 : f32 to vector<8x256xf32>
    %124 = arith.maximumf %122, %123 : vector<8x256xf32>
    %125 = arith.truncf %124 : vector<8x256xf32> to vector<8x256xbf16>
    %c0_76 = arith.constant 0 : index
    %c0_77 = arith.constant 0 : index
    %126 = vector.load %arg6[%c0_76, %c0_77] : memref<256x128xbf16, #tpu.memory_space<vmem>>, vector<256x128xbf16>
    %cst_78 = arith.constant dense<0.000000e+00> : vector<8x128xf32>
    %127 = tpu.matmul %125, %126, %cst_78 {dimension_numbers = #tpu.dot_dimension_numbers<[1], [0], [0], [1], [0, 0, 1, 1], [], []>} : vector<8x256xbf16>, vector<256x128xbf16>, vector<8x128xf32> -> vector<8x128xf32>
    %c0_79 = arith.constant 0 : index
    %c0_80 = arith.constant 0 : index
    %128 = vector.load %arg7[%c0_79, %c0_80] : memref<1x128xf32, #tpu.memory_space<vmem>>, vector<1x128xf32>
    %129 = vector.broadcast %128 : vector<1x128xf32> to vector<8x128xf32>
    %130 = arith.addf %127, %129 : vector<8x128xf32>
    %c0_81 = arith.constant 0 : index
    %c0_82 = arith.constant 0 : index
    %131 = vector.load %arg8[%c0_81, %c0_82] : memref<8x128xf32, #tpu.memory_space<vmem>>, vector<8x128xf32>
    tpu.vector_store %arg8[%c0_81, %c0_82], %130 {strides = array<i32>} : memref<8x128xf32, #tpu.memory_space<vmem>>, vector<8x128xf32>,
    return
  }
}

</mosaic_0001>

<bundles_post_ra>
// kernel: forward.1
= control target key start
LH: loop header
LB: loop body
LE: loop exit
PB: predicated region body
PF: predicated region fallthrough
CT: control target
= control target key end

     0   :  { %vm1176_vm0 = vcmask 1045504   ;;  %vm1177_vm1 = vcmask 1046528   ;;  %vm1052_vm2 = vcmask 629760   ;;  %vm2467_vm3 = vcmask 130048   ;;  %s14851_s1 = inlined_call_operand.vmem [shape: bf16[333,144], index: 1, kind: input, shape index: {}]   ;;  %s14852_s0 = inlined_call_operand.vmem [shape: bf16[648,333], index: 0, kind: input, shape index: {}]   ;;  %s14853_s2 = inlined_call_operand.vmem [shape: bf16[9,144,288], index: 2, kind: input, shape index: {}]   ;;  %s14854_s4 = inlined_call_operand.vmem [shape: bf16[9,288,256], index: 4, kind: input, shape index: {}]   ;;  %s14855_s3 = inlined_call_operand.vmem [shape: f32[1,288], index: 3, kind: input, shape index: {}]   ;;  %s14856_s6 = inlined_call_operand.vmem [shape: bf16[256,128], index: 6, kind: input, shape index: {}]   ;;  %s14857_s5 = inlined_call_operand.vmem [shape: f32[1,256], index: 5, kind: input, shape index: {}]   ;;  %s14858_s7 = inlined_call_operand.vmem [shape: f32[1,128], index: 7, kind: input, shape index: {}]   ;;  %s14859_s8 = inlined_call_operand.vmem [shape: f32[8,128], index: 8, kind: output, shape index: {}]  }
   0x1   :  { %v10459_v0 = vld [vmem:[%s14851_s1 + $0x4] ss:$8 sps:$4 sm:$0xff]   ;;  %v10461_v1 = vld [vmem:[%s14851_s1] ss:$8 sps:$4 sm:$0xff]   ;;  %v10462_v2 = vld [vmem:[%s14851_s1 + $0x14] ss:$8 sps:$4 sm:$0xff]  }
   0x2   :  { %1186 = vmatprep.subr.bf16.mxu0 %v10459_v0  ;;  %v10464_v3 = vld [vmem:[%s14851_s1 + $0x10] ss:$8 sps:$4 sm:$0xff]   ;;  %v10465_v4 = vld [vmem:[%s14851_s1 + $0x24] ss:$8 sps:$4 sm:$0xff]   ;;  %v10467_v5 = vld [vmem:[%s14851_s1 + $0x20] ss:$8 sps:$4 sm:$0xff]  }
   0x3   :  { %1187 = vmatpush1.bf16.msra.mxu0 %v10461_v1  ;;  %v10468_v6 = vld [vmem:[%s14851_s1 + $0x34] ss:$8 sps:$4 sm:$0xff]   ;;  %v10470_v7 = vld [vmem:[%s14851_s1 + $0x30] ss:$8 sps:$4 sm:$0xff]   ;;  %v10471_v8 = vld [vmem:[%s14851_s1 + $0x44] ss:$8 sps:$4 sm:$0xff]  }
   0x4   :  { %1188 = vmatprep.subr.bf16.mxu0 %v10462_v2  ;;  %v10473_v9 = vld [vmem:[%s14851_s1 + $0x40] ss:$8 sps:$4 sm:$0xff]   ;;  %v10474_v10 = vld [vmem:[%s14851_s1 + $0x54] ss:$8 sps:$4 sm:$0xff]   ;;  %v10476_v11 = vld [vmem:[%s14851_s1 + $0x50] ss:$8 sps:$4 sm:$0xff]  }
   0x5   :  { %v10477_v12 = vld [vmem:[%s14851_s1 + $0x64] ss:$8 sps:$4 sm:$0xff]   ;;  %v10479_v14 = vld [vmem:[%s14851_s1 + $0x60] ss:$8 sps:$4 sm:$0xff]   ;;  %v10480_v15 = vld [vmem:[%s14851_s1 + $0x74] ss:$8 sps:$4 sm:$0xff]  }
   0x6   :  { %v10509_v13 = vld [vmem:[%s14852_s0 + $0x4] ss:$12 sps:$4 sm:$0xff]   ;;  %v10485_v18 = vld [vmem:[%s14851_s1 + $0x80] ss:$8 sps:$4 sm:$0xff]   ;;  %v10486_v19 = vld [vmem:[%s14851_s1 + $0x94] ss:$8 sps:$4 sm:$0xff]  }
   0x7   :  { %1189 = vmatpush1.bf16.msra.mxu0 %v10464_v3  ;;  %1218 = vmatprep.mubr.bf16.mxu0 %v10509_v13  ;;  %v10482_v16 = vld [vmem:[%s14851_s1 + $0x70] ss:$8 sps:$4 sm:$0xff]   ;;  %v10483_v17 = vld [vmem:[%s14851_s1 + $0x84] ss:$8 sps:$4 sm:$0xff]   ;;  %v10491_v22 = vld [vmem:[%s14851_s1 + $0xa0] ss:$8 sps:$4 sm:$0xff]  }
   0x8   :  { %1190 = vmatprep.subr.bf16.mxu0 %v10465_v4  ;;  %v10488_v20 = vld [vmem:[%s14851_s1 + $0x90] ss:$8 sps:$4 sm:$0xff]   ;;  %v10489_v21 = vld [vmem:[%s14851_s1 + $0xa4] ss:$8 sps:$4 sm:$0xff]   ;;  %v10492_v23 = vld [vmem:[%s14851_s1 + $0xb4] ss:$8 sps:$4 sm:$0xff]  }
   0x9   :  { %v10494_v24 = vld [vmem:[%s14851_s1 + $0xb0] ss:$8 sps:$4 sm:$0xff]   ;;  %v10495_v25 = vld [vmem:[%s14851_s1 + $0xc4] ss:$8 sps:$4 sm:$0xff]   ;;  %v10497_v26 = vld [vmem:[%s14851_s1 + $0xc0] ss:$8 sps:$4 sm:$0xff]  }
   0xa   :  { %v10498_v27 = vld [vmem:[%s14851_s1 + $0xd4] ss:$8 sps:$4 sm:$0xff]   ;;  %v10500_v28 = vld [vmem:[%s14851_s1 + $0xd0] ss:$8 sps:$4 sm:$0xff]   ;;  %v10501_v29 = vld [vmem:[%s14851_s1 + $0xe4] ss:$8 sps:$4 sm:$0xff]  }
   0xb   :  { %1191 = vmatpush1.bf16.msra.mxu0 %v10467_v5  ;;  %v10503_v30 = vld [vmem:[%s14851_s1 + $0xe0] ss:$8 sps:$4 sm:$0xff]   ;;  %v10504_v31 = vld [vmem:[%s14851_s1 + $0xf4] ss:$8 sps:$4 sm:$0xff]   ;;  %v10506_v32 = vld [vmem:[%s14851_s1 + $0xf0] ss:$8 sps:$4 sm:$0xff]  }
   0xc   :  { %1192 = vmatprep.subr.bf16.mxu0 %v10468_v6  ;;  %v10512_v33 = vld [vmem:[%s14851_s1 + $0x104] ss:$8 sps:$4 sm:$0xff]   ;;  %v10510_v35 = vld [vmem:[%s14851_s1 + $0x100] ss:$8 sps:$4 sm:$0xff]   ;;  %v10539_v37 = vld [vmem:[%s14851_s1 + $0x114] ss:$8 sps:$4 sm:$0xff]  }
   0xd   :  { %v10507_v34 = vld [vmem:[%s14852_s0] ss:$12 sps:$4 sm:$0xff]   ;;  %v10513_v36 = vld [vmem:[%s14852_s0 + $0x1c] ss:$12 sps:$4 sm:$0xff]   ;;  %v10537_v38 = vld [vmem:[%s14851_s1 + $0x110] ss:$8 sps:$4 sm:$0xff]  }
   0xe   :  { %v10566_v39 = vld [vmem:[%s14851_s1 + $0x124] ss:$8 sps:$4 sm:$0xff]   ;;  %v10516_v41 = vld [vmem:[%s14852_s0 + $0x34] ss:$12 sps:$4 sm:$0xff]   ;;  %v10518_v43 = vld [vmem:[%s14852_s0 + $0x30] ss:$12 sps:$4 sm:$0xff]  }
   0xf   :  { %1193 = vmatpush1.bf16.msra.mxu0 %v10470_v7  ;;  %v10515_v40 = vld [vmem:[%s14852_s0 + $0x18] ss:$12 sps:$4 sm:$0xff]   ;;  %v10564_v42 = vld [vmem:[%s14851_s1 + $0x120] ss:$8 sps:$4 sm:$0xff]   ;;  %v10530_v51 = vld [vmem:[%s14852_s0 + $0x90] ss:$12 sps:$4 sm:$0xff]  }
  0x10   :  { %1194 = vmatprep.subr.bf16.mxu0 %v10471_v8  ;;  %v10519_v44 = vld [vmem:[%s14852_s0 + $0x4c] ss:$12 sps:$4 sm:$0xff]   ;;  %v10521_v45 = vld [vmem:[%s14852_s0 + $0x48] ss:$12 sps:$4 sm:$0xff]   ;;  %v10522_v46 = vld [vmem:[%s14852_s0 + $0x64] ss:$12 sps:$4 sm:$0xff]  }
  0x11   :  { %v10524_v47 = vld [vmem:[%s14852_s0 + $0x60] ss:$12 sps:$4 sm:$0xff]   ;;  %v10525_v48 = vld [vmem:[%s14852_s0 + $0x7c] ss:$12 sps:$4 sm:$0xff]   ;;  %v10527_v49 = vld [vmem:[%s14852_s0 + $0x78] ss:$12 sps:$4 sm:$0xff]  }
  0x12   :  { %v10528_v50 = vld [vmem:[%s14852_s0 + $0x94] ss:$12 sps:$4 sm:$0xff]   ;;  %v10531_v52 = vld [vmem:[%s14852_s0 + $0xac] ss:$12 sps:$4 sm:$0xff]   ;;  %v10534_v54 = vld [vmem:[%s14852_s0 + $0xc4] ss:$12 sps:$4 sm:$0xff]  }
  0x13   :  { %1195 = vmatpush1.bf16.msra.mxu0 %v10473_v9  ;;  %v10533_v53 = vld [vmem:[%s14852_s0 + $0xa8] ss:$12 sps:$4 sm:$0xff]   ;;  %v10536_v55 = vld [vmem:[%s14852_s0 + $0xc0] ss:$12 sps:$4 sm:$0xff]   ;;  %v10591_v57 = vld [vmem:[%s14851_s1 + $0x130] ss:$8 sps:$4 sm:$0xff]  }
  0x14   :  { %1196 = vmatprep.subr.bf16.mxu0 %v10474_v10  ;;  %v10540_v56 = vld [vmem:[%s14852_s0 + $0xdc] ss:$12 sps:$4 sm:$0xff]   ;;  %v10542_v59 = vld [vmem:[%s14852_s0 + $0xd8] ss:$12 sps:$4 sm:$0xff]   ;;  %v10543_v60 = vld [vmem:[%s14852_s0 + $0xf4] ss:$12 sps:$4 sm:$0xff]  }
  0x15   :  { %v10593_v58 = vld [vmem:[%s14851_s1 + $0x134] ss:$8 sps:$4 sm:$0xff]   ;;  %v10546_v62 = vld [vmem:[%s14852_s0 + $0x10c] ss:$12 sps:$4 sm:$0xff]   ;;  %v10549_v0 = vld [vmem:[%s14852_s0 + $0x124] ss:$12 sps:$4 sm:$0xff]  }
  0x16   :  { %v10545_v61 = vld [vmem:[%s14852_s0 + $0xf0] ss:$12 sps:$4 sm:$0xff]   ;;  %v10548_v63 = vld [vmem:[%s14852_s0 + $0x108] ss:$12 sps:$4 sm:$0xff]   ;;  %v10551_v1 = vld [vmem:[%s14852_s0 + $0x120] ss:$12 sps:$4 sm:$0xff]  }
  0x17   :  { %1197 = vmatpush1.bf16.msra.mxu0 %v10476_v11  ;;  %v10552_v2 = vld [vmem:[%s14852_s0 + $0x13c] ss:$12 sps:$4 sm:$0xff]   ;;  %v10554_v3 = vld [vmem:[%s14852_s0 + $0x138] ss:$12 sps:$4 sm:$0xff]   ;;  %v10555_v4 = vld [vmem:[%s14852_s0 + $0x154] ss:$12 sps:$4 sm:$0xff]  }
  0x18   :  { %1198 = vmatprep.subr.bf16.mxu0 %v10477_v12  ;;  %v10557_v5 = vld [vmem:[%s14852_s0 + $0x150] ss:$12 sps:$4 sm:$0xff]   ;;  %v10558_v6 = vld [vmem:[%s14852_s0 + $0x16c] ss:$12 sps:$4 sm:$0xff]   ;;  %v10560_v7 = vld [vmem:[%s14852_s0 + $0x168] ss:$12 sps:$4 sm:$0xff]  }
  0x19   :  { %v10561_v8 = vld [vmem:[%s14852_s0 + $0x184] ss:$12 sps:$4 sm:$0xff]   ;;  %v10563_v9 = vld [vmem:[%s14852_s0 + $0x180] ss:$12 sps:$4 sm:$0xff]   ;;  %v10567_v10 = vld [vmem:[%s14852_s0 + $0x19c] ss:$12 sps:$4 sm:$0xff]  }
  0x1a   :  { %v10620_v11 = vld [vmem:[%s14851_s1 + $0x140] ss:$8 sps:$4 sm:$0x7f]   ;;  %v10622_v12 = vld [vmem:[%s14851_s1 + $0x144] ss:$8 sps:$4 sm:$0x7f]  }
  0x1b   :  { %1199 = vmatpush1.bf16.msra.mxu0 %v10479_v14  ;;  %v11511_v13 = vmov 65535   ;;  %vm5980_vm4 = vcmask 261120  }
  0x1c   :  { %1200 = vmatprep.subr.bf16.mxu0 %v10480_v15  ;;  %v1178_v14 = vsel %vm1176_vm0, 4294967295, %v11511_v13  ;;  %v10569_v15 = vld [vmem:[%s14852_s0 + $0x198] ss:$12 sps:$4 sm:$0xff]  }
  0x1d   :  { %v10654_v13 = vld [vmem:[%s14852_s0 + $0xf8] ss:$12 sps:$4 sm:$0xff]  }
  0x1f   :  { %1201 = vmatpush1.bf16.msra.mxu0 %v10482_v16  ;;  %v1179_v16 = vsel %vm1177_vm1, %v1178_v14, 0  ;;  %v10655_v14 = vld [vmem:[%s14852_s0 + $0x110] ss:$12 sps:$4 sm:$0xff]  }
  0x20   :  { %1202 = vmatprep.subr.bf16.mxu0 %v10483_v17  ;;  %v10570_v17 = vld [vmem:[%s14852_s0 + $0x1b4] ss:$12 sps:$4 sm:$0xff]  }
  0x23   :  { %1203 = vmatpush1.bf16.msra.mxu0 %v10485_v18  ;;  %v1181_v18 = vand.u32 %v10620_v11, %v1179_v16  ;;  %v10652_v11 = vld [vmem:[%s14852_s0 + $0xc8] ss:$12 sps:$4 sm:$0xff]  }
  0x24   :  { %1204 = vmatprep.subr.bf16.mxu0 %v10486_v19  ;;  %v1184_v19 = vand.u32 %v10622_v12, %v1179_v16  ;;  %v10653_v12 = vld [vmem:[%s14852_s0 + $0xe0] ss:$12 sps:$4 sm:$0xff]   ;;  %v10672_v16 = vld [vmem:[%s14853_s2 + $0xdc] ss:$12 sps:$4 sm:$0xff]  }
  0x25   :  { %2483 = vmatprep.subr.bf16.mxu1 %v10672_v16 }
  0x27   :  { %1205 = vmatpush1.bf16.msra.mxu0 %v10488_v20  ;;  %v10572_v20 = vld [vmem:[%s14852_s0 + $0x1b0] ss:$12 sps:$4 sm:$0xff]  }
  0x28   :  { %1206 = vmatprep.subr.bf16.mxu0 %v10489_v21  ;;  %v10573_v21 = vld [vmem:[%s14852_s0 + $0x1cc] ss:$12 sps:$4 sm:$0xff]  }
  0x2b   :  { %1207 = vmatpush1.bf16.msra.mxu0 %v10491_v22  ;;  %v10575_v22 = vld [vmem:[%s14852_s0 + $0x1c8] ss:$12 sps:$4 sm:$0xff]  }
  0x2c   :  { %1208 = vmatprep.subr.bf16.mxu0 %v10492_v23  ;;  %v10576_v23 = vld [vmem:[%s14852_s0 + $0x1e4] ss:$12 sps:$4 sm:$0xff]  }
  0x2f   :  { %1209 = vmatpush1.bf16.msra.mxu0 %v10494_v24  ;;  %v10578_v24 = vld [vmem:[%s14852_s0 + $0x1e0] ss:$12 sps:$4 sm:$0xff]  }
  0x30   :  { %1210 = vmatprep.subr.bf16.mxu0 %v10495_v25  ;;  %v10579_v25 = vld [vmem:[%s14852_s0 + $0x1fc] ss:$12 sps:$4 sm:$0xff]  }
  0x33   :  { %1211 = vmatpush1.bf16.msra.mxu0 %v10497_v26  ;;  %v10581_v26 = vld [vmem:[%s14852_s0 + $0x1f8] ss:$12 sps:$4 sm:$0xff]  }
  0x34   :  { %1212 = vmatprep.subr.bf16.mxu0 %v10498_v27  ;;  %v10582_v27 = vld [vmem:[%s14852_s0 + $0x214] ss:$12 sps:$4 sm:$0xff]  }
  0x37   :  { %1213 = vmatpush1.bf16.msra.mxu0 %v10500_v28  ;;  %v10584_v28 = vld [vmem:[%s14852_s0 + $0x210] ss:$12 sps:$4 sm:$0xff]  }
  0x38   :  { %1214 = vmatprep.subr.bf16.mxu0 %v10501_v29  ;;  %v10585_v29 = vld [vmem:[%s14852_s0 + $0x22c] ss:$12 sps:$4 sm:$0xff]  }
  0x3b   :  { %1215 = vmatpush1.bf16.msra.mxu0 %v10503_v30  ;;  %v10587_v30 = vld [vmem:[%s14852_s0 + $0x228] ss:$12 sps:$4 sm:$0xff]  }
  0x3c   :  { %1216 = vmatprep.subr.bf16.mxu0 %v10504_v31  ;;  %v10588_v31 = vld [vmem:[%s14852_s0 + $0x244] ss:$12 sps:$4 sm:$0xff]  }
  0x3f   :  { %1217 = vmatpush1.bf16.msra.mxu0 %v10506_v32  ;;  %v10590_v32 = vld [vmem:[%s14852_s0 + $0x240] ss:$12 sps:$4 sm:$0xff]  }
  0x40   :  { %1627 = vmatprep.subr.bf16.mxu0 %v10512_v33  ;;  %v10594_v33 = vld [vmem:[%s14852_s0 + $0x25c] ss:$12 sps:$4 sm:$0xff]  }
  0x42   :  { %1219 = vmatmul.mubr.bf16.vlgmr.msra.gmra.mrb[0].mxu0 %v10507_v34  ;;  %v10596_v34 = vld [vmem:[%s14852_s0 + $0x258] ss:$12 sps:$4 sm:$0xff]  }
  0x43   :  { %1628 = vmatpush1.bf16.msra.mxu0 %v10510_v35  ;;  %1228 = vmatprep.mubr.bf16.mxu0 %v10513_v36  ;;  %v10597_v35 = vld [vmem:[%s14852_s0 + $0x274] ss:$12 sps:$4 sm:$0xff]   ;;  %v10599_v36 = vld [vmem:[%s14852_s0 + $0x270] ss:$12 sps:$4 sm:$0xff]  }
  0x44   :  { %1629 = vmatprep.subr.bf16.mxu0 %v10539_v37  ;;  %v10600_v37 = vld [vmem:[%s14852_s0 + $0x28c] ss:$12 sps:$4 sm:$0xff]  }
  0x47   :  { %1630 = vmatpush1.bf16.msra.mxu0 %v10537_v38  ;;  %v10602_v38 = vld [vmem:[%s14852_s0 + $0x288] ss:$12 sps:$4 sm:$0xff]  }
  0x48   :  { %1631 = vmatprep.subr.bf16.mxu0 %v10566_v39  ;;  %v10603_v39 = vld [vmem:[%s14852_s0 + $0x2a4] ss:$12 sps:$4 sm:$0xff]  }
  0x4a   :  { %1229 = vmatmul.mubr.bf16.gmra.mrb[4].mxu0 %v10515_v40  ;;  %v10605_v40 = vld [vmem:[%s14852_s0 + $0x2a0] ss:$12 sps:$4 sm:$0xff]  }
  0x4b   :  { %1238 = vmatprep.mubr.bf16.mxu0 %v10516_v41  ;;  %1632 = vmatpush1.bf16.msra.mxu0 %v10564_v42  ;;  %v10606_v41 = vld [vmem:[%s14852_s0 + $0x2bc] ss:$12 sps:$4 sm:$0xff]   ;;  %v10608_v42 = vld [vmem:[%s14852_s0 + $0x2b8] ss:$12 sps:$4 sm:$0xff]  }
  0x4c   :  { %1633 = vmatprep.subr.bf16.mxu0 %v10593_v58  ;;  %v10635_v58 = vld [vmem:[%s14852_s0 + $0x378] ss:$12 sps:$4 sm:$0xff]  }
  0x4f   :  { %1634 = vmatpush1.bf16.msra.mxu0 %v10591_v57  ;;  %v10633_v57 = vld [vmem:[%s14852_s0 + $0x37c] ss:$12 sps:$4 sm:$0xff]  }
  0x50   :  { %1635 = vmatprep.subr.bf16.mxu0 %v1184_v19  ;;  %v10678_v19 = vld [vmem:[%s14853_s2 + $0xf0] ss:$12 sps:$4 sm:$0xff]  }
  0x52   :  { %1239 = vmatmul.mubr.bf16.gmra.mrb[8].mxu0 %v10518_v43  ;;  %v10609_v43 = vld [vmem:[%s14852_s0 + $0x2d4] ss:$12 sps:$4 sm:$0xff]  }
  0x53   :  { %1248 = vmatprep.mubr.bf16.mxu0 %v10519_v44  ;;  %1636 = vmatpush1.bf16.msra.mxu0 %v1181_v18  ;;  %v10611_v44 = vld [vmem:[%s14852_s0 + $0x2d0] ss:$12 sps:$4 sm:$0xff]   ;;  %v10676_v18 = vld [vmem:[%s14853_s2 + $0xf4] ss:$12 sps:$4 sm:$0xff]  }
  0x5a   :  { %1249 = vmatmul.mubr.bf16.gmra.mrb[12].mxu0 %v10521_v45  ;;  %v10612_v45 = vld [vmem:[%s14852_s0 + $0x2ec] ss:$12 sps:$4 sm:$0xff]  }
  0x5b   :  { %1258 = vmatprep.mubr.bf16.mxu0 %v10522_v46  ;;  %v10614_v46 = vld [vmem:[%s14852_s0 + $0x2e8] ss:$12 sps:$4 sm:$0xff]  }
  0x62   :  { %1259 = vmatmul.mubr.bf16.gmra.mrb[16].mxu0 %v10524_v47  ;;  %v10615_v47 = vld [vmem:[%s14852_s0 + $0x304] ss:$12 sps:$4 sm:$0xff]  }
  0x63   :  { %1268 = vmatprep.mubr.bf16.mxu0 %v10525_v48  ;;  %v10617_v48 = vld [vmem:[%s14852_s0 + $0x300] ss:$12 sps:$4 sm:$0xff]  }
  0x6a   :  { %1269 = vmatmul.mubr.bf16.gmra.mrb[20].mxu0 %v10527_v49  ;;  %v10618_v49 = vld [vmem:[%s14852_s0 + $0x31c] ss:$12 sps:$4 sm:$0xff]  }
  0x6b   :  { %1278 = vmatprep.mubr.bf16.mxu0 %v10528_v50  ;;  %v10623_v50 = vld [vmem:[%s14852_s0 + $0x318] ss:$12 sps:$4 sm:$0xff]  }
  0x72   :  { %1279 = vmatmul.mubr.bf16.gmra.mrb[24].mxu0 %v10530_v51  ;;  %v10624_v51 = vld [vmem:[%s14852_s0 + $0x334] ss:$12 sps:$4 sm:$0xff]  }
  0x73   :  { %1288 = vmatprep.mubr.bf16.mxu0 %v10531_v52  ;;  %v10626_v52 = vld [vmem:[%s14852_s0 + $0x330] ss:$12 sps:$4 sm:$0xff]  }
  0x7a   :  { %1289 = vmatmul.mubr.bf16.gmra.mrb[28].mxu0 %v10533_v53  ;;  %v10627_v53 = vld [vmem:[%s14852_s0 + $0x34c] ss:$12 sps:$4 sm:$0xff]  }
  0x7b   :  { %1298 = vmatprep.mubr.bf16.mxu0 %v10534_v54  ;;  %v10629_v54 = vld [vmem:[%s14852_s0 + $0x348] ss:$12 sps:$4 sm:$0xff]  }
  0x82   :  { %1299 = vmatmul.mubr.bf16.gmra.mrb[32].mxu0 %v10536_v55  ;;  %v10630_v55 = vld [vmem:[%s14852_s0 + $0x364] ss:$12 sps:$4 sm:$0xff]  }
  0x83   :  { %1308 = vmatprep.mubr.bf16.mxu0 %v10540_v56  ;;  %v10632_v56 = vld [vmem:[%s14852_s0 + $0x360] ss:$12 sps:$4 sm:$0xff]  }
  0x8a   :  { %1309 = vmatmul.mubr.bf16.gmra.mrb[36].mxu0 %v10542_v59  ;;  %v10636_v59 = vld [vmem:[%s14852_s0 + $0x394] ss:$12 sps:$4 sm:$0xff]  }
  0x8b   :  { %1318 = vmatprep.mubr.bf16.mxu0 %v10543_v60  ;;  %v10638_v60 = vld [vmem:[%s14852_s0 + $0x390] ss:$12 sps:$4 sm:$0xff]  }
  0x92   :  { %1319 = vmatmul.mubr.bf16.gmra.mrb[40].mxu0 %v10545_v61  ;;  %v10639_v61 = vld [vmem:[%s14852_s0 + $0x3ac] ss:$12 sps:$4 sm:$0xff]  }
  0x93   :  { %1328 = vmatprep.mubr.bf16.mxu0 %v10546_v62  ;;  %v190_v62 = vld [vmem:[%s14852_s0 + $0x3c0] sm:$0xff] }
  0x9a   :  { %1329 = vmatmul.mubr.bf16.gmra.mrb[44].mxu0 %v10548_v63  ;;  %v10641_v63 = vld [vmem:[%s14852_s0 + $0x3a8] ss:$12 sps:$4 sm:$0xff]  }
  0x9b   :  { %1338 = vmatprep.mubr.bf16.mxu0 %v10549_v0  ;;  %v8799_v0 = vcombine.high %v190_v62, %v190_v62 }
  0xa2   :  { %1339 = vmatmul.mubr.bf16.gmra.mrb[48].mxu0 %v10551_v1  ;;  %v8798_v1 = vcombine.low %v190_v62, %v190_v62 }
  0xa3   :  { %1348 = vmatprep.mubr.bf16.mxu0 %v10552_v2  ;;  %v14868_v2 = vmov 0  }
  0xaa   :  { %1349 = vmatmul.mubr.bf16.gmra.mrb[52].mxu0 %v10554_v3  ;;  %v10644_v3 = vld [vmem:[%s14852_s0 + $0x8] ss:$12 sps:$4 sm:$0xff]  }
  0xab   :  { %1358 = vmatprep.mubr.bf16.mxu0 %v10555_v4  ;;  %v10645_v4 = vld [vmem:[%s14852_s0 + $0x20] ss:$12 sps:$4 sm:$0xff]  }
  0xb2   :  { %1359 = vmatmul.mubr.bf16.gmra.mrb[56].mxu0 %v10557_v5  ;;  %v10646_v5 = vld [vmem:[%s14852_s0 + $0x38] ss:$12 sps:$4 sm:$0xff]  }
  0xb3   :  { %1368 = vmatprep.mubr.bf16.mxu0 %v10558_v6  ;;  %v10647_v6 = vld [vmem:[%s14852_s0 + $0x50] ss:$12 sps:$4 sm:$0xff]  }
  0xba   :  { %1369 = vmatmul.mubr.bf16.gmra.mrb[60].mxu0 %v10560_v7  ;;  %v10648_v7 = vld [vmem:[%s14852_s0 + $0x68] ss:$12 sps:$4 sm:$0xff]  }
  0xbb   :  { %1378 = vmatprep.mubr.bf16.mxu0 %v10561_v8  ;;  %v10649_v8 = vld [vmem:[%s14852_s0 + $0x80] ss:$12 sps:$4 sm:$0xff]  }
  0xc2   :  { %1379 = vmatmul.mubr.bf16.gmra.mrb[64].mxu0 %v10563_v9  ;;  %v10650_v9 = vld [vmem:[%s14852_s0 + $0x98] ss:$12 sps:$4 sm:$0xff]  }
  0xc3   :  { %1388 = vmatprep.mubr.bf16.mxu0 %v10567_v10  ;;  %v10651_v10 = vld [vmem:[%s14852_s0 + $0xb0] ss:$12 sps:$4 sm:$0xff]  }
  0xca   :  { %1389 = vmatmul.mubr.bf16.gmra.mrb[68].mxu0 %v10569_v15  ;;  %v10656_v15 = vld [vmem:[%s14852_s0 + $0x128] ss:$12 sps:$4 sm:$0xff]  }
  0xcb   :  { %1398 = vmatprep.mubr.bf16.mxu0 %v10570_v17  ;;  %v10674_v17 = vld [vmem:[%s14853_s2 + $0xd8] ss:$12 sps:$4 sm:$0xff]  }
  0xcc   :  { %2484 = vmatpush1.bf16.msra.mxu1 %v10674_v17 }
  0xcd   :  { %2485 = vmatprep.subr.bf16.mxu1 %v10676_v18 }
  0xd0   :  { %2486 = vmatpush1.bf16.msra.mxu1 %v10678_v19 }
  0xd2   :  { %1399 = vmatmul.mubr.bf16.gmra.mrb[72].mxu0 %v10572_v20  ;;  %v10657_v20 = vld [vmem:[%s14852_s0 + $0x140] ss:$12 sps:$4 sm:$0xff]  }
  0xd3   :  { %1408 = vmatprep.mubr.bf16.mxu0 %v10573_v21  ;;  %v10679_v21 = vld [vmem:[%s14853_s2 + $0x10c] ss:$12 sps:$4 sm:$0xff]  }
  0xd4   :  { %2487 = vmatprep.subr.bf16.mxu1 %v10679_v21 }
  0xda   :  { %1409 = vmatmul.mubr.bf16.gmra.mrb[76].mxu0 %v10575_v22  ;;  %v10681_v22 = vld [vmem:[%s14853_s2 + $0x108] ss:$12 sps:$4 sm:$0xff]  }
  0xdb   :  { %1418 = vmatprep.mubr.bf16.mxu0 %v10576_v23  ;;  %2488 = vmatpush1.bf16.msra.mxu1 %v10681_v22  ;;  %v10683_v23 = vld [vmem:[%s14853_s2 + $0x124] ss:$12 sps:$4 sm:$0xff]  }
  0xdc   :  { %2489 = vmatprep.subr.bf16.mxu1 %v10683_v23 }
  0xe2   :  { %1419 = vmatmul.mubr.bf16.gmra.mrb[80].mxu0 %v10578_v24  ;;  %v10685_v24 = vld [vmem:[%s14853_s2 + $0x120] ss:$12 sps:$4 sm:$0xff]  }
  0xe3   :  { %1428 = vmatprep.mubr.bf16.mxu0 %v10579_v25  ;;  %v10658_v25 = vld [vmem:[%s14852_s0 + $0x158] ss:$12 sps:$4 sm:$0xff]   ;;  %2490 = vmatpush1.bf16.msra.mxu1 %v10685_v24 }
  0xea   :  { %1429 = vmatmul.mubr.bf16.gmra.mrb[84].mxu0 %v10581_v26  ;;  %v10686_v26 = vld [vmem:[%s14853_s2 + $0x13c] ss:$12 sps:$4 sm:$0xff]  }
  0xeb   :  { %1438 = vmatprep.mubr.bf16.mxu0 %v10582_v27  ;;  %v10688_v27 = vld [vmem:[%s14853_s2 + $0x138] ss:$12 sps:$4 sm:$0xff]   ;;  %2491 = vmatprep.subr.bf16.mxu1 %v10686_v26 }
  0xec   :  { %2492 = vmatpush1.bf16.msra.mxu1 %v10688_v27 }
  0xf2   :  { %1439 = vmatmul.mubr.bf16.gmra.mrb[88].mxu0 %v10584_v28  ;;  %v10690_v28 = vld [vmem:[%s14853_s2 + $0x154] ss:$12 sps:$4 sm:$0xff]  }
  0xf3   :  { %1448 = vmatprep.mubr.bf16.mxu0 %v10585_v29  ;;  %v10692_v29 = vld [vmem:[%s14853_s2 + $0x150] ss:$12 sps:$4 sm:$0xff]   ;;  %2493 = vmatprep.subr.bf16.mxu1 %v10690_v28 }
  0xf4   :  { %2494 = vmatpush1.bf16.msra.mxu1 %v10692_v29 }
  0xfa   :  { %1449 = vmatmul.mubr.bf16.gmra.mrb[92].mxu0 %v10587_v30  ;;  %v10659_v30 = vld [vmem:[%s14852_s0 + $0x170] ss:$12 sps:$4 sm:$0xff]  }
  0xfb   :  { %1458 = vmatprep.mubr.bf16.mxu0 %v10588_v31  ;;  %v10693_v31 = vld [vmem:[%s14853_s2 + $0x16c] ss:$12 sps:$4 sm:$0xff]  }
  0xfc   :  { %2495 = vmatprep.subr.bf16.mxu1 %v10693_v31  ;;  %v10696_v31 = vld [vmem:[%s14852_s0 + $0x2f0] ss:$12 sps:$4 sm:$0xff]  }
 0x102   :  { %1459 = vmatmul.mubr.bf16.gmra.mrb[96].mxu0 %v10590_v32  ;;  %v10695_v32 = vld [vmem:[%s14853_s2 + $0x168] ss:$12 sps:$4 sm:$0xff]  }
 0x103   :  { %1468 = vmatprep.mubr.bf16.mxu0 %v10594_v33  ;;  %2496 = vmatpush1.bf16.msra.mxu1 %v10695_v32  ;;  %v10697_v33 = vld [vmem:[%s14853_s2 + $0x184] ss:$12 sps:$4 sm:$0xff]  }
 0x104   :  { %2497 = vmatprep.subr.bf16.mxu1 %v10697_v33 }
 0x10a   :  { %1469 = vmatmul.mubr.bf16.gmra.mrb[100].mxu0 %v10596_v34  ;;  %v10699_v34 = vld [vmem:[%s14853_s2 + $0x180] ss:$12 sps:$4 sm:$0xff]  }
 0x10b   :  { %1478 = vmatprep.mubr.bf16.mxu0 %v10597_v35  ;;  %v10660_v35 = vld [vmem:[%s14852_s0 + $0x188] ss:$12 sps:$4 sm:$0xff]   ;;  %2498 = vmatpush1.bf16.msra.mxu1 %v10699_v34 }
 0x112   :  { %1479 = vmatmul.mubr.bf16.gmra.mrb[104].mxu0 %v10599_v36  ;;  %v10700_v36 = vld [vmem:[%s14853_s2 + $0x19c] ss:$12 sps:$4 sm:$0xff]  }
 0x113   :  { %1488 = vmatprep.mubr.bf16.mxu0 %v10600_v37  ;;  %v10702_v37 = vld [vmem:[%s14853_s2 + $0x198] ss:$12 sps:$4 sm:$0xff]   ;;  %2499 = vmatprep.subr.bf16.mxu1 %v10700_v36 }
 0x114   :  { %2500 = vmatpush1.bf16.msra.mxu1 %v10702_v37 }
 0x115   :  { %2564 = vmatprep.subr.bf16.mxu1 %v14868_v2 }
 0x11a   :  { %1489 = vmatmul.mubr.bf16.gmra.mrb[108].mxu0 %v10602_v38  ;;  %v10661_v38 = vld [vmem:[%s14852_s0 + $0x1a0] ss:$12 sps:$4 sm:$0xff]  }
 0x11b   :  { %1498 = vmatprep.mubr.bf16.mxu0 %v10603_v39  ;;  %v10662_v39 = vld [vmem:[%s14852_s0 + $0x1b8] ss:$12 sps:$4 sm:$0xff]  }
 0x122   :  { %1499 = vmatmul.mubr.bf16.gmra.mrb[112].mxu0 %v10605_v40  ;;  %v10663_v40 = vld [vmem:[%s14852_s0 + $0x1d0] ss:$12 sps:$4 sm:$0xff]  }
 0x123   :  { %1508 = vmatprep.mubr.bf16.mxu0 %v10606_v41  ;;  %v10664_v41 = vld [vmem:[%s14852_s0 + $0x1e8] ss:$12 sps:$4 sm:$0xff]  }
 0x12a   :  { %1509 = vmatmul.mubr.bf16.gmra.mrb[116].mxu0 %v10608_v42  ;;  %v10665_v42 = vld [vmem:[%s14852_s0 + $0x200] ss:$12 sps:$4 sm:$0xff]  }
 0x12b   :  { %1518 = vmatprep.mubr.bf16.mxu0 %v10609_v43  ;;  %v10666_v43 = vld [vmem:[%s14852_s0 + $0x218] ss:$12 sps:$4 sm:$0xff]  }
 0x132   :  { %1519 = vmatmul.mubr.bf16.gmra.mrb[120].mxu0 %v10611_v44  ;;  %v10667_v44 = vld [vmem:[%s14852_s0 + $0x230] ss:$12 sps:$4 sm:$0xff]  }
 0x133   :  { %1528 = vmatprep.mubr.bf16.mxu0 %v10612_v45  ;;  %v10668_v45 = vld [vmem:[%s14852_s0 + $0x248] ss:$12 sps:$4 sm:$0xff]  }
 0x13a   :  { %1529 = vmatmul.mubr.bf16.gmra.mrb[124].mxu0 %v10614_v46  ;;  %v10669_v46 = vld [vmem:[%s14852_s0 + $0x260] ss:$12 sps:$4 sm:$0xff]  }
 0x13b   :  { %1538 = vmatprep.mubr.bf16.mxu0 %v10615_v47  ;;  %v10670_v47 = vld [vmem:[%s14852_s0 + $0x278] ss:$12 sps:$4 sm:$0xff]  }
 0x142   :  { %1539 = vmatmul.mubr.bf16.gmra.mrb[128].mxu0 %v10617_v48  ;;  %v10671_v48 = vld [vmem:[%s14852_s0 + $0x290] ss:$12 sps:$4 sm:$0xff]  }
 0x143   :  { %1548 = vmatprep.mubr.bf16.mxu0 %v10618_v49 }
 0x14a   :  { %1549 = vmatmul.mubr.bf16.gmra.mrb[132].mxu0 %v10623_v50 }
 0x14b   :  { %1558 = vmatprep.mubr.bf16.mxu0 %v10624_v51 }
 0x152   :  { %1559 = vmatmul.mubr.bf16.gmra.mrb[136].mxu0 %v10626_v52 }
 0x153   :  { %1568 = vmatprep.mubr.bf16.mxu0 %v10627_v53 }
 0x15a   :  { %1569 = vmatmul.mubr.bf16.gmra.mrb[140].mxu0 %v10629_v54 }
 0x15b   :  { %1578 = vmatprep.mubr.bf16.mxu0 %v10630_v55 }
 0x162   :  { %1579 = vmatmul.mubr.bf16.gmra.mrb[144].mxu0 %v10632_v56 }
 0x163   :  { %1588 = vmatprep.mubr.bf16.mxu0 %v10633_v57 }
 0x16a   :  { %1589 = vmatmul.mubr.bf16.gmra.mrb[148].mxu0 %v10635_v58 }
 0x16b   :  { %1598 = vmatprep.mubr.bf16.mxu0 %v10636_v59  ;;  %v10675_v59 = vld [vmem:[%s14852_s0 + $0x2a8] ss:$12 sps:$4 sm:$0xff]  }
 0x172   :  { %1599 = vmatmul.mubr.bf16.gmra.mrb[152].mxu0 %v10638_v60 }
 0x173   :  { %1608 = vmatprep.mubr.bf16.mxu0 %v10639_v61 }
 0x17a   :  { %1609 = vmatmul.mubr.bf16.gmra.mrb[156].mxu0 %v10641_v63 }
 0x17b   :  { %1618 = vmatprep.mubr.bf16.mxu0 %v8799_v0 }
 0x182   :  { %1619 = vmatmul.mubr.bf16.gmra.mrb[160].mxu0 %v8798_v1 }
 0x183   :  { %1659 = vmatprep.mubr.bf16.mxu0 %v14868_v2 }
 0x18a   :  { %8843 = vmatmul.mubr.msk.bf16.vlgmr.msra.gmra.mrb[0].mxu0 %vm1052_vm2, %v10644_v3 }
 0x18b   :  { %1669 = vmatprep.mubr.bf16.mxu0 %v14868_v2 }
 0x192   :  { %8844 = vmatmul.mubr.msk.bf16.gmra.mrb[4].mxu0 %vm1052_vm2, %v10645_v4 }
 0x193   :  { %1679 = vmatprep.mubr.bf16.mxu0 %v14868_v2 }
 0x19a   :  { %8845 = vmatmul.mubr.msk.bf16.gmra.mrb[8].mxu0 %vm1052_vm2, %v10646_v5 }
 0x19b   :  { %1689 = vmatprep.mubr.bf16.mxu0 %v14868_v2 }
 0x1a2   :  { %8846 = vmatmul.mubr.msk.bf16.gmra.mrb[12].mxu0 %vm1052_vm2, %v10647_v6 }
 0x1a3   :  { %1699 = vmatprep.mubr.bf16.mxu0 %v14868_v2 }
 0x1aa   :  { %8847 = vmatmul.mubr.msk.bf16.gmra.mrb[16].mxu0 %vm1052_vm2, %v10648_v7 }
 0x1ab   :  { %1709 = vmatprep.mubr.bf16.mxu0 %v14868_v2 }
 0x1b2   :  { %8848 = vmatmul.mubr.msk.bf16.gmra.mrb[20].mxu0 %vm1052_vm2, %v10649_v8 }
 0x1b3   :  { %1719 = vmatprep.mubr.bf16.mxu0 %v14868_v2 }
 0x1ba   :  { %8849 = vmatmul.mubr.msk.bf16.gmra.mrb[24].mxu0 %vm1052_vm2, %v10650_v9  ;;  %v10682_v9 = vld [vmem:[%s14852_s0 + $0x2c0] ss:$12 sps:$4 sm:$0xff]  }
 0x1bb   :  { %1729 = vmatprep.mubr.bf16.mxu0 %v14868_v2 }
 0x1c2   :  { %8850 = vmatmul.mubr.msk.bf16.gmra.mrb[28].mxu0 %vm1052_vm2, %v10651_v10 }
 0x1c3   :  { %1739 = vmatprep.mubr.bf16.mxu0 %v14868_v2 }
 0x1ca   :  { %8851 = vmatmul.mubr.msk.bf16.gmra.mrb[32].mxu0 %vm1052_vm2, %v10652_v11 }
 0x1cb   :  { %1749 = vmatprep.mubr.bf16.mxu0 %v14868_v2 }
 0x1d2   :  { %8852 = vmatmul.mubr.msk.bf16.gmra.mrb[36].mxu0 %vm1052_vm2, %v10653_v12 }
 0x1d3   :  { %1759 = vmatprep.mubr.bf16.mxu0 %v14868_v2 }
 0x1da   :  { %8853 = vmatmul.mubr.msk.bf16.gmra.mrb[40].mxu0 %vm1052_vm2, %v10654_v13 }
 0x1db   :  { %1769 = vmatprep.mubr.bf16.mxu0 %v14868_v2 }
 0x1e2   :  { %8854 = vmatmul.mubr.msk.bf16.gmra.mrb[44].mxu0 %vm1052_vm2, %v10655_v14 }
 0x1e3   :  { %1779 = vmatprep.mubr.bf16.mxu0 %v14868_v2 }
 0x1ea   :  { %8855 = vmatmul.mubr.msk.bf16.gmra.mrb[48].mxu0 %vm1052_vm2, %v10656_v15 }
 0x1eb   :  { %1789 = vmatprep.mubr.bf16.mxu0 %v14868_v2 }
 0x1f2   :  { %8856 = vmatmul.mubr.msk.bf16.gmra.mrb[52].mxu0 %vm1052_vm2, %v10657_v20  ;;  %v10689_v20 = vld [vmem:[%s14852_s0 + $0x2d8] ss:$12 sps:$4 sm:$0xff]  }
 0x1f3   :  { %1799 = vmatprep.mubr.bf16.mxu0 %v14868_v2 }
 0x1fa   :  { %8857 = vmatmul.mubr.msk.bf16.gmra.mrb[56].mxu0 %vm1052_vm2, %v10658_v25 }
 0x1fb   :  { %1809 = vmatprep.mubr.bf16.mxu0 %v14868_v2 }
 0x202   :  { %8858 = vmatmul.mubr.msk.bf16.gmra.mrb[60].mxu0 %vm1052_vm2, %v10659_v30 }
 0x203   :  { %1819 = vmatprep.mubr.bf16.mxu0 %v14868_v2 }
 0x20a   :  { %8859 = vmatmul.mubr.msk.bf16.gmra.mrb[64].mxu0 %vm1052_vm2, %v10660_v35 }
 0x20b   :  { %1829 = vmatprep.mubr.bf16.mxu0 %v14868_v2 }
 0x212   :  { %8860 = vmatmul.mubr.msk.bf16.gmra.mrb[68].mxu0 %vm1052_vm2, %v10661_v38  ;;  %v10703_v38 = vld [vmem:[%s14852_s0 + $0x308] ss:$12 sps:$4 sm:$0xff]  }
 0x213   :  { %1839 = vmatprep.mubr.bf16.mxu0 %v14868_v2 }
 0x21a   :  { %8861 = vmatmul.mubr.msk.bf16.gmra.mrb[72].mxu0 %vm1052_vm2, %v10662_v39 }
 0x21b   :  { %1849 = vmatprep.mubr.bf16.mxu0 %v14868_v2 }
 0x222   :  { %8862 = vmatmul.mubr.msk.bf16.gmra.mrb[76].mxu0 %vm1052_vm2, %v10663_v40 }
 0x223   :  { %1859 = vmatprep.mubr.bf16.mxu0 %v14868_v2 }
 0x22a   :  { %8863 = vmatmul.mubr.msk.bf16.gmra.mrb[80].mxu0 %vm1052_vm2, %v10664_v41 }
 0x22b   :  { %1869 = vmatprep.mubr.bf16.mxu0 %v14868_v2 }
 0x232   :  { %8864 = vmatmul.mubr.msk.bf16.gmra.mrb[84].mxu0 %vm1052_vm2, %v10665_v42 }
 0x233   :  { %1879 = vmatprep.mubr.bf16.mxu0 %v14868_v2 }
 0x23a   :  { %8865 = vmatmul.mubr.msk.bf16.gmra.mrb[88].mxu0 %vm1052_vm2, %v10666_v43 }
 0x23b   :  { %1889 = vmatprep.mubr.bf16.mxu0 %v14868_v2 }
 0x242   :  { %8866 = vmatmul.mubr.msk.bf16.gmra.mrb[92].mxu0 %vm1052_vm2, %v10667_v44 }
 0x243   :  { %1899 = vmatprep.mubr.bf16.mxu0 %v14868_v2 }
 0x24a   :  { %8867 = vmatmul.mubr.msk.bf16.gmra.mrb[96].mxu0 %vm1052_vm2, %v10668_v45  ;;  %v10704_v45 = vld [vmem:[%s14853_s2 + $0xe0] ss:$12 sps:$4 sm:$0xff]  }
 0x24b   :  { %1909 = vmatprep.mubr.bf16.mxu0 %v14868_v2 }
 0x252   :  { %8868 = vmatmul.mubr.msk.bf16.gmra.mrb[100].mxu0 %vm1052_vm2, %v10669_v46 }
 0x253   :  { %1919 = vmatprep.mubr.bf16.mxu0 %v14868_v2 }
 0x25a   :  { %8869 = vmatmul.mubr.msk.bf16.gmra.mrb[104].mxu0 %vm1052_vm2, %v10670_v47  ;;  %v10706_v47 = vld [vmem:[%s14853_s2 + $0xf8] ss:$12 sps:$4 sm:$0xff]  }
 0x25b   :  { %1929 = vmatprep.mubr.bf16.mxu0 %v14868_v2 }
 0x25d   :  { %v1661_v49 = vpop.f32.mrb[0].mxu0 }
 0x25e   :  { %v1663_v50 = vpop.f32.mrb[1].mxu0  ;;  %v2068_v51 = vmax.f32 %v1661_v49, 0.0 }
 0x25f   :  { %v1665_v52 = vpop.f32.mrb[2].mxu0  ;;  %v2069_v55 = vmax.f32 %v1663_v50, 0.0 }
 0x260   :  { %v2070_v53 = vmax.f32 %v1665_v52, 0.0  ;;  %v1667_v54 = vpop.f32.mrb[3].mxu0 }
 0x261   :  { %v2071_v56 = vmax.f32 %v1667_v54, 0.0 }
 0x262   :  { %v12121_v57 = vpack.c.bf16 %v2070_v53, %v2068_v51  ;;  %8870 = vmatmul.mubr.msk.bf16.gmra.mrb[108].mxu0 %vm1052_vm2, %v10671_v48  ;;  %v10705_v51 = vld [vmem:[%s14852_s0 + $0x320] ss:$12 sps:$4 sm:$0xff]  }
 0x263   :  { %v12124_v58 = vpack.c.bf16 %v2071_v56, %v2069_v55  ;;  %1939 = vmatprep.mubr.bf16.mxu0 %v14868_v2 }
 0x265   :  { %v1671_v60 = vpop.f32.mrb[4].mxu0 }
 0x266   :  { %v1673_v61 = vpop.f32.mrb[5].mxu0  ;;  %v2072_v63 = vmax.f32 %v1671_v60, 0.0  ;;  %v10707_v60 = vld [vmem:[%s14853_s2 + $0x110] ss:$12 sps:$4 sm:$0xff]  }
 0x267   :  { %v1675_v62 = vpop.f32.mrb[6].mxu0  ;;  %v2073_v3 = vmax.f32 %v1673_v61, 0.0 }
 0x268   :  { %v2074_v0 = vmax.f32 %v1675_v62, 0.0  ;;  %v1677_v1 = vpop.f32.mrb[7].mxu0  ;;  %v10709_v62 = vld [vmem:[%s14853_s2 + $0x128] ss:$12 sps:$4 sm:$0xff]  }
 0x269   :  { %v2075_v4 = vmax.f32 %v1677_v1, 0.0 }
 0x26a   :  { %v12130_v5 = vpack.c.bf16 %v2074_v0, %v2072_v63  ;;  %8871 = vmatmul.mubr.msk.bf16.gmra.mrb[112].mxu0 %vm1052_vm2, %v10675_v59 }
 0x26b   :  { %v12133_v6 = vpack.c.bf16 %v2075_v4, %v2073_v3  ;;  %1949 = vmatprep.mubr.bf16.mxu0 %v14868_v2  ;;  %v10708_v3 = vld [vmem:[%s14852_s0 + $0x338] ss:$12 sps:$4 sm:$0xff]  }
 0x26d   :  { %v1681_v7 = vpop.f32.mrb[8].mxu0 }
 0x26e   :  { %v1683_v8 = vpop.f32.mrb[9].mxu0  ;;  %v2076_v11 = vmax.f32 %v1681_v7, 0.0 }
 0x26f   :  { %v1685_v10 = vpop.f32.mrb[10].mxu0  ;;  %v2077_v14 = vmax.f32 %v1683_v8, 0.0 }
 0x270   :  { %v2078_v12 = vmax.f32 %v1685_v10, 0.0  ;;  %v1687_v13 = vpop.f32.mrb[11].mxu0 }
 0x271   :  { %v2079_v15 = vmax.f32 %v1687_v13, 0.0 }
 0x272   :  { %v12139_v16 = vpack.c.bf16 %v2078_v12, %v2076_v11  ;;  %8872 = vmatmul.mubr.msk.bf16.gmra.mrb[116].mxu0 %vm1052_vm2, %v10682_v9  ;;  %v10710_v12 = vld [vmem:[%s14853_s2 + $0x140] ss:$12 sps:$4 sm:$0xff]  }
 0x273   :  { %v12142_v17 = vpack.c.bf16 %v2079_v15, %v2077_v14  ;;  %1959 = vmatprep.mubr.bf16.mxu0 %v14868_v2  ;;  %v10712_v14 = vld [vmem:[%s14853_s2 + $0x158] ss:$12 sps:$4 sm:$0xff]  }
 0x275   :  { %v1691_v18 = vpop.f32.mrb[12].mxu0 }
 0x276   :  { %v1693_v19 = vpop.f32.mrb[13].mxu0  ;;  %v2080_v22 = vmax.f32 %v1691_v18, 0.0 }
 0x277   :  { %v1695_v21 = vpop.f32.mrb[14].mxu0  ;;  %v2081_v25 = vmax.f32 %v1693_v19, 0.0 }
 0x278   :  { %v2082_v23 = vmax.f32 %v1695_v21, 0.0  ;;  %v1697_v24 = vpop.f32.mrb[15].mxu0 }
 0x279   :  { %v2083_v26 = vmax.f32 %v1697_v24, 0.0 }
 0x27a   :  { %v12148_v27 = vpack.c.bf16 %v2082_v23, %v2080_v22  ;;  %8873 = vmatmul.mubr.msk.bf16.gmra.mrb[120].mxu0 %vm1052_vm2, %v10689_v20  ;;  %v10711_v20 = vld [vmem:[%s14852_s0 + $0x350] ss:$12 sps:$4 sm:$0xff]  }
 0x27b   :  { %v12151_v28 = vpack.c.bf16 %v2083_v26, %v2081_v25  ;;  %1969 = vmatprep.mubr.bf16.mxu0 %v14868_v2 }
 0x27d   :  { %v12154_v29 = vpop.f32.mrb[16].mxu0 }
 0x27e   :  { %v12156_v30 = vpop.f32.mrb[17].mxu0 }
 0x27f   :  { %v1705_v32 = vpop.f32.mrb[18].mxu0 }
 0x280   :  { %v1707_v33 = vpop.f32.mrb[19].mxu0  ;;  %v2086_v35 = vmax.f32 %v1705_v32, 0.0  ;;  %v10713_v32 = vld [vmem:[%s14853_s2 + $0x170] ss:$12 sps:$4 sm:$0xff]  }
 0x281   :  { %v2087_v39 = vmax.f32 %v1707_v33, 0.0 }
 0x282   :  { %8874 = vmatmul.mubr.msk.bf16.gmra.mrb[124].mxu0 %vm1052_vm2, %v10696_v31 }
 0x283   :  { %1979 = vmatprep.mubr.bf16.mxu0 %v14868_v2 }
 0x285   :  { %v1711_v34 = vpop.f32.mrb[20].mxu0 }
 0x286   :  { %v2088_v36 = vmax.f32 %v1711_v34, 0.0  ;;  %v1713_v37 = vpop.f32.mrb[21].mxu0 }
 0x287   :  { %v2089_v40 = vmax.f32 %v1713_v37, 0.0  ;;  %v1715_v41 = vpop.f32.mrb[22].mxu0 }
 0x288   :  { %v12166_v42 = vpack.c.bf16 %v2088_v36, %v2086_v35  ;;  %v1717_v43 = vpop.f32.mrb[23].mxu0  ;;  %v2090_v48 = vmax.f32 %v1715_v41, 0.0  ;;  %v10715_v35 = vld [vmem:[%s14853_s2 + $0x188] ss:$12 sps:$4 sm:$0xff]  }
 0x289   :  { %v12168_v44 = vpack.c.bf16 %v2089_v40, %v2087_v39  ;;  %v2091_v52 = vmax.f32 %v1717_v43, 0.0 }
 0x28a   :  { %8875 = vmatmul.mubr.msk.bf16.gmra.mrb[128].mxu0 %vm1052_vm2, %v10703_v38  ;;  %v10714_v38 = vld [vmem:[%s14852_s0 + $0x368] ss:$12 sps:$4 sm:$0xff]  }
 0x28b   :  { %8947 = vmatprep.mubr.msk.bf16.mxu1 %vm2467_vm3, %v12168_v44  ;;  %1989 = vmatprep.mubr.bf16.mxu0 %v14868_v2 }
 0x28c   :  { %2516 = vmatmul.mubr.bf16.vlgmr.msra.gmra.mrb[0].mxu1 %v12166_v42 }
 0x28d   :  { %v1721_v46 = vpop.f32.mrb[24].mxu0  ;;  %2565 = vmatpush1.bf16.msra.mxu1 %v10704_v45 }
 0x28e   :  { %v2092_v49 = vmax.f32 %v1721_v46, 0.0  ;;  %v1723_v50 = vpop.f32.mrb[25].mxu0  ;;  %2566 = vmatprep.subr.bf16.mxu1 %v14868_v2 }
 0x28f   :  { %v2093_v53 = vmax.f32 %v1723_v50, 0.0  ;;  %v1725_v54 = vpop.f32.mrb[26].mxu0  ;;  %v10720_v50 = vld [vmem:[%s14853_s2 + $0x4] ss:$12 sps:$4 sm:$0xff]  }
 0x290   :  { %v12185_v55 = vpack.c.bf16 %v2092_v49, %v2090_v48  ;;  %v1727_v56 = vpop.f32.mrb[27].mxu0  ;;  %v2094_v63 = vmax.f32 %v1725_v54, 0.0  ;;  %v10717_v54 = vld [vmem:[%s14852_s0 + $0x380] ss:$12 sps:$4 sm:$0xff]  }
 0x291   :  { %v12187_v59 = vpack.c.bf16 %v2093_v53, %v2091_v52  ;;  %2567 = vmatpush1.bf16.msra.mxu1 %v10706_v47  ;;  %v2095_v4 = vmax.f32 %v1727_v56, 0.0  ;;  %v10716_v47 = vld [vmem:[%s14853_s2 + $0x1a0] ss:$12 sps:$4 sm:$0xff]  }
 0x292   :  { %8876 = vmatmul.mubr.msk.bf16.gmra.mrb[132].mxu0 %vm1052_vm2, %v10705_v51  ;;  %2568 = vmatprep.subr.bf16.mxu1 %v14868_v2 }
 0x293   :  { %8948 = vmatprep.mubr.msk.bf16.mxu1 %vm2467_vm3, %v12187_v59  ;;  %1999 = vmatprep.mubr.bf16.mxu0 %v14868_v2 }
 0x294   :  { %2526 = vmatmul.mubr.bf16.gmra.mrb[4].mxu1 %v12185_v55 }
 0x295   :  { %v1731_v61 = vpop.f32.mrb[28].mxu0  ;;  %2569 = vmatpush1.bf16.msra.mxu1 %v10707_v60 }
 0x296   :  { %v2096_v0 = vmax.f32 %v1731_v61, 0.0  ;;  %v1733_v1 = vpop.f32.mrb[29].mxu0  ;;  %2570 = vmatprep.subr.bf16.mxu1 %v14868_v2 }
 0x297   :  { %v2097_v7 = vmax.f32 %v1733_v1, 0.0  ;;  %v1735_v8 = vpop.f32.mrb[30].mxu0  ;;  %v10718_v1 = vld [vmem:[%s14853_s2] ss:$12 sps:$4 sm:$0xff]  }
 0x298   :  { %v12205_v9 = vpack.c.bf16 %v2096_v0, %v2094_v63  ;;  %v1737_v10 = vpop.f32.mrb[31].mxu0  ;;  %v2098_v15 = vmax.f32 %v1735_v8, 0.0  ;;  %v10721_v8 = vld [vmem:[%s14853_s2 + $0x18] ss:$12 sps:$4 sm:$0xff]  }
 0x299   :  { %v12207_v11 = vpack.c.bf16 %v2097_v7, %v2095_v4  ;;  %2571 = vmatpush1.bf16.msra.mxu1 %v10709_v62  ;;  %v2099_v21 = vmax.f32 %v1737_v10, 0.0 }
 0x29a   :  { %8877 = vmatmul.mubr.msk.bf16.gmra.mrb[136].mxu0 %vm1052_vm2, %v10708_v3  ;;  %2572 = vmatprep.subr.bf16.mxu1 %v14868_v2 }
 0x29b   :  { %8949 = vmatprep.mubr.msk.bf16.mxu1 %vm2467_vm3, %v12207_v11  ;;  %2009 = vmatprep.mubr.bf16.mxu0 %v14868_v2 }
 0x29c   :  { %2536 = vmatmul.mubr.bf16.gmra.mrb[8].mxu1 %v12205_v9 }
 0x29d   :  { %v1741_v13 = vpop.f32.mrb[32].mxu0  ;;  %2573 = vmatpush1.bf16.msra.mxu1 %v10710_v12  ;;  %v10724_v12 = vld [vmem:[%s14852_s0 + $0x398] ss:$12 sps:$4 sm:$0xff]  }
 0x29e   :  { %v2100_v18 = vmax.f32 %v1741_v13, 0.0  ;;  %v1743_v19 = vpop.f32.mrb[33].mxu0  ;;  %2574 = vmatprep.subr.bf16.mxu1 %v14868_v2  ;;  %v10727_v13 = vld [vmem:[%s14853_s2 + $0x34] ss:$12 sps:$4 sm:$0xff]  }
 0x29f   :  { %v2101_v22 = vmax.f32 %v1743_v19, 0.0  ;;  %v1745_v23 = vpop.f32.mrb[34].mxu0 }
 0x2a0   :  { %v12225_v24 = vpack.c.bf16 %v2100_v18, %v2098_v15  ;;  %v1747_v25 = vpop.f32.mrb[35].mxu0  ;;  %v2102_v36 = vmax.f32 %v1745_v23, 0.0 }
 0x2a1   :  { %v12227_v26 = vpack.c.bf16 %v2101_v22, %v2099_v21  ;;  %v2103_v31 = vmax.f32 %v1747_v25, 0.0  ;;  %2575 = vmatpush1.bf16.msra.mxu1 %v10712_v14  ;;  %v10731_v22 = vld [vmem:[%s14853_s2 + $0x4c] ss:$12 sps:$4 sm:$0xff]  }
 0x2a2   :  { %8878 = vmatmul.mubr.msk.bf16.gmra.mrb[140].mxu0 %vm1052_vm2, %v10711_v20  ;;  %2576 = vmatprep.subr.bf16.mxu1 %v14868_v2  ;;  %v12252_v48 = vpack.c.bf16 %v2102_v36, %v2102_v36  ;;  %v10725_v20 = vld [vmem:[%s14853_s2 + $0x30] ss:$12 sps:$4 sm:$0xff]  }
 0x2a3   :  { %v12234_v33 = vpack.c.bf16 %v2103_v31, %v2103_v31  ;;  %8950 = vmatprep.mubr.msk.bf16.mxu1 %vm2467_vm3, %v12227_v26  ;;  %2019 = vmatprep.mubr.bf16.mxu0 %v14868_v2  ;;  %v10729_v31 = vld [vmem:[%s14853_s2 + $0x48] ss:$12 sps:$4 sm:$0xff]  }
 0x2a4   :  { %2546 = vmatmul.mubr.bf16.gmra.mrb[12].mxu1 %v12225_v24 }
 0x2a5   :  { %v1751_v34 = vpop.f32.mrb[36].mxu0  ;;  %8951 = vmatprep.mubr.msk.bf16.mxu1 %vm2467_vm3, %v12234_v33  ;;  %2577 = vmatpush1.bf16.msra.mxu1 %v10713_v32 }
 0x2a6   :  { %v1753_v37 = vpop.f32.mrb[37].mxu0  ;;  %2578 = vmatprep.subr.bf16.mxu1 %v14868_v2  ;;  %v2104_v40 = vmax.f32 %v1751_v34, 0.0  ;;  %v10728_v34 = vld [vmem:[%s14852_s0 + $0x3b0] ss:$12 sps:$4 sm:$0xff]  }
 0x2a7   :  { %v1755_v39 = vpop.f32.mrb[38].mxu0  ;;  %v2105_v45 = vmax.f32 %v1753_v37, 0.0 }
 0x2a8   :  { %v2106_v41 = vmax.f32 %v1755_v39, 0.0  ;;  %v1757_v43 = vpop.f32.mrb[39].mxu0 }
 0x2a9   :  { %v2107_v46 = vmax.f32 %v1757_v43, 0.0  ;;  %2579 = vmatpush1.bf16.msra.mxu1 %v10715_v35  ;;  %v10734_v35 = vld [vmem:[%s14853_s2 + $0x64] ss:$12 sps:$4 sm:$0xff]   ;;  %v10738_v43 = vld [vmem:[%s14853_s2 + $0x7c] ss:$12 sps:$4 sm:$0xff]  }
 0x2aa   :  { %v12254_v49 = vpack.c.bf16 %v2106_v41, %v2104_v40  ;;  %8879 = vmatmul.mubr.msk.bf16.gmra.mrb[144].mxu0 %vm1052_vm2, %v10714_v38  ;;  %2580 = vmatprep.subr.bf16.mxu1 %v14868_v2  ;;  %v10732_v40 = vld [vmem:[%s14853_s2 + $0x60] ss:$12 sps:$4 sm:$0xff]  }
 0x2ab   :  { %v12261_v51 = vpack.c.bf16 %v2107_v46, %v2105_v45  ;;  %2029 = vmatprep.mubr.bf16.mxu0 %v14868_v2 }
 0x2ac   :  { %2556 = vmatmul.mubr.bf16.gmra.mrb[16].mxu1 %v12252_v48 }
 0x2ad   :  { %v1761_v52 = vpop.f32.mrb[40].mxu0  ;;  %8952 = vmatprep.mubr.msk.bf16.mxu1 %vm2467_vm3, %v12168_v44  ;;  %2581 = vmatpush1.bf16.msra.mxu1 %v10716_v47  ;;  %v10723_v44 = vld [vmem:[%s14853_s2 + $0x1c] ss:$12 sps:$4 sm:$0xff]   ;;  %v10736_v47 = vld [vmem:[%s14853_s2 + $0x78] ss:$12 sps:$4 sm:$0xff]  }
 0x2ae   :  { %v1763_v53 = vpop.f32.mrb[41].mxu0  ;;  %2795 = vmatprep.subr.bf16.mxu1 %v10720_v50  ;;  %v2108_v60 = vmax.f32 %v1761_v52, 0.0  ;;  %v10735_v52 = vld [vmem:[%s14852_s0 + $0x3c8] ss:$0 sps:$4 sm:$0xff]  }
 0x2af   :  { %v1765_v56 = vpop.f32.mrb[42].mxu0  ;;  %v2109_v63 = vmax.f32 %v1763_v53, 0.0 }
 0x2b0   :  { %v2110_v61 = vmax.f32 %v1765_v56, 0.0  ;;  %v1767_v62 = vpop.f32.mrb[43].mxu0  ;;  %v10744_v56 = vld [vmem:[%s14853_s2 + $0xac] ss:$12 sps:$4 sm:$0xff]  }
 0x2b1   :  { %v2111_v0 = vmax.f32 %v1767_v62, 0.0 }
 0x2b2   :  { %v12273_v3 = vpack.c.bf16 %v2110_v61, %v2108_v60  ;;  %8880 = vmatmul.mubr.msk.bf16.gmra.mrb[148].mxu0 %vm1052_vm2, %v10717_v54  ;;  %v10742_v61 = vld [vmem:[%s14853_s2 + $0xa8] ss:$12 sps:$4 sm:$0xff]  }
 0x2b3   :  { %v12279_v4 = vpack.c.bf16 %v2111_v0, %v2109_v63  ;;  %2039 = vmatprep.mubr.bf16.mxu0 %v14868_v2 }
 0x2b4   :  { %2597 = vmatmul.mubr.bf16.vlgmr.msra.gmra.mrb[20].mxu1 %v12166_v42 }
 0x2b5   :  { %v1771_v7 = vpop.f32.mrb[44].mxu0  ;;  %8953 = vmatprep.mubr.msk.bf16.mxu1 %vm2467_vm3, %v12187_v59  ;;  %2796 = vmatpush1.bf16.msra.mxu1 %v10718_v1  ;;  %v10747_v1 = vld [vmem:[%s14853_s2 + $0xc4] ss:$12 sps:$4 sm:$0xff]  }
 0x2b6   :  { %v1773_v10 = vpop.f32.mrb[45].mxu0  ;;  %2797 = vmatprep.subr.bf16.mxu1 %v10723_v44  ;;  %v2112_v14 = vmax.f32 %v1771_v7, 0.0 }
 0x2b7   :  { %v1775_v42 = vpop.f32.mrb[46].mxu0  ;;  %v2113_v59 = vmax.f32 %v1773_v10, 0.0 }
 0x2b8   :  { %v2114_v15 = vmax.f32 %v1775_v42, 0.0  ;;  %v1777_v18 = vpop.f32.mrb[47].mxu0 }
 0x2b9   :  { %v2115_v19 = vmax.f32 %v1777_v18, 0.0  ;;  %2798 = vmatpush1.bf16.msra.mxu1 %v10721_v8 }
 0x2ba   :  { %v12297_v21 = vpack.c.bf16 %v2114_v15, %v2112_v14  ;;  %8881 = vmatmul.mubr.msk.bf16.gmra.mrb[152].mxu0 %vm1052_vm2, %v10724_v12  ;;  %2799 = vmatprep.subr.bf16.mxu1 %v10727_v13  ;;  %v10745_v12 = vld [vmem:[%s14853_s2 + $0xc0] ss:$12 sps:$4 sm:$0xff]  }
 0x2bb   :  { %v12303_v23 = vpack.c.bf16 %v2115_v19, %v2113_v59  ;;  %2049 = vmatprep.mubr.bf16.mxu0 %v14868_v2 }
 0x2bc   :  { %2605 = vmatmul.mubr.bf16.gmra.mrb[24].mxu1 %v12185_v55 }
 0x2bd   :  { %v1781_v25 = vpop.f32.mrb[48].mxu0  ;;  %8954 = vmatprep.mubr.msk.bf16.mxu1 %vm2467_vm3, %v12207_v11  ;;  %2800 = vmatpush1.bf16.msra.mxu1 %v10725_v20 }
 0x2be   :  { %v1783_v32 = vpop.f32.mrb[49].mxu0  ;;  %2801 = vmatprep.subr.bf16.mxu1 %v10731_v22  ;;  %v2116_v36 = vmax.f32 %v1781_v25, 0.0 }
 0x2bf   :  { %v1785_v55 = vpop.f32.mrb[50].mxu0  ;;  %v2117_v11 = vmax.f32 %v1783_v32, 0.0  ;;  %v10749_v32 = vld [vmem:[%s14853_s2 + $0x20] ss:$12 sps:$4 sm:$0xff]  }
 0x2c0   :  { %v2118_v37 = vmax.f32 %v1785_v55, 0.0  ;;  %v1787_v38 = vpop.f32.mrb[51].mxu0 }
 0x2c1   :  { %v2119_v39 = vmax.f32 %v1787_v38, 0.0  ;;  %2802 = vmatpush1.bf16.msra.mxu1 %v10729_v31 }
 0x2c2   :  { %v12321_v41 = vpack.c.bf16 %v2118_v37, %v2116_v36  ;;  %8882 = vmatmul.mubr.msk.bf16.gmra.mrb[156].mxu0 %vm1052_vm2, %v10728_v34  ;;  %2803 = vmatprep.subr.bf16.mxu1 %v10734_v35 }
 0x2c3   :  { %v12327_v45 = vpack.c.bf16 %v2119_v39, %v2117_v11  ;;  %2059 = vmatprep.mubr.bf16.mxu0 %v14868_v2 }
 0x2c4   :  { %2613 = vmatmul.mubr.bf16.gmra.mrb[28].mxu1 %v12205_v9  ;;  %v10741_v9 = vld [vmem:[%s14853_s2 + $0x94] ss:$12 sps:$4 sm:$0xff]  }
 0x2c5   :  { %v12331_v46 = vpop.f32.mrb[52].mxu0  ;;  %8955 = vmatprep.mubr.msk.bf16.mxu1 %vm2467_vm3, %v12227_v26  ;;  %2804 = vmatpush1.bf16.msra.mxu1 %v10732_v40  ;;  %v10739_v26 = vld [vmem:[%s14853_s2 + $0x90] ss:$12 sps:$4 sm:$0xff]  }
 0x2c6   :  { %v12338_v50 = vpop.f32.mrb[53].mxu0  ;;  %2805 = vmatprep.subr.bf16.mxu1 %v10738_v43  ;;  %v10750_v43 = vld [vmem:[%s14853_s2 + $0x38] ss:$12 sps:$4 sm:$0xff]  }
 0x2c7   :  { %v1795_v53 = vpop.f32.mrb[54].mxu0 }
 0x2c8   :  { %v1797_v54 = vpop.f32.mrb[55].mxu0  ;;  %v2122_v62 = vmax.f32 %v1795_v53, 0.0 }
 0x2c9   :  { %2806 = vmatpush1.bf16.msra.mxu1 %v10736_v47  ;;  %v2123_v44 = vmax.f32 %v1797_v54, 0.0 }
 0x2ca   :  { %8883 = vmatmul.mubr.msk.bf16.gmra.mrb[160].mxu0 %vm1052_vm2, %v10735_v52  ;;  %2807 = vmatprep.subr.bf16.mxu1 %v10741_v9  ;;  %v10751_v52 = vld [vmem:[%s14853_s2 + $0x50] ss:$12 sps:$4 sm:$0xff]  }
 0x2cc   :  { %2621 = vmatmul.mubr.bf16.gmra.mrb[32].mxu1 %v12225_v24 }
 0x2cd   :  { %v1801_v60 = vpop.f32.mrb[56].mxu0  ;;  %8956 = vmatprep.mubr.msk.bf16.mxu1 %vm2467_vm3, %v12234_v33  ;;  %2808 = vmatpush1.bf16.msra.mxu1 %v10739_v26 }
 0x2ce   :  { %v2124_v63 = vmax.f32 %v1801_v60, 0.0  ;;  %v1803_v0 = vpop.f32.mrb[57].mxu0  ;;  %2809 = vmatprep.subr.bf16.mxu1 %v10744_v56 }
 0x2cf   :  { %v2125_v7 = vmax.f32 %v1803_v0, 0.0  ;;  %v1805_v24 = vpop.f32.mrb[58].mxu0  ;;  %v10752_v0 = vld [vmem:[%s14853_s2 + $0x68] ss:$12 sps:$4 sm:$0xff]  }
 0x2d0   :  { %v12362_v8 = vpack.c.bf16 %v2124_v63, %v2122_v62  ;;  %v1807_v10 = vpop.f32.mrb[59].mxu0  ;;  %v2126_v42 = vmax.f32 %v1805_v24, 0.0  ;;  %v2085_v24 = vmax.f32 %v12156_v30, 0.0 }
 0x2d1   :  { %v12364_v33 = vpack.c.bf16 %v2125_v7, %v2123_v44  ;;  %2810 = vmatpush1.bf16.msra.mxu1 %v10742_v61  ;;  %v2127_v18 = vmax.f32 %v1807_v10, 0.0  ;;  %v10753_v44 = vld [vmem:[%s14853_s2 + $0x80] ss:$12 sps:$4 sm:$0xff]  }
 0x2d2   :  { %2811 = vmatprep.subr.bf16.mxu1 %v10747_v1 }
 0x2d4   :  { %2629 = vmatmul.mubr.bf16.gmra.mrb[36].mxu1 %v12252_v48  ;;  %v10748_v48 = vld [vmem:[%s14853_s2 + $0x8] ss:$12 sps:$4 sm:$0xff]  }
 0x2d5   :  { %v1811_v13 = vpop.f32.mrb[60].mxu0  ;;  %8984 = vmatprep.mubr.msk.bf16.mxu1 %vm2467_vm3, %v12124_v58  ;;  %2812 = vmatpush1.bf16.msra.mxu1 %v10745_v12 }
 0x2d6   :  { %v2128_v14 = vmax.f32 %v1811_v13, 0.0  ;;  %v1813_v15 = vpop.f32.mrb[61].mxu0  ;;  %2876 = vmatprep.subr.bf16.mxu1 %v14868_v2 }
 0x2d7   :  { %v2129_v59 = vmax.f32 %v1813_v15, 0.0  ;;  %v1815_v19 = vpop.f32.mrb[62].mxu0 }
 0x2d8   :  { %v12373_v20 = vpack.c.bf16 %v2128_v14, %v2126_v42  ;;  %v1817_v22 = vpop.f32.mrb[63].mxu0  ;;  %v2130_v34 = vmax.f32 %v1815_v19, 0.0  ;;  %v12428_v19 = vpack.c.bf16 %v2085_v24, %v2085_v24 }
 0x2d9   :  { %v12375_v25 = vpack.c.bf16 %v2129_v59, %v2127_v18  ;;  %v2131_v36 = vmax.f32 %v1817_v22, 0.0  ;;  %v10754_v18 = vld [vmem:[%s14853_s2 + $0x98] ss:$12 sps:$4 sm:$0xff]  }
 0x2dc   :  { %2828 = vmatmul.mubr.bf16.vlgmr.msra.gmra.mrb[0].mxu1 %v12121_v57 }
 0x2dd   :  { %v1821_v31 = vpop.f32.mrb[64].mxu0  ;;  %8985 = vmatprep.mubr.msk.bf16.mxu1 %vm2467_vm3, %v12133_v6  ;;  %2877 = vmatpush1.bf16.msra.mxu1 %v10748_v48  ;;  %v10755_v48 = vld [vmem:[%s14853_s2 + $0xb0] ss:$12 sps:$4 sm:$0xff]  }
 0x2de   :  { %v2132_v35 = vmax.f32 %v1821_v31, 0.0  ;;  %v1823_v55 = vpop.f32.mrb[65].mxu0  ;;  %2878 = vmatprep.subr.bf16.mxu1 %v14868_v2  ;;  %v2084_v31 = vmax.f32 %v12154_v29, 0.0  ;;  %v10759_v29 = vld [vmem:[%s14853_s2 + $0x1b4] ss:$12 sps:$4 sm:$0xff]  }
 0x2df   :  { %v2133_v37 = vmax.f32 %v1823_v55, 0.0  ;;  %v1825_v38 = vpop.f32.mrb[66].mxu0 }
 0x2e0   :  { %v12387_v11 = vpack.c.bf16 %v2132_v35, %v2130_v34  ;;  %v1827_v39 = vpop.f32.mrb[67].mxu0  ;;  %v2134_v9 = vmax.f32 %v1825_v38, 0.0 }
 0x2e1   :  { %v12389_v40 = vpack.c.bf16 %v2133_v37, %v2131_v36  ;;  %2879 = vmatpush1.bf16.msra.mxu1 %v10749_v32  ;;  %v2135_v26 = vmax.f32 %v1827_v39, 0.0  ;;  %v10756_v39 = vld [vmem:[%s14853_s2 + $0xc8] ss:$12 sps:$4 sm:$0xff]  }
 0x2e2   :  { %2880 = vmatprep.subr.bf16.mxu1 %v14868_v2 }
 0x2e4   :  { %2838 = vmatmul.mubr.bf16.gmra.mrb[4].mxu1 %v12130_v5 }
 0x2e5   :  { %v1831_v47 = vpop.f32.mrb[68].mxu0  ;;  %8986 = vmatprep.mubr.msk.bf16.mxu1 %vm2467_vm3, %v12142_v17  ;;  %2881 = vmatpush1.bf16.msra.mxu1 %v10750_v43  ;;  %v12443_v43 = vpack.c.bf16 %v2084_v31, %v2084_v31 }
 0x2e6   :  { %v2136_v53 = vmax.f32 %v1831_v47, 0.0  ;;  %v1833_v54 = vpop.f32.mrb[69].mxu0  ;;  %2882 = vmatprep.subr.bf16.mxu1 %v14868_v2 }
 0x2e7   :  { %v2137_v56 = vmax.f32 %v1833_v54, 0.0  ;;  %v12402_v60 = vpop.f32.mrb[70].mxu0 }
 0x2e8   :  { %v12404_v61 = vpack.c.bf16 %v2136_v53, %v2134_v9  ;;  %v12406_v62 = vpop.f32.mrb[71].mxu0 }
 0x2e9   :  { %v12408_v63 = vpack.c.bf16 %v2137_v56, %v2135_v26  ;;  %2883 = vmatpush1.bf16.msra.mxu1 %v10751_v52 }
 0x2ea   :  { %2884 = vmatprep.subr.bf16.mxu1 %v14868_v2 }
 0x2ec   :  { %2848 = vmatmul.mubr.bf16.gmra.mrb[8].mxu1 %v12139_v16 }
 0x2ed   :  { %v1841_v1 = vpop.f32.mrb[72].mxu0  ;;  %8987 = vmatprep.mubr.msk.bf16.mxu1 %vm2467_vm3, %v12151_v28  ;;  %2885 = vmatpush1.bf16.msra.mxu1 %v10752_v0 }
 0x2ee   :  { %v1843_v7 = vpop.f32.mrb[73].mxu0  ;;  %2886 = vmatprep.subr.bf16.mxu1 %v14868_v2  ;;  %v2140_v12 = vmax.f32 %v1841_v1, 0.0 }
 0x2ef   :  { %v1845_v10 = vpop.f32.mrb[74].mxu0  ;;  %v2141_v14 = vmax.f32 %v1843_v7, 0.0  ;;  %v10757_v7 = vld [vmem:[%s14853_s2 + $0x1b0] ss:$12 sps:$4 sm:$0xff]  }
 0x2f0   :  { %v2142_v13 = vmax.f32 %v1845_v10, 0.0  ;;  %v1847_v42 = vpop.f32.mrb[75].mxu0  ;;  %v10762_v10 = vld [vmem:[%s14853_s2 + $0x1cc] ss:$12 sps:$4 sm:$0xff]  }
 0x2f1   :  { %v2143_v15 = vmax.f32 %v1847_v42, 0.0  ;;  %2887 = vmatpush1.bf16.msra.mxu1 %v10753_v44 }
 0x2f2   :  { %v12425_v59 = vpack.c.bf16 %v2142_v13, %v2140_v12  ;;  %2888 = vmatprep.subr.bf16.mxu1 %v14868_v2  ;;  %v10760_v13 = vld [vmem:[%s14853_s2 + $0x1c8] ss:$12 sps:$4 sm:$0xff]  }
 0x2f3   :  { %v12430_v22 = vpack.c.bf16 %v2143_v15, %v2141_v14  ;;  %v10765_v14 = vld [vmem:[%s14853_s2 + $0x1e4] ss:$12 sps:$4 sm:$0xff]  }
 0x2f4   :  { %2858 = vmatmul.mubr.bf16.gmra.mrb[12].mxu1 %v12148_v27 }
 0x2f5   :  { %v1851_v30 = vpop.f32.mrb[76].mxu0  ;;  %8988 = vmatprep.mubr.msk.bf16.mxu1 %vm2467_vm3, %v12428_v19  ;;  %2889 = vmatpush1.bf16.msra.mxu1 %v10754_v18 }
 0x2f6   :  { %v1853_v32 = vpop.f32.mrb[77].mxu0  ;;  %2890 = vmatprep.subr.bf16.mxu1 %v14868_v2  ;;  %v2144_v35 = vmax.f32 %v1851_v30, 0.0 }
 0x2f7   :  { %v1855_v34 = vpop.f32.mrb[78].mxu0  ;;  %v2145_v37 = vmax.f32 %v1853_v32, 0.0 }
 0x2f8   :  { %v2146_v55 = vmax.f32 %v1855_v34, 0.0  ;;  %v1857_v36 = vpop.f32.mrb[79].mxu0  ;;  %v10768_v34 = vld [vmem:[%s14853_s2 + $0x1fc] ss:$12 sps:$4 sm:$0xff]  }
 0x2f9   :  { %v2147_v38 = vmax.f32 %v1857_v36, 0.0  ;;  %2891 = vmatpush1.bf16.msra.mxu1 %v10755_v48  ;;  %v10766_v36 = vld [vmem:[%s14853_s2 + $0x1f8] ss:$12 sps:$4 sm:$0xff]  }
 0x2fa   :  { %v12445_v47 = vpack.c.bf16 %v2146_v55, %v2144_v35  ;;  %2892 = vmatprep.subr.bf16.mxu1 %v14868_v2 }
 0x2fb   :  { %v12451_v52 = vpack.c.bf16 %v2147_v38, %v2145_v37  ;;  %v10771_v38 = vld [vmem:[%s14853_s2 + $0x214] ss:$12 sps:$4 sm:$0xff]  }
 0x2fc   :  { %2868 = vmatmul.mubr.bf16.gmra.mrb[40].mxu1 %v12443_v43 }
 0x2fd   :  { %v1861_v9 = vpop.f32.mrb[80].mxu0  ;;  %8989 = vmatprep.mubr.msk.bf16.mxu1 %vm2467_vm3, %v12124_v58  ;;  %2893 = vmatpush1.bf16.msra.mxu1 %v10756_v39 }
 0x2fe   :  { %v1863_v53 = vpop.f32.mrb[81].mxu0  ;;  %3154 = vmatprep.subr.bf16.mxu1 %v10759_v29  ;;  %v2148_v26 = vmax.f32 %v1861_v9, 0.0 }
 0x2ff   :  { %v1865_v54 = vpop.f32.mrb[82].mxu0  ;;  %v2149_v1 = vmax.f32 %v1863_v53, 0.0  ;;  %v10772_v53 = vld [vmem:[%s14853_s2 + $0x228] ss:$12 sps:$4 sm:$0xff]  }
 0x300   :  { %v2150_v56 = vmax.f32 %v1865_v54, 0.0  ;;  %v1867_v0 = vpop.f32.mrb[83].mxu0 }
 0x301   :  { %v2151_v44 = vmax.f32 %v1867_v0, 0.0  ;;  %v10777_v0 = vld [vmem:[%s14853_s2 + $0x244] ss:$12 sps:$4 sm:$0xff]  }
 0x302   :  { %v12459_v24 = vpack.c.bf16 %v2150_v56, %v2148_v26 }
 0x303   :  { %v12464_v58 = vpack.c.bf16 %v2151_v44, %v2149_v1 }
 0x304   :  { %2909 = vmatmul.mubr.bf16.vlgmr.msra.gmra.mrb[44].mxu1 %v12121_v57 }
 0x305   :  { %v1871_v12 = vpop.f32.mrb[84].mxu0  ;;  %8990 = vmatprep.mubr.msk.bf16.mxu1 %vm2467_vm3, %v12133_v6  ;;  %3155 = vmatpush1.bf16.msra.mxu1 %v10757_v7  ;;  %v10763_v6 = vld [vmem:[%s14853_s2 + $0x1e0] ss:$12 sps:$4 sm:$0xff]  }
 0x306   :  { %v1873_v42 = vpop.f32.mrb[85].mxu0  ;;  %3156 = vmatprep.subr.bf16.mxu1 %v10762_v10  ;;  %v2152_v18 = vmax.f32 %v1871_v12, 0.0  ;;  %v10775_v12 = vld [vmem:[%s14853_s2 + $0x240] ss:$12 sps:$4 sm:$0xff]  }
 0x307   :  { %v1875_v15 = vpop.f32.mrb[86].mxu0  ;;  %v2153_v57 = vmax.f32 %v1873_v42, 0.0 }
 0x308   :  { %v2154_v30 = vmax.f32 %v1875_v15, 0.0  ;;  %v1877_v48 = vpop.f32.mrb[87].mxu0 }
 0x309   :  { %v2155_v31 = vmax.f32 %v1877_v48, 0.0  ;;  %3157 = vmatpush1.bf16.msra.mxu1 %v10760_v13  ;;  %v10780_v13 = vld [vmem:[%s14853_s2 + $0x25c] ss:$12 sps:$4 sm:$0xff]   ;;  %v10783_v48 = vld [vmem:[%s14853_s2 + $0x274] ss:$12 sps:$4 sm:$0xff]  }
 0x30a   :  { %v12478_v32 = vpack.c.bf16 %v2154_v30, %v2152_v18  ;;  %3158 = vmatprep.subr.bf16.mxu1 %v10765_v14  ;;  %v10778_v14 = vld [vmem:[%s14853_s2 + $0x258] ss:$12 sps:$4 sm:$0xff]  }
 0x30b   :  { %v12483_v35 = vpack.c.bf16 %v2155_v31, %v2153_v57 }
 0x30c   :  { %2917 = vmatmul.mubr.bf16.gmra.mrb[48].mxu1 %v12130_v5  ;;  %v10769_v5 = vld [vmem:[%s14853_s2 + $0x210] ss:$12 sps:$4 sm:$0xff]  }
 0x30d   :  { %v12486_v55 = vpop.f32.mrb[88].mxu0  ;;  %8991 = vmatprep.mubr.msk.bf16.mxu1 %vm2467_vm3, %v12142_v17  ;;  %3159 = vmatpush1.bf16.msra.mxu1 %v10763_v6  ;;  %v10774_v17 = vld [vmem:[%s14853_s2 + $0x22c] ss:$12 sps:$4 sm:$0xff]  }
 0x30e   :  { %v12493_v37 = vpop.f32.mrb[89].mxu0  ;;  %3160 = vmatprep.subr.bf16.mxu1 %v10768_v34 }
 0x30f   :  { %v1885_v39 = vpop.f32.mrb[90].mxu0 }
 0x310   :  { %v1887_v29 = vpop.f32.mrb[91].mxu0  ;;  %v2158_v54 = vmax.f32 %v1885_v39, 0.0 }
 0x311   :  { %3161 = vmatpush1.bf16.msra.mxu1 %v10766_v36  ;;  %v2159_v1 = vmax.f32 %v1887_v29, 0.0  ;;  %v10781_v36 = vld [vmem:[%s14853_s2 + $0x270] ss:$12 sps:$4 sm:$0xff]  }
 0x312   :  { %3162 = vmatprep.subr.bf16.mxu1 %v10771_v38 }
 0x314   :  { %2925 = vmatmul.mubr.bf16.gmra.mrb[52].mxu1 %v12139_v16 }
 0x315   :  { %v1891_v9 = vpop.f32.mrb[92].mxu0  ;;  %8992 = vmatprep.mubr.msk.bf16.mxu1 %vm2467_vm3, %v12151_v28  ;;  %3163 = vmatpush1.bf16.msra.mxu1 %v10769_v5 }
 0x316   :  { %v2160_v26 = vmax.f32 %v1891_v9, 0.0  ;;  %v1893_v56 = vpop.f32.mrb[93].mxu0  ;;  %3164 = vmatprep.subr.bf16.mxu1 %v10774_v17 }
 0x317   :  { %v2161_v44 = vmax.f32 %v1893_v56, 0.0  ;;  %v1895_v16 = vpop.f32.mrb[94].mxu0 }
 0x318   :  { %v12513_v7 = vpack.c.bf16 %v2160_v26, %v2158_v54  ;;  %v1897_v10 = vpop.f32.mrb[95].mxu0  ;;  %v2162_v15 = vmax.f32 %v1895_v16, 0.0 }
 0x319   :  { %v12515_v28 = vpack.c.bf16 %v2161_v44, %v2159_v1  ;;  %3165 = vmatpush1.bf16.msra.mxu1 %v10772_v53  ;;  %v2163_v57 = vmax.f32 %v1897_v10, 0.0  ;;  %v10785_v1 = vld [vmem:[%s14853_s2 + $0x1d0] ss:$12 sps:$4 sm:$0xff]  }
 0x31a   :  { %3166 = vmatprep.subr.bf16.mxu1 %v10777_v0 }
 0x31c   :  { %2933 = vmatmul.mubr.bf16.gmra.mrb[56].mxu1 %v12148_v27 }
 0x31d   :  { %v1901_v42 = vpop.f32.mrb[96].mxu0  ;;  %8993 = vmatprep.mubr.msk.bf16.mxu1 %vm2467_vm3, %v12428_v19  ;;  %3167 = vmatpush1.bf16.msra.mxu1 %v10775_v12 }
 0x31e   :  { %v2164_v18 = vmax.f32 %v1901_v42, 0.0  ;;  %v1903_v30 = vpop.f32.mrb[97].mxu0  ;;  %3168 = vmatprep.subr.bf16.mxu1 %v10780_v13 }
 0x31f   :  { %v2165_v31 = vmax.f32 %v1903_v30, 0.0  ;;  %v1905_v27 = vpop.f32.mrb[98].mxu0  ;;  %v10786_v30 = vld [vmem:[%s14853_s2 + $0x1e8] ss:$12 sps:$4 sm:$0xff]  }
 0x320   :  { %v12532_v6 = vpack.c.bf16 %v2164_v18, %v2162_v15  ;;  %v1907_v34 = vpop.f32.mrb[99].mxu0  ;;  %v2166_v39 = vmax.f32 %v1905_v27, 0.0 }
 0x321   :  { %v12534_v19 = vpack.c.bf16 %v2165_v31, %v2163_v57  ;;  %3169 = vmatpush1.bf16.msra.mxu1 %v10778_v14  ;;  %v2167_v17 = vmax.f32 %v1907_v34, 0.0  ;;  %v10787_v57 = vld [vmem:[%s14853_s2 + $0x200] ss:$12 sps:$4 sm:$0xff]  }
 0x322   :  { %3170 = vmatprep.subr.bf16.mxu1 %v10783_v48 }
 0x324   :  { %2941 = vmatmul.mubr.bf16.gmra.mrb[60].mxu1 %v12443_v43  ;;  %v10784_v43 = vld [vmem:[%s14853_s2 + $0x1b8] ss:$12 sps:$4 sm:$0xff]  }
 0x325   :  { %v1911_v38 = vpop.f32.mrb[100].mxu0  ;;  %9057 = vmatprep.mubr.msk.bf16.mxu1 %vm2467_vm3, %v12261_v51  ;;  %3171 = vmatpush1.bf16.msra.mxu1 %v10781_v36 }
 0x326   :  { %v2168_v29 = vmax.f32 %v1911_v38, 0.0  ;;  %v1913_v5 = vpop.f32.mrb[101].mxu0  ;;  %3235 = vmatprep.subr.bf16.mxu1 %v14868_v2 }
 0x327   :  { %v2169_v9 = vmax.f32 %v1913_v5, 0.0  ;;  %v1915_v53 = vpop.f32.mrb[102].mxu0  ;;  %v10788_v5 = vld [vmem:[%s14853_s2 + $0x218] ss:$12 sps:$4 sm:$0xff]  }
 0x328   :  { %v12543_v54 = vpack.c.bf16 %v2168_v29, %v2166_v39  ;;  %v1917_v26 = vpop.f32.mrb[103].mxu0  ;;  %v2170_v44 = vmax.f32 %v1915_v53, 0.0 }
 0x329   :  { %v12545_v56 = vpack.c.bf16 %v2169_v9, %v2167_v17  ;;  %v2171_v12 = vmax.f32 %v1917_v26, 0.0  ;;  %v10789_v26 = vld [vmem:[%s14853_s2 + $0x230] ss:$12 sps:$4 sm:$0xff]  }
 0x32c   :  { %3187 = vmatmul.mubr.bf16.vlgmr.msra.gmra.mrb[0].mxu1 %v12254_v49 }
 0x32d   :  { %v1921_v0 = vpop.f32.mrb[104].mxu0  ;;  %9058 = vmatprep.mubr.msk.bf16.mxu1 %vm2467_vm3, %v12279_v4  ;;  %3236 = vmatpush1.bf16.msra.mxu1 %v10784_v43 }
 0x32e   :  { %v2172_v16 = vmax.f32 %v1921_v0, 0.0  ;;  %v1923_v10 = vpop.f32.mrb[105].mxu0  ;;  %3237 = vmatprep.subr.bf16.mxu1 %v14868_v2  ;;  %v2121_v0 = vmax.f32 %v12338_v50, 0.0 }
 0x32f   :  { %v2173_v13 = vmax.f32 %v1923_v10, 0.0  ;;  %v12557_v42 = vpop.f32.mrb[106].mxu0 }
 0x330   :  { %v12559_v14 = vpack.c.bf16 %v2172_v16, %v2170_v44  ;;  %v12561_v15 = vpop.f32.mrb[107].mxu0 }
 0x331   :  { %v12563_v18 = vpack.c.bf16 %v2173_v13, %v2171_v12  ;;  %3238 = vmatpush1.bf16.msra.mxu1 %v10785_v1 }
 0x332   :  { %3239 = vmatprep.subr.bf16.mxu1 %v14868_v2 }
 0x334   :  { %3197 = vmatmul.mubr.bf16.gmra.mrb[4].mxu1 %v12273_v3 }
 0x335   :  { %v1931_v48 = vpop.f32.mrb[108].mxu0  ;;  %9059 = vmatprep.mubr.msk.bf16.mxu1 %vm2467_vm3, %v12303_v23  ;;  %3240 = vmatpush1.bf16.msra.mxu1 %v10786_v30  ;;  %v10790_v30 = vld [vmem:[%s14853_s2 + $0x248] ss:$12 sps:$4 sm:$0xff]  }
 0x336   :  { %v1933_v31 = vpop.f32.mrb[109].mxu0  ;;  %3241 = vmatprep.subr.bf16.mxu1 %v14868_v2  ;;  %v2176_v34 = vmax.f32 %v1931_v48, 0.0 }
 0x337   :  { %v1935_v27 = vpop.f32.mrb[110].mxu0  ;;  %v2177_v39 = vmax.f32 %v1933_v31, 0.0 }
 0x338   :  { %v2178_v36 = vmax.f32 %v1935_v27, 0.0  ;;  %v1937_v38 = vpop.f32.mrb[111].mxu0  ;;  %v10791_v27 = vld [vmem:[%s14853_s2 + $0x260] ss:$12 sps:$4 sm:$0xff]  }
 0x339   :  { %v2179_v29 = vmax.f32 %v1937_v38, 0.0  ;;  %3242 = vmatpush1.bf16.msra.mxu1 %v10787_v57  ;;  %v12598_v57 = vpack.c.bf16 %v2121_v0, %v2121_v0 }
 0x33a   :  { %v12579_v17 = vpack.c.bf16 %v2178_v36, %v2176_v34  ;;  %3243 = vmatprep.subr.bf16.mxu1 %v14868_v2  ;;  %v2120_v34 = vmax.f32 %v12331_v46, 0.0  ;;  %v10795_v46 = vld [vmem:[%s14853_s2 + $0x28c] ss:$12 sps:$4 sm:$0xff]  }
 0x33b   :  { %v12582_v9 = vpack.c.bf16 %v2179_v29, %v2177_v39 }
 0x33c   :  { %3207 = vmatmul.mubr.bf16.gmra.mrb[8].mxu1 %v12297_v21  ;;  %v12613_v0 = vpack.c.bf16 %v2120_v34, %v2120_v34 }
 0x33d   :  { %v1941_v53 = vpop.f32.mrb[112].mxu0  ;;  %9060 = vmatprep.mubr.msk.bf16.mxu1 %vm2467_vm3, %v12327_v45  ;;  %3244 = vmatpush1.bf16.msra.mxu1 %v10788_v5 }
 0x33e   :  { %v1943_v43 = vpop.f32.mrb[113].mxu0  ;;  %3245 = vmatprep.subr.bf16.mxu1 %v14868_v2  ;;  %v2180_v44 = vmax.f32 %v1941_v53, 0.0 }
 0x33f   :  { %v1945_v1 = vpop.f32.mrb[114].mxu0  ;;  %v2181_v12 = vmax.f32 %v1943_v43, 0.0  ;;  %v10792_v43 = vld [vmem:[%s14853_s2 + $0x278] ss:$12 sps:$4 sm:$0xff]  }
 0x340   :  { %v2182_v16 = vmax.f32 %v1945_v1, 0.0  ;;  %v1947_v10 = vpop.f32.mrb[115].mxu0 }
 0x341   :  { %v2183_v13 = vmax.f32 %v1947_v10, 0.0  ;;  %3246 = vmatpush1.bf16.msra.mxu1 %v10789_v26 }
 0x342   :  { %v12595_v48 = vpack.c.bf16 %v2182_v16, %v2180_v44  ;;  %3247 = vmatprep.subr.bf16.mxu1 %v14868_v2 }
 0x343   :  { %v12600_v31 = vpack.c.bf16 %v2183_v13, %v2181_v12 }
 0x344   :  { %3217 = vmatmul.mubr.bf16.gmra.mrb[12].mxu1 %v12321_v41 }
 0x345   :  { %v1951_v50 = vpop.f32.mrb[116].mxu0  ;;  %9061 = vmatprep.mubr.msk.bf16.mxu1 %vm2467_vm3, %v12598_v57  ;;  %3248 = vmatpush1.bf16.msra.mxu1 %v10790_v30 }
 0x346   :  { %v1953_v36 = vpop.f32.mrb[117].mxu0  ;;  %3249 = vmatprep.subr.bf16.mxu1 %v14868_v2  ;;  %v2184_v39 = vmax.f32 %v1951_v50, 0.0 }
 0x347   :  { %v1955_v38 = vpop.f32.mrb[118].mxu0  ;;  %v2185_v53 = vmax.f32 %v1953_v36, 0.0  ;;  %v10793_v36 = vld [vmem:[%s14853_s2 + $0x288] ss:$12 sps:$4 sm:$0xff]  }
 0x348   :  { %v2186_v29 = vmax.f32 %v1955_v38, 0.0  ;;  %v1957_v5 = vpop.f32.mrb[119].mxu0 }
 0x349   :  { %v2187_v26 = vmax.f32 %v1957_v5, 0.0  ;;  %3250 = vmatpush1.bf16.msra.mxu1 %v10791_v27  ;;  %v10796_v5 = vld [vmem:[%s14853_s2 + $0x2a0] ss:$12 sps:$4 sm:$0xff]  }
 0x34a   :  { %v12615_v1 = vpack.c.bf16 %v2186_v29, %v2184_v39  ;;  %3251 = vmatprep.subr.bf16.mxu1 %v14868_v2  ;;  %v10798_v39 = vld [vmem:[%s14853_s2 + $0x2a4] ss:$12 sps:$4 sm:$0xff]  }
 0x34b   :  { %v12621_v44 = vpack.c.bf16 %v2187_v26, %v2185_v53  ;;  %v10801_v26 = vld [vmem:[%s14853_s2 + $0x2bc] ss:$12 sps:$4 sm:$0xff]  }
 0x34c   :  { %3227 = vmatmul.mubr.bf16.gmra.mrb[64].mxu1 %v12613_v0 }
 0x34d   :  { %v1961_v16 = vpop.f32.mrb[120].mxu0  ;;  %9062 = vmatprep.mubr.msk.bf16.mxu1 %vm2467_vm3, %v12261_v51  ;;  %3252 = vmatpush1.bf16.msra.mxu1 %v10792_v43 }
 0x34e   :  { %v1963_v10 = vpop.f32.mrb[121].mxu0  ;;  %3540 = vmatprep.subr.bf16.mxu1 %v10795_v46  ;;  %v2188_v13 = vmax.f32 %v1961_v16, 0.0 }
 0x34f   :  { %v1965_v12 = vpop.f32.mrb[122].mxu0  ;;  %v2189_v27 = vmax.f32 %v1963_v10, 0.0  ;;  %v10802_v10 = vld [vmem:[%s14853_s2 + $0x2d0] ss:$12 sps:$4 sm:$0xff]  }
 0x350   :  { %v2190_v30 = vmax.f32 %v1965_v12, 0.0  ;;  %v1967_v50 = vpop.f32.mrb[123].mxu0 }
 0x351   :  { %v2191_v34 = vmax.f32 %v1967_v50, 0.0  ;;  %v10807_v50 = vld [vmem:[%s14853_s2 + $0x2ec] ss:$12 sps:$4 sm:$0xff]  }
 0x352   :  { %v12629_v38 = vpack.c.bf16 %v2190_v30, %v2188_v13 }
 0x353   :  { %v12634_v51 = vpack.c.bf16 %v2191_v34, %v2189_v27 }
 0x354   :  { %3268 = vmatmul.mubr.bf16.vlgmr.msra.gmra.mrb[68].mxu1 %v12254_v49  ;;  %v10799_v49 = vld [vmem:[%s14853_s2 + $0x2b8] ss:$12 sps:$4 sm:$0xff]  }
 0x355   :  { %v12637_v29 = vpop.f32.mrb[124].mxu0  ;;  %9063 = vmatprep.mubr.msk.bf16.mxu1 %vm2467_vm3, %v12279_v4  ;;  %3541 = vmatpush1.bf16.msra.mxu1 %v10793_v36  ;;  %v10804_v4 = vld [vmem:[%s14853_s2 + $0x2d4] ss:$12 sps:$4 sm:$0xff]  }
 0x356   :  { %v12644_v53 = vpop.f32.mrb[125].mxu0  ;;  %3542 = vmatprep.subr.bf16.mxu1 %v10798_v39 }
 0x357   :  { %v1975_v43 = vpop.f32.mrb[126].mxu0 }
 0x358   :  { %v1977_v46 = vpop.f32.mrb[127].mxu0  ;;  %v2194_v12 = vmax.f32 %v1975_v43, 0.0 }
 0x359   :  { %3543 = vmatpush1.bf16.msra.mxu1 %v10796_v5  ;;  %v2195_v27 = vmax.f32 %v1977_v46, 0.0  ;;  %v10805_v5 = vld [vmem:[%s14853_s2 + $0x2e8] ss:$12 sps:$4 sm:$0xff]   ;;  %v10808_v46 = vld [vmem:[%s14853_s2 + $0x300] ss:$12 sps:$4 sm:$0xff]  }
 0x35a   :  { %3544 = vmatprep.subr.bf16.mxu1 %v10801_v26  ;;  %v10810_v26 = vld [vmem:[%s14853_s2 + $0x304] ss:$12 sps:$4 sm:$0xff]  }
 0x35c   :  { %3276 = vmatmul.mubr.bf16.gmra.mrb[72].mxu1 %v12273_v3 }
 0x35d   :  { %v1981_v16 = vpop.f32.mrb[128].mxu0  ;;  %9064 = vmatprep.mubr.msk.bf16.mxu1 %vm2467_vm3, %v12303_v23  ;;  %3545 = vmatpush1.bf16.msra.mxu1 %v10799_v49 }
 0x35e   :  { %v2196_v13 = vmax.f32 %v1981_v16, 0.0  ;;  %v1983_v30 = vpop.f32.mrb[129].mxu0  ;;  %3546 = vmatprep.subr.bf16.mxu1 %v10804_v4 }
 0x35f   :  { %v2197_v34 = vmax.f32 %v1983_v30, 0.0  ;;  %v1985_v3 = vpop.f32.mrb[130].mxu0 }
 0x360   :  { %v12664_v36 = vpack.c.bf16 %v2196_v13, %v2194_v12  ;;  %v1987_v39 = vpop.f32.mrb[131].mxu0  ;;  %v2198_v49 = vmax.f32 %v1985_v3, 0.0 }
 0x361   :  { %v12666_v23 = vpack.c.bf16 %v2197_v34, %v2195_v27  ;;  %3547 = vmatpush1.bf16.msra.mxu1 %v10802_v10  ;;  %v10813_v10 = vld [vmem:[%s14853_s2 + $0x31c] ss:$12 sps:$4 sm:$0xff]   ;;  %v2199_v12 = vmax.f32 %v1987_v39, 0.0  ;;  %v10811_v27 = vld [vmem:[%s14853_s2 + $0x318] ss:$12 sps:$4 sm:$0xff]  }
 0x362   :  { %14875 = vst [vmem:[#allocation2_spill] sm:$0xff] %v12664_v36  ;;  %3548 = vmatprep.subr.bf16.mxu1 %v10807_v50  ;;  %v10816_v34 = vld [vmem:[%s14853_s2 + $0x334] ss:$12 sps:$4 sm:$0xff]   ;;  %v10814_v39 = vld [vmem:[%s14853_s2 + $0x330] ss:$12 sps:$4 sm:$0xff]  }
 0x364   :  { %3284 = vmatmul.mubr.bf16.gmra.mrb[76].mxu1 %v12297_v21 }
 0x365   :  { %v1991_v43 = vpop.f32.mrb[132].mxu0  ;;  %9065 = vmatprep.mubr.msk.bf16.mxu1 %vm2467_vm3, %v12327_v45  ;;  %3549 = vmatpush1.bf16.msra.mxu1 %v10805_v5 }
 0x366   :  { %v2200_v4 = vmax.f32 %v1991_v43, 0.0  ;;  %v1993_v16 = vpop.f32.mrb[133].mxu0  ;;  %3550 = vmatprep.subr.bf16.mxu1 %v10810_v26 }
 0x367   :  { %v2201_v13 = vmax.f32 %v1993_v16, 0.0  ;;  %v1995_v21 = vpop.f32.mrb[134].mxu0 }
 0x368   :  { %v12683_v30 = vpack.c.bf16 %v2200_v4, %v2198_v49  ;;  %v1997_v50 = vpop.f32.mrb[135].mxu0  ;;  %v2202_v5 = vmax.f32 %v1995_v21, 0.0 }
 0x369   :  { %v12685_v45 = vpack.c.bf16 %v2201_v13, %v2199_v12  ;;  %3551 = vmatpush1.bf16.msra.mxu1 %v10808_v46  ;;  %v10819_v46 = vld [vmem:[%s14853_s2 + $0x34c] ss:$12 sps:$4 sm:$0xff]   ;;  %v2203_v49 = vmax.f32 %v1997_v50, 0.0  ;;  %v10817_v12 = vld [vmem:[%s14853_s2 + $0x348] ss:$12 sps:$4 sm:$0xff]  }
 0x36a   :  { %14876 = vst [vmem:[#allocation3_spill] sm:$0xff] %v12683_v30  ;;  %3552 = vmatprep.subr.bf16.mxu1 %v10813_v10 }
 0x36b   :  { %14877 = vst [vmem:[#allocation4_spill] sm:$0xff] %v12685_v45 }
 0x36c   :  { %3292 = vmatmul.mubr.bf16.gmra.mrb[80].mxu1 %v12321_v41 }
 0x36d   :  { %v2001_v3 = vpop.f32.mrb[136].mxu0  ;;  %9066 = vmatprep.mubr.msk.bf16.mxu1 %vm2467_vm3, %v12598_v57  ;;  %3553 = vmatpush1.bf16.msra.mxu1 %v10811_v27 }
 0x36e   :  { %v2204_v26 = vmax.f32 %v2001_v3, 0.0  ;;  %v2003_v43 = vpop.f32.mrb[137].mxu0  ;;  %3554 = vmatprep.subr.bf16.mxu1 %v10816_v34 }
 0x36f   :  { %v2205_v4 = vmax.f32 %v2003_v43, 0.0  ;;  %v2005_v41 = vpop.f32.mrb[138].mxu0 }
 0x370   :  { %v12702_v16 = vpack.c.bf16 %v2204_v26, %v2202_v5  ;;  %v2007_v10 = vpop.f32.mrb[139].mxu0  ;;  %v2206_v21 = vmax.f32 %v2005_v41, 0.0 }
 0x371   :  { %v12704_v57 = vpack.c.bf16 %v2205_v4, %v2203_v49  ;;  %3555 = vmatpush1.bf16.msra.mxu1 %v10814_v39  ;;  %v2207_v34 = vmax.f32 %v2007_v10, 0.0  ;;  %v10821_v49 = vld [vmem:[%s14853_s2 + $0x2a8] ss:$12 sps:$4 sm:$0xff]  }
 0x372   :  { %14878 = vst [vmem:[#allocation5_spill] sm:$0xff] %v12702_v16  ;;  %3556 = vmatprep.subr.bf16.mxu1 %v10819_v46 }
 0x373   :  { %14879 = vst [vmem:[#allocation6_spill] sm:$0xff] %v12704_v57 }
 0x374   :  { %3300 = vmatmul.mubr.bf16.gmra.mrb[84].mxu1 %v12613_v0  ;;  %v10820_v0 = vld [vmem:[%s14853_s2 + $0x290] ss:$12 sps:$4 sm:$0xff]  }
 0x375   :  { %v2011_v13 = vpop.f32.mrb[140].mxu0  ;;  %9130 = vmatprep.mubr.msk.bf16.mxu1 %vm2467_vm3, %v12364_v33  ;;  %3557 = vmatpush1.bf16.msra.mxu1 %v10817_v12 }
 0x376   :  { %v2208_v50 = vmax.f32 %v2011_v13, 0.0  ;;  %v2013_v27 = vpop.f32.mrb[141].mxu0  ;;  %3621 = vmatprep.subr.bf16.mxu1 %v14868_v2 }
 0x377   :  { %v2209_v3 = vmax.f32 %v2013_v27, 0.0  ;;  %v12713_v39 = vpop.f32.mrb[142].mxu0 }
 0x378   :  { %14880 = vst [vmem:[#allocation7_spill] sm:$0xff] %v12713_v39  ;;  %v12715_v5 = vpack.c.bf16 %v2208_v50, %v2206_v21  ;;  %v12717_v26 = vpop.f32.mrb[143].mxu0 }
 0x379   :  { %14882 = vst [vmem:[#allocation9_spill] sm:$0xff] %v12717_v26  ;;  %v12719_v43 = vpack.c.bf16 %v2209_v3, %v2207_v34 }
 0x37a   :  { %14881 = vst [vmem:[#allocation8_spill] sm:$0xff] %v12715_v5 }
 0x37b   :  { %14883 = vst [vmem:[#allocation10_spill] sm:$0xff] %v12719_v43 }
 0x37c   :  { %3573 = vmatmul.mubr.bf16.vlgmr.msra.gmra.mrb[0].mxu1 %v12362_v8 }
 0x37d   :  { %v2021_v46 = vpop.f32.mrb[144].mxu0  ;;  %9131 = vmatprep.mubr.msk.bf16.mxu1 %vm2467_vm3, %v12375_v25  ;;  %3622 = vmatpush1.bf16.msra.mxu1 %v10820_v0  ;;  %v10822_v0 = vld [vmem:[%s14853_s2 + $0x2c0] ss:$12 sps:$4 sm:$0xff]  }
 0x37e   :  { %v2023_v4 = vpop.f32.mrb[145].mxu0  ;;  %3623 = vmatprep.subr.bf16.mxu1 %v14868_v2  ;;  %v2212_v12 = vmax.f32 %v2021_v46, 0.0 }
 0x37f   :  { %v2025_v41 = vpop.f32.mrb[146].mxu0  ;;  %v12731_v10 = vpop.f32.mrb[16].mxu1  ;;  %v2213_v27 = vmax.f32 %v2023_v4, 0.0 }
 0x380   :  { %v2214_v13 = vmax.f32 %v2025_v41, 0.0  ;;  %v2027_v21 = vpop.f32.mrb[147].mxu0  ;;  %v12733_v50 = vpop.f32.mrb[17].mxu1 }
 0x381   :  { %v2215_v34 = vmax.f32 %v2027_v21, 0.0  ;;  %v2561_v3 = vpop.f32.mrb[18].mxu1  ;;  %3624 = vmatpush1.bf16.msra.mxu1 %v10821_v49  ;;  %v10823_v49 = vld [vmem:[%s14853_s2 + $0x2d8] ss:$12 sps:$4 sm:$0xff]  }
 0x382   :  { %v12738_v39 = vpack.c.bf16 %v2214_v13, %v2212_v12  ;;  %v2562_v5 = vpop.f32.mrb[19].mxu1  ;;  %3625 = vmatprep.subr.bf16.mxu1 %v14868_v2 }
 0x383   :  { %v12741_v26 = vpack.c.bf16 %v2215_v34, %v2213_v27 }
 0x384   :  { %14884 = vst [vmem:[#allocation11_spill] sm:$0xff] %v12738_v39  ;;  %3583 = vmatmul.mubr.bf16.gmra.mrb[4].mxu1 %v12373_v20 }
 0x385   :  { %14885 = vst [vmem:[#allocation12_spill] sm:$0xff] %v12741_v26  ;;  %v2031_v46 = vpop.f32.mrb[148].mxu0  ;;  %9132 = vmatprep.mubr.msk.bf16.mxu1 %vm2467_vm3, %v12389_v40  ;;  %3626 = vmatpush1.bf16.msra.mxu1 %v10822_v0  ;;  %v10824_v0 = vld [vmem:[%s14853_s2 + $0x2f0] ss:$12 sps:$4 sm:$0xff]  }
 0x386   :  { %v2033_v4 = vpop.f32.mrb[149].mxu0  ;;  %3627 = vmatprep.subr.bf16.mxu1 %v14868_v2  ;;  %v2216_v12 = vmax.f32 %v2031_v46, 0.0 }
 0x387   :  { %v2035_v41 = vpop.f32.mrb[150].mxu0  ;;  %v12750_v5 = vpop.f32.mrb[20].mxu1  ;;  %v2217_v34 = vmax.f32 %v2033_v4, 0.0 }
 0x388   :  { %v2218_v13 = vmax.f32 %v2035_v41, 0.0  ;;  %v2037_v21 = vpop.f32.mrb[151].mxu0  ;;  %v2600_v27 = vpop.f32.mrb[21].mxu1 }
 0x389   :  { %v2219_v3 = vmax.f32 %v2037_v21, 0.0  ;;  %v12752_v39 = vpop.f32.mrb[22].mxu1  ;;  %3628 = vmatpush1.bf16.msra.mxu1 %v10823_v49  ;;  %v10825_v49 = vld [vmem:[%s14853_s2 + $0x308] ss:$12 sps:$4 sm:$0xff]  }
 0x38a   :  { %v12757_v26 = vpack.c.bf16 %v2218_v13, %v2216_v12  ;;  %v2603_v43 = vpop.f32.mrb[23].mxu1  ;;  %3629 = vmatprep.subr.bf16.mxu1 %v14868_v2 }
 0x38b   :  { %v12760_v16 = vpack.c.bf16 %v2219_v3, %v2217_v34  ;;  %v2139_v43 = vmax.f32 %v12406_v62, 0.0  ;;  %v14889_v62 = vmov 0  }
 0x38c   :  { %14886 = vst [vmem:[#allocation13_spill] sm:$0xff] %v12757_v26  ;;  %3593 = vmatmul.mubr.bf16.gmra.mrb[8].mxu1 %v12387_v11 }
 0x38d   :  { %14887 = vst [vmem:[#allocation14_spill] sm:$0xff] %v12760_v16  ;;  %v2041_v46 = vpop.f32.mrb[152].mxu0  ;;  %9133 = vmatprep.mubr.msk.bf16.mxu1 %vm2467_vm3, %v12408_v63  ;;  %3630 = vmatpush1.bf16.msra.mxu1 %v10824_v0  ;;  %v10826_v0 = vld [vmem:[%s14853_s2 + $0x320] ss:$12 sps:$4 sm:$0xff]   ;;  %v12780_v30 = vpack.c.bf16 %v2139_v43, %v2139_v43 }
 0x38e   :  { %v2043_v4 = vpop.f32.mrb[153].mxu0  ;;  %3631 = vmatprep.subr.bf16.mxu1 %v14868_v2  ;;  %v2220_v13 = vmax.f32 %v2041_v46, 0.0 }
 0x38f   :  { %v2045_v41 = vpop.f32.mrb[154].mxu0  ;;  %v12770_v12 = vpop.f32.mrb[24].mxu1  ;;  %v2221_v3 = vmax.f32 %v2043_v4, 0.0 }
 0x390   :  { %v2222_v21 = vmax.f32 %v2045_v41, 0.0  ;;  %v2047_v27 = vpop.f32.mrb[155].mxu0  ;;  %v2608_v34 = vpop.f32.mrb[25].mxu1  ;;  %v2138_v41 = vmax.f32 %v12402_v60, 0.0 }
 0x391   :  { %v2223_v26 = vmax.f32 %v2047_v27, 0.0  ;;  %v12772_v16 = vpop.f32.mrb[26].mxu1  ;;  %3632 = vmatpush1.bf16.msra.mxu1 %v10825_v49  ;;  %v10827_v49 = vld [vmem:[%s14853_s2 + $0x338] ss:$12 sps:$4 sm:$0xff]  }
 0x392   :  { %v12777_v57 = vpack.c.bf16 %v2222_v21, %v2220_v13  ;;  %v2611_v2 = vpop.f32.mrb[27].mxu1  ;;  %3633 = vmatprep.subr.bf16.mxu1 %v14889_v62  ;;  %v3342_v60 = vpack.c.bf16 %v2138_v41, %v2138_v41 }
 0x393   :  { %v12782_v46 = vpack.c.bf16 %v2223_v26, %v2221_v3 }
 0x394   :  { %14888 = vst [vmem:[#allocation15_spill] sm:$0xff] %v12777_v57  ;;  %3603 = vmatmul.mubr.bf16.gmra.mrb[12].mxu1 %v12404_v61 }
 0x395   :  { %14890 = vst [vmem:[#allocation16_spill] sm:$0xff] %v12782_v46  ;;  %v2051_v4 = vpop.f32.mrb[156].mxu0  ;;  %9134 = vmatprep.mubr.msk.bf16.mxu1 %vm2467_vm3, %v12780_v30  ;;  %3634 = vmatpush1.bf16.msra.mxu1 %v10826_v0  ;;  %v10828_v0 = vld [vmem:[%s14853_s2 + $0x350] ss:$12 sps:$4 sm:$0xff]  }
 0x396   :  { %v2053_v2 = vpop.f32.mrb[157].mxu0  ;;  %3635 = vmatprep.subr.bf16.mxu1 %v14889_v62  ;;  %v2224_v26 = vmax.f32 %v2051_v4, 0.0  ;;  %v10831_v4 = vld [vmem:[%s14853_s2 + $0x364] ss:$12 sps:$4 sm:$0xff]  }
 0x397   :  { %v2055_v43 = vpop.f32.mrb[158].mxu0  ;;  %v12792_v13 = vpop.f32.mrb[28].mxu1  ;;  %v2225_v3 = vmax.f32 %v2053_v2, 0.0 }
 0x398   :  { %v2226_v21 = vmax.f32 %v2055_v43, 0.0  ;;  %v2057_v27 = vpop.f32.mrb[159].mxu0  ;;  %v2616_v34 = vpop.f32.mrb[29].mxu1 }
 0x399   :  { %v2227_v57 = vmax.f32 %v2057_v27, 0.0  ;;  %v12794_v46 = vpop.f32.mrb[30].mxu1  ;;  %3636 = vmatpush1.bf16.msra.mxu1 %v10827_v49 }
 0x39a   :  { %v12799_v45 = vpack.c.bf16 %v2226_v21, %v2224_v26  ;;  %v2619_v36 = vpop.f32.mrb[31].mxu1  ;;  %3637 = vmatprep.subr.bf16.mxu1 %v14889_v62 }
 0x39b   :  { %v12805_v43 = vpack.c.bf16 %v2227_v57, %v2225_v3  ;;  %v10829_v57 = vld [vmem:[%s14853_s2 + $0x360] ss:$12 sps:$4 sm:$0xff]   ;;  %v10832_v3 = vld [vmem:[%s14853_s2 + $0x378] ss:$12 sps:$4 sm:$0xff]  }
 0x39c   :  { %3613 = vmatmul.mubr.bf16.gmra.mrb[88].mxu1 %v3342_v60 }
 0x39d   :  { %v12807_v2 = vpop.f32.mrb[160].mxu0  ;;  %9135 = vmatprep.mubr.msk.bf16.mxu1 %vm2467_vm3, %v12364_v33  ;;  %3638 = vmatpush1.bf16.msra.mxu1 %v10828_v0  ;;  %v10834_v33 = vld [vmem:[%s14853_s2 + $0x37c] ss:$12 sps:$4 sm:$0xff]   ;;  %v10837_v0 = vld [vmem:[%s14853_s2 + $0x394] ss:$12 sps:$4 sm:$0xff]  }
 0x39e   :  { %v12811_v49 = vpop.f32.mrb[161].mxu0  ;;  %3926 = vmatprep.subr.bf16.mxu1 %v10831_v4 }
 0x39f   :  { %v2065_v41 = vpop.f32.mrb[162].mxu0  ;;  %v12813_v36 = vpop.f32.mrb[32].mxu1 }
 0x3a0   :  { %v2066_v26 = vpop.f32.mrb[163].mxu0  ;;  %v2624_v21 = vpop.f32.mrb[33].mxu1 }
 0x3a1   :  { %v12815_v27 = vpop.f32.mrb[34].mxu1  ;;  %v10840_v21 = vld [vmem:[%s14853_s2 + $0x3ac] ss:$12 sps:$4 sm:$0xff]  }
 0x3a2   :  { %v2627_v34 = vpop.f32.mrb[35].mxu1 }
 0x3a3   :  { %v10843_v34 = vld [vmem:[%s14853_s2 + $0x3c4] ss:$12 sps:$4 sm:$0xff]  }
 0x3a4   :  { %3654 = vmatmul.mubr.bf16.vlgmr.msra.gmra.mrb[92].mxu1 %v12362_v8  ;;  %v10835_v8 = vld [vmem:[%s14853_s2 + $0x390] ss:$12 sps:$4 sm:$0xff]  }
 0x3a5   :  { %9136 = vmatprep.mubr.msk.bf16.mxu1 %vm2467_vm3, %v12375_v25  ;;  %3927 = vmatpush1.bf16.msra.mxu1 %v10829_v57  ;;  %v10838_v57 = vld [vmem:[%s14853_s2 + $0x3a8] ss:$12 sps:$4 sm:$0xff]  }
 0x3a6   :  { %3928 = vmatprep.subr.bf16.mxu1 %v10834_v33  ;;  %v10841_v33 = vld [vmem:[%s14853_s2 + $0x3c0] ss:$12 sps:$4 sm:$0xff]  }
 0x3a7   :  { %v12832_v4 = vpop.f32.mrb[36].mxu1 }
 0x3a8   :  { %v2632_v41 = vpop.f32.mrb[37].mxu1 }
 0x3a9   :  { %v2633_v26 = vpop.f32.mrb[38].mxu1  ;;  %3929 = vmatpush1.bf16.msra.mxu1 %v10832_v3  ;;  %v10849_v3 = vld [vmem:[%s14853_s2 + $0x3f4] ss:$12 sps:$4 sm:$0xff]   ;;  %v10855_v41 = vld [vmem:[%s14853_s2 + $0x424] ss:$12 sps:$4 sm:$0xff]  }
 0x3aa   :  { %v2634_v25 = vpop.f32.mrb[39].mxu1  ;;  %3930 = vmatprep.subr.bf16.mxu1 %v10837_v0  ;;  %v10847_v0 = vld [vmem:[%s14853_s2 + $0x3f0] ss:$12 sps:$4 sm:$0xff]   ;;  %v10853_v26 = vld [vmem:[%s14853_s2 + $0x420] ss:$12 sps:$4 sm:$0xff]  }
 0x3ac   :  { %3662 = vmatmul.mubr.bf16.gmra.mrb[96].mxu1 %v12373_v20  ;;  %v10846_v20 = vld [vmem:[%s14853_s2 + $0x3dc] ss:$12 sps:$4 sm:$0xff]  }
 0x3ad   :  { %9137 = vmatprep.mubr.msk.bf16.mxu1 %vm2467_vm3, %v12389_v40  ;;  %3931 = vmatpush1.bf16.msra.mxu1 %v10835_v8  ;;  %v10844_v40 = vld [vmem:[%s14853_s2 + $0x3d8] ss:$12 sps:$4 sm:$0xff]  }
 0x3ae   :  { %3932 = vmatprep.subr.bf16.mxu1 %v10840_v21 }
 0x3b1   :  { %3933 = vmatpush1.bf16.msra.mxu1 %v10838_v57 }
 0x3b2   :  { %3934 = vmatprep.subr.bf16.mxu1 %v10843_v34  ;;  %v10858_v34 = vld [vmem:[%s14853_s2 + $0x398] ss:$12 sps:$4 sm:$0xff]  }
 0x3b4   :  { %3670 = vmatmul.mubr.bf16.gmra.mrb[100].mxu1 %v12387_v11  ;;  %v10852_v11 = vld [vmem:[%s14853_s2 + $0x40c] ss:$12 sps:$4 sm:$0xff]  }
 0x3b5   :  { %9138 = vmatprep.mubr.msk.bf16.mxu1 %vm2467_vm3, %v12408_v63  ;;  %3935 = vmatpush1.bf16.msra.mxu1 %v10841_v33  ;;  %v10850_v63 = vld [vmem:[%s14853_s2 + $0x408] ss:$12 sps:$4 sm:$0xff]  }
 0x3b6   :  { %3936 = vmatprep.subr.bf16.mxu1 %v10846_v20 }
 0x3b9   :  { %3937 = vmatpush1.bf16.msra.mxu1 %v10844_v40 }
 0x3ba   :  { %3938 = vmatprep.subr.bf16.mxu1 %v10849_v3 }
 0x3bc   :  { %3678 = vmatmul.mubr.bf16.gmra.mrb[104].mxu1 %v12404_v61  ;;  %v10856_v61 = vld [vmem:[%s14853_s2 + $0x368] ss:$12 sps:$4 sm:$0xff]  }
 0x3bd   :  { %9139 = vmatprep.mubr.msk.bf16.mxu1 %vm2467_vm3, %v12780_v30  ;;  %3939 = vmatpush1.bf16.msra.mxu1 %v10847_v0  ;;  %v10857_v30 = vld [vmem:[%s14853_s2 + $0x380] ss:$12 sps:$4 sm:$0xff]   ;;  %v10860_v0 = vld [vmem:[%s14853_s2 + $0x3c8] ss:$12 sps:$4 sm:$0xff]  }
 0x3be   :  { %3940 = vmatprep.subr.bf16.mxu1 %v10852_v11 }
 0x3c1   :  { %3941 = vmatpush1.bf16.msra.mxu1 %v10850_v63 }
 0x3c2   :  { %3942 = vmatprep.subr.bf16.mxu1 %v10855_v41  ;;  %v2157_v41 = vmax.f32 %v12493_v37, 0.0  ;;  %v10863_v37 = vld [vmem:[%s14853_s2 + $0x410] ss:$12 sps:$4 sm:$0xff]  }
 0x3c4   :  { %3686 = vmatmul.mubr.bf16.gmra.mrb[108].mxu1 %v3342_v60 }
 0x3c5   :  { %9203 = vmatprep.mubr.msk.bf16.mxu1 %vm2467_vm3, %v12430_v22  ;;  %3943 = vmatpush1.bf16.msra.mxu1 %v10853_v26 }
 0x3c6   :  { %4007 = vmatprep.subr.bf16.mxu1 %v14889_v62 }
 0x3cc   :  { %3959 = vmatmul.mubr.bf16.vlgmr.msra.gmra.mrb[0].mxu1 %v12425_v59 }
 0x3cd   :  { %9204 = vmatprep.mubr.msk.bf16.mxu1 %vm2467_vm3, %v12451_v52  ;;  %4008 = vmatpush1.bf16.msra.mxu1 %v10856_v61 }
 0x3ce   :  { %4009 = vmatprep.subr.bf16.mxu1 %v14889_v62 }
 0x3cf   :  { %v2869_v60 = vpop.f32.mrb[40].mxu1 }
 0x3d0   :  { %v12896_v8 = vadd.f32 %v2869_v60, %v12731_v10  ;;  %v2871_v25 = vpop.f32.mrb[41].mxu1  ;;  %v10859_v10 = vld [vmem:[%s14853_s2 + $0x3b0] ss:$12 sps:$4 sm:$0xff]   ;;  %v10862_v60 = vld [vmem:[%s14853_s2 + $0x3f8] ss:$12 sps:$4 sm:$0xff]  }
 0x3d1   :  { %v12899_v21 = vadd.f32 %v2871_v25, %v12733_v50  ;;  %v2873_v57 = vpop.f32.mrb[42].mxu1  ;;  %4010 = vmatpush1.bf16.msra.mxu1 %v10857_v30 }
 0x3d2   :  { %v2874_v33 = vpop.f32.mrb[43].mxu1  ;;  %4011 = vmatprep.subr.bf16.mxu1 %v14889_v62 }
 0x3d4   :  { %3969 = vmatmul.mubr.bf16.gmra.mrb[4].mxu1 %v12445_v47 }
 0x3d5   :  { %9205 = vmatprep.mubr.msk.bf16.mxu1 %vm2467_vm3, %v12464_v58  ;;  %4012 = vmatpush1.bf16.msra.mxu1 %v10858_v34  ;;  %v12940_v34 = vpack.c.bf16 %v2157_v41, %v2157_v41 }
 0x3d6   :  { %4013 = vmatprep.subr.bf16.mxu1 %v14889_v62 }
 0x3d7   :  { %v2910_v50 = vpop.f32.mrb[44].mxu1 }
 0x3d8   :  { %v12913_v20 = vadd.f32 %v2910_v50, %v12750_v5  ;;  %v2912_v40 = vpop.f32.mrb[45].mxu1  ;;  %v10861_v5 = vld [vmem:[%s14853_s2 + $0x3e0] ss:$12 sps:$4 sm:$0xff]  }
 0x3d9   :  { %v2913_v3 = vpop.f32.mrb[46].mxu1  ;;  %4014 = vmatpush1.bf16.msra.mxu1 %v10859_v10  ;;  %v10864_v40 = vld [vmem:[%s14853_s2 + $0x428] ss:$12 sps:$4 sm:$0xff]  }
 0x3da   :  { %v12919_v11 = vadd.f32 %v2913_v3, %v12752_v39  ;;  %v2915_v63 = vpop.f32.mrb[47].mxu1  ;;  %4015 = vmatprep.subr.bf16.mxu1 %v14889_v62 }
 0x3dc   :  { %3979 = vmatmul.mubr.bf16.gmra.mrb[8].mxu1 %v12459_v24 }
 0x3dd   :  { %9206 = vmatprep.mubr.msk.bf16.mxu1 %vm2467_vm3, %v12483_v35  ;;  %4016 = vmatpush1.bf16.msra.mxu1 %v10860_v0 }
 0x3de   :  { %4017 = vmatprep.subr.bf16.mxu1 %v14889_v62 }
 0x3df   :  { %v2918_v26 = vpop.f32.mrb[48].mxu1 }
 0x3e0   :  { %v12931_v39 = vadd.f32 %v2918_v26, %v12770_v12  ;;  %v2920_v61 = vpop.f32.mrb[49].mxu1  ;;  %v2156_v12 = vmax.f32 %v12486_v55, 0.0  ;;  %v10867_v55 = vld [vmem:[%s14853_s2 + $0x43c] ss:$12 sps:$4 sm:$0xff]   ;;  %v10865_v26 = vld [vmem:[%s14853_s2 + $0x438] ss:$12 sps:$4 sm:$0xff]  }
 0x3e1   :  { %v2921_v30 = vpop.f32.mrb[50].mxu1  ;;  %4018 = vmatpush1.bf16.msra.mxu1 %v10861_v5 }
 0x3e2   :  { %v12937_v25 = vadd.f32 %v2921_v30, %v12772_v16  ;;  %v2923_v57 = vpop.f32.mrb[51].mxu1  ;;  %4019 = vmatprep.subr.bf16.mxu1 %v14889_v62  ;;  %v3728_v3 = vpack.c.bf16 %v2156_v12, %v2156_v12 }
 0x3e4   :  { %3989 = vmatmul.mubr.bf16.gmra.mrb[12].mxu1 %v12478_v32 }
 0x3e5   :  { %9207 = vmatprep.mubr.msk.bf16.mxu1 %vm2467_vm3, %v12940_v34  ;;  %4020 = vmatpush1.bf16.msra.mxu1 %v10862_v60 }
 0x3e6   :  { %4021 = vmatprep.subr.bf16.mxu1 %v14889_v62 }
 0x3e7   :  { %v2926_v16 = vpop.f32.mrb[52].mxu1 }
 0x3e8   :  { %v12951_v33 = vadd.f32 %v2926_v16, %v12792_v13  ;;  %v2928_v10 = vpop.f32.mrb[53].mxu1  ;;  %v10876_v16 = vld [vmem:[%s14853_s2 + $0x484] ss:$12 sps:$4 sm:$0xff]  }
 0x3e9   :  { %v2929_v50 = vpop.f32.mrb[54].mxu1  ;;  %4022 = vmatpush1.bf16.msra.mxu1 %v10863_v37  ;;  %v10879_v10 = vld [vmem:[%s14853_s2 + $0x49c] ss:$12 sps:$4 sm:$0xff]  }
 0x3ea   :  { %v12957_v0 = vadd.f32 %v2929_v50, %v12794_v46  ;;  %v2931_v63 = vpop.f32.mrb[55].mxu1  ;;  %4023 = vmatprep.subr.bf16.mxu1 %v14889_v62  ;;  %v10877_v50 = vld [vmem:[%s14853_s2 + $0x498] ss:$12 sps:$4 sm:$0xff]  }
 0x3eb   :  { %v10883_v63 = vld [vmem:[%s14853_s2 + $0x4c8] ss:$12 sps:$4 sm:$0xff]  }
 0x3ec   :  { %3999 = vmatmul.mubr.bf16.gmra.mrb[112].mxu1 %v3728_v3 }
 0x3ed   :  { %9208 = vmatprep.mubr.msk.bf16.mxu1 %vm2467_vm3, %v12430_v22  ;;  %4024 = vmatpush1.bf16.msra.mxu1 %v10864_v40  ;;  %v10870_v22 = vld [vmem:[%s14853_s2 + $0x454] ss:$12 sps:$4 sm:$0xff]   ;;  %v10885_v40 = vld [vmem:[%s14853_s2 + $0x4cc] ss:$12 sps:$4 sm:$0xff]  }
 0x3ee   :  { %4312 = vmatprep.subr.bf16.mxu1 %v10867_v55  ;;  %v10891_v55 = vld [vmem:[%s14853_s2 + $0x4fc] ss:$12 sps:$4 sm:$0xff]  }
 0x3ef   :  { %v2934_v13 = vpop.f32.mrb[56].mxu1 }
 0x3f0   :  { %v12966_v5 = vadd.f32 %v2934_v13, %v12813_v36  ;;  %v2936_v41 = vpop.f32.mrb[57].mxu1  ;;  %v10868_v36 = vld [vmem:[%s14853_s2 + $0x450] ss:$12 sps:$4 sm:$0xff]   ;;  %v10889_v13 = vld [vmem:[%s14853_s2 + $0x4f8] ss:$12 sps:$4 sm:$0xff]  }
 0x3f1   :  { %v2937_v46 = vpop.f32.mrb[58].mxu1 }
 0x3f2   :  { %v12972_v61 = vadd.f32 %v2937_v46, %v12815_v27  ;;  %v2939_v30 = vpop.f32.mrb[59].mxu1  ;;  %v10873_v27 = vld [vmem:[%s14853_s2 + $0x46c] ss:$12 sps:$4 sm:$0xff]  }
 0x3f4   :  { %4040 = vmatmul.mubr.bf16.vlgmr.msra.gmra.mrb[116].mxu1 %v12425_v59  ;;  %v10871_v59 = vld [vmem:[%s14853_s2 + $0x468] ss:$12 sps:$4 sm:$0xff]  }
 0x3f5   :  { %9209 = vmatprep.mubr.msk.bf16.mxu1 %vm2467_vm3, %v12451_v52  ;;  %4313 = vmatpush1.bf16.msra.mxu1 %v10865_v26 }
 0x3f6   :  { %4314 = vmatprep.subr.bf16.mxu1 %v10870_v22  ;;  %v10894_v22 = vld [vmem:[%s14853_s2 + $0x470] ss:$12 sps:$4 sm:$0xff]  }
 0x3f7   :  { %v2942_v60 = vpop.f32.mrb[60].mxu1 }
 0x3f8   :  { %v12987_v57 = vadd.f32 %v2942_v60, %v12832_v4  ;;  %v2944_v37 = vpop.f32.mrb[61].mxu1  ;;  %v10874_v4 = vld [vmem:[%s14853_s2 + $0x480] ss:$12 sps:$4 sm:$0xff]  }
 0x3f9   :  { %v2945_v12 = vpop.f32.mrb[62].mxu1  ;;  %4315 = vmatpush1.bf16.msra.mxu1 %v10868_v36 }
 0x3fa   :  { %v2946_v52 = vpop.f32.mrb[63].mxu1  ;;  %4316 = vmatprep.subr.bf16.mxu1 %v10873_v27  ;;  %v10896_v12 = vld [vmem:[%s14853_s2 + $0x4a0] ss:$12 sps:$4 sm:$0xff]  }
 0x3fc   :  { %4048 = vmatmul.mubr.bf16.gmra.mrb[120].mxu1 %v12445_v47  ;;  %v10882_v47 = vld [vmem:[%s14853_s2 + $0x4b4] ss:$12 sps:$4 sm:$0xff]  }
 0x3fd   :  { %9210 = vmatprep.mubr.msk.bf16.mxu1 %vm2467_vm3, %v12464_v58  ;;  %4317 = vmatpush1.bf16.msra.mxu1 %v10871_v59  ;;  %v10880_v58 = vld [vmem:[%s14853_s2 + $0x4b0] ss:$12 sps:$4 sm:$0xff]  }
 0x3fe   :  { %4318 = vmatprep.subr.bf16.mxu1 %v10876_v16  ;;  %v2175_v16 = vmax.f32 %v12561_v15, 0.0  ;;  %v10899_v15 = vld [vmem:[%s14853_s2 + $0x4e8] ss:$12 sps:$4 sm:$0xff]  }
 0x401   :  { %4319 = vmatpush1.bf16.msra.mxu1 %v10874_v4 }
 0x402   :  { %4320 = vmatprep.subr.bf16.mxu1 %v10879_v10 }
 0x404   :  { %4056 = vmatmul.mubr.bf16.gmra.mrb[124].mxu1 %v12459_v24  ;;  %v10888_v24 = vld [vmem:[%s14853_s2 + $0x4e4] ss:$12 sps:$4 sm:$0xff]  }
 0x405   :  { %9211 = vmatprep.mubr.msk.bf16.mxu1 %vm2467_vm3, %v12483_v35  ;;  %4321 = vmatpush1.bf16.msra.mxu1 %v10877_v50  ;;  %v10886_v35 = vld [vmem:[%s14853_s2 + $0x4e0] ss:$12 sps:$4 sm:$0xff]  }
 0x406   :  { %4322 = vmatprep.subr.bf16.mxu1 %v10882_v47  ;;  %v10898_v47 = vld [vmem:[%s14853_s2 + $0x4d0] ss:$12 sps:$4 sm:$0xff]  }
 0x409   :  { %4323 = vmatpush1.bf16.msra.mxu1 %v10880_v58 }
 0x40a   :  { %4324 = vmatprep.subr.bf16.mxu1 %v10885_v40 }
 0x40c   :  { %4064 = vmatmul.mubr.bf16.gmra.mrb[128].mxu1 %v12478_v32  ;;  %v10892_v32 = vld [vmem:[%s14853_s2 + $0x440] ss:$12 sps:$4 sm:$0xff]  }
 0x40d   :  { %9212 = vmatprep.mubr.msk.bf16.mxu1 %vm2467_vm3, %v12940_v34  ;;  %4325 = vmatpush1.bf16.msra.mxu1 %v10883_v63  ;;  %v10893_v34 = vld [vmem:[%s14853_s2 + $0x458] ss:$12 sps:$4 sm:$0xff]   ;;  %v13095_v63 = vpack.c.bf16 %v2175_v16, %v2175_v16  ;;  %v10912_v16 = vld [vmem:[%s14853_s2 + $0x55c] ss:$12 sps:$4 sm:$0xff]  }
 0x40e   :  { %4326 = vmatprep.subr.bf16.mxu1 %v10888_v24 }
 0x411   :  { %4327 = vmatpush1.bf16.msra.mxu1 %v10886_v35 }
 0x412   :  { %4328 = vmatprep.subr.bf16.mxu1 %v10891_v55 }
 0x414   :  { %4072 = vmatmul.mubr.bf16.gmra.mrb[132].mxu1 %v3728_v3 }
 0x415   :  { %9276 = vmatprep.mubr.msk.bf16.mxu1 %vm2467_vm3, %v12515_v28  ;;  %4329 = vmatpush1.bf16.msra.mxu1 %v10889_v13  ;;  %v10900_v13 = vld [vmem:[%s14853_s2 + $0x500] ss:$12 sps:$4 sm:$0xff]  }
 0x416   :  { %4393 = vmatprep.subr.bf16.mxu1 %v14889_v62 }
 0x41c   :  { %4345 = vmatmul.mubr.bf16.vlgmr.msra.gmra.mrb[0].mxu1 %v12513_v7 }
 0x41d   :  { %9277 = vmatprep.mubr.msk.bf16.mxu1 %vm2467_vm3, %v12534_v19  ;;  %4394 = vmatpush1.bf16.msra.mxu1 %v10892_v32 }
 0x41e   :  { %4395 = vmatprep.subr.bf16.mxu1 %v14889_v62 }
 0x41f   :  { %v3228_v3 = vpop.f32.mrb[64].mxu1 }
 0x420   :  { %v13051_v41 = vadd.f32 %v3228_v3, %v12896_v8  ;;  %v3230_v46 = vpop.f32.mrb[65].mxu1  ;;  %v10895_v8 = vld [vmem:[%s14853_s2 + $0x488] ss:$12 sps:$4 sm:$0xff]  }
 0x421   :  { %v13054_v26 = vadd.f32 %v3230_v46, %v12899_v21  ;;  %v3232_v30 = vpop.f32.mrb[66].mxu1  ;;  %4396 = vmatpush1.bf16.msra.mxu1 %v10893_v34 }
 0x422   :  { %v3233_v36 = vpop.f32.mrb[67].mxu1  ;;  %4397 = vmatprep.subr.bf16.mxu1 %v14889_v62 }
 0x424   :  { %4355 = vmatmul.mubr.bf16.gmra.mrb[4].mxu1 %v12532_v6 }
 0x425   :  { %9278 = vmatprep.mubr.msk.bf16.mxu1 %vm2467_vm3, %v12545_v56  ;;  %4398 = vmatpush1.bf16.msra.mxu1 %v10894_v22  ;;  %v10901_v22 = vld [vmem:[%s14853_s2 + $0x510] ss:$12 sps:$4 sm:$0xff]  }
 0x426   :  { %4399 = vmatprep.subr.bf16.mxu1 %v14889_v62 }
 0x427   :  { %v3269_v21 = vpop.f32.mrb[68].mxu1 }
 0x428   :  { %v13068_v27 = vadd.f32 %v3269_v21, %v12913_v20  ;;  %v3271_v60 = vpop.f32.mrb[69].mxu1  ;;  %v10897_v20 = vld [vmem:[%s14853_s2 + $0x4b8] ss:$12 sps:$4 sm:$0xff]   ;;  %v10904_v21 = vld [vmem:[%s14853_s2 + $0x528] ss:$12 sps:$4 sm:$0xff]  }
 0x429   :  { %v3272_v37 = vpop.f32.mrb[70].mxu1  ;;  %4400 = vmatpush1.bf16.msra.mxu1 %v10895_v8  ;;  %v10909_v60 = vld [vmem:[%s14853_s2 + $0x544] ss:$12 sps:$4 sm:$0xff]  }
 0x42a   :  { %v13074_v59 = vadd.f32 %v3272_v37, %v12919_v11  ;;  %v3274_v52 = vpop.f32.mrb[71].mxu1  ;;  %4401 = vmatprep.subr.bf16.mxu1 %v14889_v62 }
 0x42c   :  { %4365 = vmatmul.mubr.bf16.gmra.mrb[8].mxu1 %v12543_v54 }
 0x42d   :  { %9279 = vmatprep.mubr.msk.bf16.mxu1 %vm2467_vm3, %v12563_v18  ;;  %4402 = vmatpush1.bf16.msra.mxu1 %v10896_v12  ;;  %v10907_v12 = vld [vmem:[%s14853_s2 + $0x540] ss:$12 sps:$4 sm:$0xff]  }
 0x42e   :  { %4403 = vmatprep.subr.bf16.mxu1 %v14889_v62 }
 0x42f   :  { %v3277_v4 = vpop.f32.mrb[72].mxu1 }
 0x430   :  { %v13086_v11 = vadd.f32 %v3277_v4, %v12931_v39  ;;  %v3279_v10 = vpop.f32.mrb[73].mxu1  ;;  %v2174_v39 = vmax.f32 %v12557_v42, 0.0  ;;  %v10903_v42 = vld [vmem:[%s14853_s2 + $0x514] ss:$12 sps:$4 sm:$0xff]   ;;  %v10910_v4 = vld [vmem:[%s14853_s2 + $0x558] ss:$12 sps:$4 sm:$0xff]  }
 0x431   :  { %v3280_v50 = vpop.f32.mrb[74].mxu1  ;;  %4404 = vmatpush1.bf16.msra.mxu1 %v10897_v20  ;;  %v10913_v10 = vld [vmem:[%s14853_s2 + $0x570] ss:$12 sps:$4 sm:$0xff]  }
 0x432   :  { %v13092_v58 = vadd.f32 %v3280_v50, %v12937_v25  ;;  %v3282_v40 = vpop.f32.mrb[75].mxu1  ;;  %4405 = vmatprep.subr.bf16.mxu1 %v14889_v62  ;;  %v13111_v32 = vpack.c.bf16 %v2174_v39, %v2174_v39  ;;  %v10918_v50 = vld [vmem:[%s14853_s2 + $0x58c] ss:$12 sps:$4 sm:$0xff]   ;;  %v10927_v39 = vld [vmem:[%s14853_s2 + $0x5d4] ss:$12 sps:$4 sm:$0xff]  }
 0x433   :  { %v10924_v40 = vld [vmem:[%s14853_s2 + $0x5bc] ss:$12 sps:$4 sm:$0xff]  }
 0x434   :  { %4375 = vmatmul.mubr.bf16.gmra.mrb[12].mxu1 %v12559_v14 }
 0x435   :  { %9280 = vmatprep.mubr.msk.bf16.mxu1 %vm2467_vm3, %v13095_v63  ;;  %4406 = vmatpush1.bf16.msra.mxu1 %v10898_v47  ;;  %v10919_v47 = vld [vmem:[%s14853_s2 + $0x5a0] ss:$12 sps:$4 sm:$0xff]  }
 0x436   :  { %4407 = vmatprep.subr.bf16.mxu1 %v14889_v62 }
 0x437   :  { %v3285_v25 = vpop.f32.mrb[76].mxu1 }
 0x438   :  { %v13106_v24 = vadd.f32 %v3285_v25, %v12951_v33  ;;  %v3287_v35 = vpop.f32.mrb[77].mxu1  ;;  %v10925_v25 = vld [vmem:[%s14853_s2 + $0x5d0] ss:$12 sps:$4 sm:$0xff]  }
 0x439   :  { %v3288_v55 = vpop.f32.mrb[78].mxu1  ;;  %4408 = vmatpush1.bf16.msra.mxu1 %v10899_v15  ;;  %v10975_v15 = vld [vmem:[%s14854_s4 + $0x134] ss:$8 sps:$4 sm:$0xff]   ;;  %v10987_v35 = vld [vmem:[%s14854_s4 + $0x144] ss:$8 sps:$4 sm:$0xff]  }
 0x43a   :  { %v13114_v34 = vadd.f32 %v3288_v55, %v12957_v0  ;;  %v3290_v3 = vpop.f32.mrb[79].mxu1  ;;  %4409 = vmatprep.subr.bf16.mxu1 %v14889_v62  ;;  %v10929_v55 = vld [vmem:[%s14853_s2 + $0x530] ss:$12 sps:$4 sm:$0xff]  }
 0x43c   :  { %4385 = vmatmul.mubr.bf16.gmra.mrb[136].mxu1 %v13111_v32 }
 0x43d   :  { %9281 = vmatprep.mubr.msk.bf16.mxu1 %vm2467_vm3, %v12515_v28  ;;  %4410 = vmatpush1.bf16.msra.mxu1 %v10900_v13  ;;  %v10906_v28 = vld [vmem:[%s14853_s2 + $0x52c] ss:$12 sps:$4 sm:$0xff]  }
 0x43e   :  { %4698 = vmatprep.subr.bf16.mxu1 %v10903_v42 }
 0x43f   :  { %v3293_v33 = vpop.f32.mrb[80].mxu1 }
 0x440   :  { %v13124_v46 = vadd.f32 %v3293_v33, %v12966_v5  ;;  %v3295_v0 = vpop.f32.mrb[81].mxu1  ;;  %v10966_v5 = vld [vmem:[%s14854_s4 + $0x120] ss:$8 sps:$4 sm:$0xff]  }
 0x441   :  { %v3296_v30 = vpop.f32.mrb[82].mxu1 }
 0x442   :  { %v13130_v36 = vadd.f32 %v3296_v30, %v12972_v61  ;;  %v3298_v8 = vpop.f32.mrb[83].mxu1  ;;  %v10968_v61 = vld [vmem:[%s14854_s4 + $0x124] ss:$8 sps:$4 sm:$0xff]  }
 0x443   :  { %5984 = vmatprep.subr.bf16.mxu0 %v10968_v61 }
 0x444   :  { %4426 = vmatmul.mubr.bf16.vlgmr.msra.gmra.mrb[140].mxu1 %v12513_v7  ;;  %5985 = vmatpush1.bf16.msra.mxu0 %v10966_v5 }
 0x445   :  { %9282 = vmatprep.mubr.msk.bf16.mxu1 %vm2467_vm3, %v12534_v19  ;;  %4699 = vmatpush1.bf16.msra.mxu1 %v10901_v22 }
 0x446   :  { %4700 = vmatprep.subr.bf16.mxu1 %v10906_v28  ;;  %5986 = vmatprep.subr.bf16.mxu0 %v10975_v15 }
 0x447   :  { %v3301_v37 = vpop.f32.mrb[84].mxu1 }
 0x448   :  { %v13154_v7 = vadd.f32 %v3301_v37, %v12987_v57  ;;  %v3303_v52 = vpop.f32.mrb[85].mxu1  ;;  %v10915_v57 = vld [vmem:[%s14853_s2 + $0x574] ss:$12 sps:$4 sm:$0xff]   ;;  %v2193_v37 = vmax.f32 %v12644_v53, 0.0 }
 0x449   :  { %v3304_v20 = vpop.f32.mrb[86].mxu1  ;;  %4701 = vmatpush1.bf16.msra.mxu1 %v10904_v21  ;;  %v10934_v52 = vld [vmem:[%s14853_s2 + $0x5a8] ss:$12 sps:$4 sm:$0xff]  }
 0x44a   :  { %v3305_v19 = vpop.f32.mrb[87].mxu1  ;;  %4702 = vmatprep.subr.bf16.mxu1 %v10909_v60  ;;  %v11003_v60 = vld [vmem:[%s14854_s4 + $0x150] ss:$8 sps:$4 sm:$0xff]   ;;  %v13278_v53 = vpack.c.bf16 %v2193_v37, %v2193_v37  ;;  %v14891_v37 = vld [vmem:[#allocation2_spill] sm:$0xff] }
 0x44c   :  { %4434 = vmatmul.mubr.bf16.gmra.mrb[144].mxu1 %v12532_v6  ;;  %v10916_v6 = vld [vmem:[%s14853_s2 + $0x588] ss:$12 sps:$4 sm:$0xff]  }
 0x44d   :  { %9283 = vmatprep.mubr.msk.bf16.mxu1 %vm2467_vm3, %v12545_v56  ;;  %4703 = vmatpush1.bf16.msra.mxu1 %v10907_v12  ;;  %v10921_v56 = vld [vmem:[%s14853_s2 + $0x5a4] ss:$12 sps:$4 sm:$0xff]  }
 0x44e   :  { %4704 = vmatprep.subr.bf16.mxu1 %v10912_v16 }
 0x451   :  { %4705 = vmatpush1.bf16.msra.mxu1 %v10910_v4 }
 0x452   :  { %4706 = vmatprep.subr.bf16.mxu1 %v10915_v57 }
 0x454   :  { %4442 = vmatmul.mubr.bf16.gmra.mrb[148].mxu1 %v12543_v54  ;;  %v10973_v54 = vld [vmem:[%s14854_s4 + $0x130] ss:$8 sps:$4 sm:$0xff]  }
 0x455   :  { %9284 = vmatprep.mubr.msk.bf16.mxu1 %vm2467_vm3, %v12563_v18  ;;  %4707 = vmatpush1.bf16.msra.mxu1 %v10913_v10  ;;  %v10922_v18 = vld [vmem:[%s14853_s2 + $0x5b8] ss:$12 sps:$4 sm:$0xff]   ;;  %v2192_v10 = vmax.f32 %v12637_v29, 0.0 }
 0x456   :  { %4708 = vmatprep.subr.bf16.mxu1 %v10918_v50  ;;  %5987 = vmatpush1.bf16.msra.mxu0 %v10973_v54  ;;  %v10936_v50 = vld [vmem:[%s14853_s2 + $0x5d8] ss:$12 sps:$4 sm:$0xff]  }
 0x457   :  { %5988 = vmatprep.subr.bf16.mxu0 %v10987_v35  ;;  %v13297_v54 = vpack.c.bf16 %v2192_v10, %v2192_v10  ;;  %v10940_v35 = vld [vmem:[%s14853_s2 + $0x600] ss:$12 sps:$4 sm:$0xff]  }
 0x459   :  { %4709 = vmatpush1.bf16.msra.mxu1 %v10916_v6 }
 0x45a   :  { %4710 = vmatprep.subr.bf16.mxu1 %v10921_v56 }
 0x45c   :  { %4450 = vmatmul.mubr.bf16.gmra.mrb[152].mxu1 %v12559_v14  ;;  %v10928_v14 = vld [vmem:[%s14853_s2 + $0x518] ss:$12 sps:$4 sm:$0xff]  }
 0x45d   :  { %9285 = vmatprep.mubr.msk.bf16.mxu1 %vm2467_vm3, %v13095_v63  ;;  %4711 = vmatpush1.bf16.msra.mxu1 %v10919_v47  ;;  %v10985_v63 = vld [vmem:[%s14854_s4 + $0x140] ss:$8 sps:$4 sm:$0xff]   ;;  %v10939_v47 = vld [vmem:[%s14853_s2 + $0x5ec] ss:$12 sps:$4 sm:$0xff]  }
 0x45e   :  { %4712 = vmatprep.subr.bf16.mxu1 %v10924_v40  ;;  %5989 = vmatpush1.bf16.msra.mxu0 %v10985_v63 }
 0x461   :  { %4713 = vmatpush1.bf16.msra.mxu1 %v10922_v18  ;;  %v10937_v18 = vld [vmem:[%s14853_s2 + $0x5e8] ss:$12 sps:$4 sm:$0xff]  }
 0x462   :  { %4714 = vmatprep.subr.bf16.mxu1 %v10927_v39 }
 0x464   :  { %4458 = vmatmul.mubr.bf16.gmra.mrb[156].mxu1 %v13111_v32  ;;  %v10930_v32 = vld [vmem:[%s14853_s2 + $0x548] ss:$12 sps:$4 sm:$0xff]  }
 0x465   :  { %9349 = vmatprep.mubr.msk.bf16.mxu1 %vm2467_vm3, %v12582_v9  ;;  %4715 = vmatpush1.bf16.msra.mxu1 %v10925_v25 }
 0x466   :  { %4779 = vmatprep.subr.bf16.mxu1 %v14889_v62 }
 0x46c   :  { %4731 = vmatmul.mubr.bf16.vlgmr.msra.gmra.mrb[0].mxu1 %v12579_v17 }
 0x46d   :  { %9350 = vmatprep.mubr.msk.bf16.mxu1 %vm2467_vm3, %v12600_v31  ;;  %4780 = vmatpush1.bf16.msra.mxu1 %v10928_v14 }
 0x46e   :  { %4781 = vmatprep.subr.bf16.mxu1 %v14889_v62 }
 0x46f   :  { %v3614_v13 = vpop.f32.mrb[88].mxu1 }
 0x470   :  { %v13231_v3 = vadd.f32 %v3614_v13, %v13051_v41  ;;  %v3616_v42 = vpop.f32.mrb[89].mxu1  ;;  %v10931_v41 = vld [vmem:[%s14853_s2 + $0x560] ss:$12 sps:$4 sm:$0xff]  }
 0x471   :  { %v13234_v33 = vadd.f32 %v3616_v42, %v13054_v26  ;;  %v3618_v0 = vpop.f32.mrb[90].mxu1  ;;  %4782 = vmatpush1.bf16.msra.mxu1 %v10929_v55  ;;  %v10932_v26 = vld [vmem:[%s14853_s2 + $0x578] ss:$12 sps:$4 sm:$0xff]   ;;  %v10945_v55 = vld [vmem:[%s14853_s2 + $0x61c] ss:$12 sps:$4 sm:$0xff]  }
 0x472   :  { %v3619_v30 = vpop.f32.mrb[91].mxu1  ;;  %4783 = vmatprep.subr.bf16.mxu1 %v14889_v62 }
 0x473   :  { %v10948_v30 = vld [vmem:[%s14853_s2 + $0x634] ss:$12 sps:$4 sm:$0xff]  }
 0x474   :  { %4741 = vmatmul.mubr.bf16.gmra.mrb[4].mxu1 %v12595_v48 }
 0x475   :  { %9351 = vmatprep.mubr.msk.bf16.mxu1 %vm2467_vm3, %v12621_v44  ;;  %4784 = vmatpush1.bf16.msra.mxu1 %v10930_v32 }
 0x476   :  { %4785 = vmatprep.subr.bf16.mxu1 %v14889_v62 }
 0x477   :  { %v3655_v22 = vpop.f32.mrb[92].mxu1 }
 0x478   :  { %v13248_v8 = vadd.f32 %v3655_v22, %v13068_v27  ;;  %v3657_v28 = vpop.f32.mrb[93].mxu1  ;;  %v10933_v27 = vld [vmem:[%s14853_s2 + $0x590] ss:$12 sps:$4 sm:$0xff]   ;;  %v10949_v22 = vld [vmem:[%s14853_s2 + $0x648] ss:$12 sps:$4 sm:$0xff]  }
 0x479   :  { %v3658_v21 = vpop.f32.mrb[94].mxu1  ;;  %4786 = vmatpush1.bf16.msra.mxu1 %v10931_v41  ;;  %v10946_v41 = vld [vmem:[%s14853_s2 + $0x630] ss:$12 sps:$4 sm:$0xff]   ;;  %v10955_v28 = vld [vmem:[%s14853_s2 + $0x678] ss:$12 sps:$4 sm:$0xff]  }
 0x47a   :  { %v13251_v5 = vadd.f32 %v3658_v21, %v13074_v59  ;;  %v3660_v61 = vpop.f32.mrb[95].mxu1  ;;  %4787 = vmatprep.subr.bf16.mxu1 %v14889_v62  ;;  %v11005_v59 = vld [vmem:[%s14854_s4 + $0x154] ss:$8 sps:$4 sm:$0xff]  }
 0x47b   :  { %5990 = vmatprep.subr.bf16.mxu0 %v11005_v59  ;;  %v10960_v21 = vld [vmem:[%s14853_s2 + $0x694] ss:$12 sps:$4 sm:$0xff]   ;;  %v10958_v61 = vld [vmem:[%s14853_s2 + $0x690] ss:$12 sps:$4 sm:$0xff]  }
 0x47c   :  { %4751 = vmatmul.mubr.bf16.gmra.mrb[8].mxu1 %v12615_v1  ;;  %5991 = vmatpush1.bf16.msra.mxu0 %v11003_v60  ;;  %v10961_v60 = vld [vmem:[%s14853_s2 + $0x6a8] ss:$12 sps:$4 sm:$0xff]  }
 0x47d   :  { %9352 = vmatprep.mubr.msk.bf16.mxu1 %vm2467_vm3, %v12634_v51  ;;  %4788 = vmatpush1.bf16.msra.mxu1 %v10932_v26  ;;  %v10954_v26 = vld [vmem:[%s14853_s2 + $0x664] ss:$12 sps:$4 sm:$0xff]   ;;  %v10965_v59 = vld [vmem:[%s14853_s2 + $0x608] ss:$12 sps:$4 sm:$0xff]  }
 0x47e   :  { %4789 = vmatprep.subr.bf16.mxu1 %v14889_v62 }
 0x47f   :  { %v3663_v12 = vpop.f32.mrb[96].mxu1 }
 0x480   :  { %v13272_v20 = vadd.f32 %v3663_v12, %v13086_v11  ;;  %v3665_v19 = vpop.f32.mrb[97].mxu1  ;;  %v10935_v11 = vld [vmem:[%s14853_s2 + $0x5c0] ss:$12 sps:$4 sm:$0xff]   ;;  %v14892_v12 = vld [vmem:[#allocation4_spill] sm:$0xff] }
 0x481   :  { %v3666_v16 = vpop.f32.mrb[98].mxu1  ;;  %4790 = vmatpush1.bf16.msra.mxu1 %v10933_v27  ;;  %v10963_v27 = vld [vmem:[%s14853_s2 + $0x6ac] ss:$12 sps:$4 sm:$0xff]  }
 0x482   :  { %v13275_v4 = vadd.f32 %v3666_v16, %v13092_v58  ;;  %v3668_v57 = vpop.f32.mrb[99].mxu1  ;;  %4791 = vmatprep.subr.bf16.mxu1 %v14889_v62  ;;  %v11029_v19 = vld [vmem:[%s14854_s4 + $0x184] ss:$8 sps:$4 sm:$0xff]  }
 0x484   :  { %4761 = vmatmul.mubr.bf16.gmra.mrb[12].mxu1 %v12629_v38 }
 0x485   :  { %9353 = vmatprep.mubr.msk.bf16.mxu1 %vm2467_vm3, %v13278_v53  ;;  %4792 = vmatpush1.bf16.msra.mxu1 %v10934_v52  ;;  %v11027_v52 = vld [vmem:[%s14854_s4 + $0x180] ss:$8 sps:$4 sm:$0xff]  }
 0x486   :  { %4793 = vmatprep.subr.bf16.mxu1 %v14889_v62 }
 0x487   :  { %v3671_v58 = vpop.f32.mrb[100].mxu1 }
 0x488   :  { %v13292_v6 = vadd.f32 %v3671_v58, %v13106_v24  ;;  %v3673_v56 = vpop.f32.mrb[101].mxu1  ;;  %v10969_v58 = vld [vmem:[%s14853_s2 + $0x620] ss:$12 sps:$4 sm:$0xff]  }
 0x489   :  { %v3674_v40 = vpop.f32.mrb[102].mxu1  ;;  %4794 = vmatpush1.bf16.msra.mxu1 %v10935_v11  ;;  %v14893_v56 = vld [vmem:[#allocation3_spill] sm:$0xff] }
 0x48a   :  { %v13300_v29 = vadd.f32 %v3674_v40, %v13114_v34  ;;  %v3676_v15 = vpop.f32.mrb[103].mxu1  ;;  %4795 = vmatprep.subr.bf16.mxu1 %v14889_v62 }
 0x48c   :  { %4771 = vmatmul.mubr.bf16.gmra.mrb[160].mxu1 %v13297_v54 }
 0x48d   :  { %9354 = vmatprep.mubr.msk.bf16.mxu1 %vm2467_vm3, %v12582_v9  ;;  %4796 = vmatpush1.bf16.msra.mxu1 %v10936_v50  ;;  %v10942_v9 = vld [vmem:[%s14853_s2 + $0x604] ss:$12 sps:$4 sm:$0xff]  }
 0x48e   :  { %5084 = vmatprep.subr.bf16.mxu1 %v10939_v47  ;;  %v14894_v47 = vld [vmem:[#allocation6_spill] sm:$0xff] }
 0x48f   :  { %v3679_v24 = vpop.f32.mrb[104].mxu1 }
 0x490   :  { %v13310_v39 = vadd.f32 %v3679_v24, %v13124_v46  ;;  %v3681_v34 = vpop.f32.mrb[105].mxu1  ;;  %v11014_v46 = vld [vmem:[%s14854_s4 + $0x160] ss:$8 sps:$4 sm:$0xff]   ;;  %v10971_v24 = vld [vmem:[%s14853_s2 + $0x650] ss:$12 sps:$4 sm:$0xff]  }
 0x491   :  { %v3682_v25 = vpop.f32.mrb[106].mxu1 }
 0x492   :  { %v13313_v14 = vadd.f32 %v3682_v25, %v13130_v36  ;;  %v3684_v63 = vpop.f32.mrb[107].mxu1  ;;  %v11016_v36 = vld [vmem:[%s14854_s4 + $0x164] ss:$8 sps:$4 sm:$0xff]   ;;  %v14895_v25 = vld [vmem:[#allocation5_spill] sm:$0xff] }
 0x493   :  { %5992 = vmatprep.subr.bf16.mxu0 %v11016_v36  ;;  %v14896_v63 = vld [vmem:[#allocation10_spill] sm:$0xff] }
 0x494   :  { %4812 = vmatmul.mubr.bf16.vlgmr.msra.gmra.mrb[164].mxu1 %v12579_v17  ;;  %v10943_v17 = vld [vmem:[%s14853_s2 + $0x618] ss:$12 sps:$4 sm:$0xff]   ;;  %5993 = vmatpush1.bf16.msra.mxu0 %v11014_v46 }
 0x495   :  { %9355 = vmatprep.mubr.msk.bf16.mxu1 %vm2467_vm3, %v12600_v31  ;;  %5085 = vmatpush1.bf16.msra.mxu1 %v10937_v18 }
 0x496   :  { %5086 = vmatprep.subr.bf16.mxu1 %v10942_v9  ;;  %v11030_v9 = vld [vmem:[%s14854_s4 + $0x190] ss:$8 sps:$4 sm:$0xff]  }
 0x497   :  { %v3687_v13 = vpop.f32.mrb[108].mxu1 }
 0x498   :  { %v13337_v32 = vadd.f32 %v3687_v13, %v13154_v7  ;;  %v3689_v42 = vpop.f32.mrb[109].mxu1  ;;  %v10951_v7 = vld [vmem:[%s14853_s2 + $0x64c] ss:$12 sps:$4 sm:$0xff]  }
 0x499   :  { %v3690_v0 = vpop.f32.mrb[110].mxu1  ;;  %5087 = vmatpush1.bf16.msra.mxu1 %v10940_v35  ;;  %v14897_v35 = vld [vmem:[#allocation9_spill] sm:$0xff]  ;;  %v10976_v42 = vld [vmem:[%s14853_s2 + $0x680] ss:$12 sps:$4 sm:$0xff]  }
 0x49a   :  { %v3691_v31 = vpop.f32.mrb[111].mxu1  ;;  %5088 = vmatprep.subr.bf16.mxu1 %v10945_v55  ;;  %v2211_v46 = vmax.f32 %v14897_v35, 0.0  ;;  %v14900_v35 = vld [vmem:[#allocation12_spill] sm:$0xff] }
 0x49c   :  { %4820 = vmatmul.mubr.bf16.gmra.mrb[168].mxu1 %v12595_v48  ;;  %v10952_v48 = vld [vmem:[%s14853_s2 + $0x660] ss:$12 sps:$4 sm:$0xff]  }
 0x49d   :  { %9356 = vmatprep.mubr.msk.bf16.mxu1 %vm2467_vm3, %v12621_v44  ;;  %5089 = vmatpush1.bf16.msra.mxu1 %v10943_v17  ;;  %v10957_v44 = vld [vmem:[%s14853_s2 + $0x67c] ss:$12 sps:$4 sm:$0xff]  }
 0x49e   :  { %5090 = vmatprep.subr.bf16.mxu1 %v10948_v30  ;;  %v13461_v30 = vpack.c.bf16 %v2211_v46, %v2211_v46  ;;  %v11012_v46 = vld [vmem:[%s14853_s2 + $0x6c8] ss:$12 sps:$4 sm:$0xff]  }
 0x4a1   :  { %5091 = vmatpush1.bf16.msra.mxu1 %v10946_v41  ;;  %v14898_v41 = vld [vmem:[#allocation8_spill] sm:$0xff] }
 0x4a2   :  { %5092 = vmatprep.subr.bf16.mxu1 %v10951_v7  ;;  %v14899_v7 = vld [vmem:[#allocation7_spill] sm:$0xff] }
 0x4a4   :  { %4828 = vmatmul.mubr.bf16.gmra.mrb[172].mxu1 %v12615_v1  ;;  %v11022_v1 = vld [vmem:[%s14854_s4 + $0x170] ss:$8 sps:$4 sm:$0xff]  }
 0x4a5   :  { %9357 = vmatprep.mubr.msk.bf16.mxu1 %vm2467_vm3, %v12634_v51  ;;  %5093 = vmatpush1.bf16.msra.mxu1 %v10949_v22  ;;  %v11024_v51 = vld [vmem:[%s14854_s4 + $0x174] ss:$8 sps:$4 sm:$0xff]   ;;  %v2210_v22 = vmax.f32 %v14899_v7, 0.0 }
 0x4a6   :  { %5094 = vmatprep.subr.bf16.mxu1 %v10954_v26  ;;  %5994 = vmatprep.subr.bf16.mxu0 %v11024_v51 }
 0x4a7   :  { %5995 = vmatpush1.bf16.msra.mxu0 %v11022_v1 }
 0x4a8   :  { %5996 = vmatprep.subr.bf16.mxu0 %v11029_v19  ;;  %v11033_v19 = vld [vmem:[%s14854_s4 + $0x1a0] ss:$8 sps:$4 sm:$0xff]  }
 0x4a9   :  { %5095 = vmatpush1.bf16.msra.mxu1 %v10952_v48 }
 0x4aa   :  { %5096 = vmatprep.subr.bf16.mxu1 %v10957_v44 }
 0x4ab   :  { %5997 = vmatpush1.bf16.msra.mxu0 %v11027_v52 }
 0x4ac   :  { %4836 = vmatmul.mubr.bf16.gmra.mrb[176].mxu1 %v12629_v38  ;;  %v10964_v38 = vld [vmem:[%s14853_s2 + $0x5f0] ss:$12 sps:$4 sm:$0xff]  }
 0x4ad   :  { %9358 = vmatprep.mubr.msk.bf16.mxu1 %vm2467_vm3, %v13278_v53  ;;  %5097 = vmatpush1.bf16.msra.mxu1 %v10955_v28  ;;  %v10978_v28 = vld [vmem:[%s14853_s2 + $0x6b0] ss:$12 sps:$4 sm:$0xff]  }
 0x4ae   :  { %5098 = vmatprep.subr.bf16.mxu1 %v10960_v21  ;;  %v13477_v21 = vpack.c.bf16 %v2210_v22, %v2210_v22 }
 0x4b1   :  { %5099 = vmatpush1.bf16.msra.mxu1 %v10958_v61 }
 0x4b2   :  { %5100 = vmatprep.subr.bf16.mxu1 %v10963_v27 }
 0x4b4   :  { %4844 = vmatmul.mubr.bf16.gmra.mrb[180].mxu1 %v13297_v54 }
 0x4b5   :  { %9422 = vmatprep.mubr.msk.bf16.mxu1 %vm2467_vm3, %v12666_v23  ;;  %5101 = vmatpush1.bf16.msra.mxu1 %v10961_v60 }
 0x4b6   :  { %5165 = vmatprep.subr.bf16.mxu1 %v14889_v62 }
 0x4bc   :  { %5117 = vmatmul.mubr.bf16.vlgmr.msra.gmra.mrb[0].mxu1 %v14891_v37 }
 0x4bd   :  { %9423 = vmatprep.mubr.msk.bf16.mxu1 %vm2467_vm3, %v14892_v12  ;;  %5166 = vmatpush1.bf16.msra.mxu1 %v10964_v38  ;;  %v10979_v38 = vld [vmem:[%s14853_s2 + $0x6c0] ss:$12 sps:$4 sm:$0xff]  }
 0x4be   :  { %5167 = vmatprep.subr.bf16.mxu1 %v14889_v62 }
 0x4bf   :  { %v4000_v16 = vpop.f32.mrb[112].mxu1 }
 0x4c0   :  { %v13411_v57 = vadd.f32 %v4000_v16, %v13231_v3  ;;  %v4002_v53 = vpop.f32.mrb[113].mxu1  ;;  %v10970_v3 = vld [vmem:[%s14853_s2 + $0x638] ss:$12 sps:$4 sm:$0xff]   ;;  %v10990_v16 = vld [vmem:[%s14853_s2 + $0x6f4] ss:$12 sps:$4 sm:$0xff]  }
 0x4c1   :  { %v13414_v11 = vadd.f32 %v4002_v53, %v13234_v33  ;;  %v4004_v10 = vpop.f32.mrb[114].mxu1  ;;  %5168 = vmatpush1.bf16.msra.mxu1 %v10965_v59  ;;  %v10984_v59 = vld [vmem:[%s14853_s2 + $0x6dc] ss:$12 sps:$4 sm:$0xff]  }
 0x4c2   :  { %v4005_v50 = vpop.f32.mrb[115].mxu1  ;;  %5169 = vmatprep.subr.bf16.mxu1 %v14889_v62 }
 0x4c4   :  { %5127 = vmatmul.mubr.bf16.gmra.mrb[4].mxu1 %v14893_v56 }
 0x4c5   :  { %9424 = vmatprep.mubr.msk.bf16.mxu1 %vm2467_vm3, %v14894_v47  ;;  %5170 = vmatpush1.bf16.msra.mxu1 %v10969_v58 }
 0x4c6   :  { %5171 = vmatprep.subr.bf16.mxu1 %v14889_v62 }
 0x4c7   :  { %v4041_v33 = vpop.f32.mrb[116].mxu1 }
 0x4c8   :  { %v13428_v40 = vadd.f32 %v4041_v33, %v13248_v8  ;;  %v4043_v54 = vpop.f32.mrb[117].mxu1  ;;  %v10972_v8 = vld [vmem:[%s14853_s2 + $0x668] ss:$12 sps:$4 sm:$0xff]   ;;  %v10996_v33 = vld [vmem:[%s14853_s2 + $0x724] ss:$12 sps:$4 sm:$0xff]  }
 0x4c9   :  { %v4044_v15 = vpop.f32.mrb[118].mxu1  ;;  %5172 = vmatpush1.bf16.msra.mxu1 %v10970_v3  ;;  %v10993_v3 = vld [vmem:[%s14853_s2 + $0x70c] ss:$12 sps:$4 sm:$0xff]  }
 0x4ca   :  { %v13434_v18 = vadd.f32 %v4044_v15, %v13251_v5  ;;  %v4046_v34 = vpop.f32.mrb[119].mxu1  ;;  %5173 = vmatprep.subr.bf16.mxu1 %v14889_v62  ;;  %v11032_v5 = vld [vmem:[%s14854_s4 + $0x194] ss:$8 sps:$4 sm:$0xff]   ;;  %v10994_v54 = vld [vmem:[%s14853_s2 + $0x720] ss:$12 sps:$4 sm:$0xff]  }
 0x4cb   :  { %5998 = vmatprep.subr.bf16.mxu0 %v11032_v5  ;;  %v11002_v15 = vld [vmem:[%s14853_s2 + $0x754] ss:$12 sps:$4 sm:$0xff]   ;;  %v11008_v34 = vld [vmem:[%s14853_s2 + $0x76c] ss:$12 sps:$4 sm:$0xff]  }
 0x4cc   :  { %5137 = vmatmul.mubr.bf16.gmra.mrb[8].mxu1 %v14895_v25  ;;  %5999 = vmatpush1.bf16.msra.mxu0 %v11030_v9  ;;  %v11011_v9 = vld [vmem:[%s14853_s2 + $0x784] ss:$12 sps:$4 sm:$0xff]   ;;  %v11009_v5 = vld [vmem:[%s14853_s2 + $0x780] ss:$12 sps:$4 sm:$0xff]  }
 0x4cd   :  { %9425 = vmatprep.mubr.msk.bf16.mxu1 %vm2467_vm3, %v14896_v63  ;;  %5174 = vmatpush1.bf16.msra.mxu1 %v10971_v24  ;;  %v11000_v24 = vld [vmem:[%s14853_s2 + $0x750] ss:$12 sps:$4 sm:$0xff]  }
 0x4ce   :  { %5175 = vmatprep.subr.bf16.mxu1 %v14889_v62 }
 0x4cf   :  { %v4049_v36 = vpop.f32.mrb[120].mxu1 }
 0x4d0   :  { %v13452_v55 = vadd.f32 %v4049_v36, %v13272_v20  ;;  %v4051_v13 = vpop.f32.mrb[121].mxu1  ;;  %v10977_v20 = vld [vmem:[%s14853_s2 + $0x698] ss:$12 sps:$4 sm:$0xff]   ;;  %v11039_v36 = vld [vmem:[%s14854_s4 + $0x1c0] ss:$8 sps:$4 sm:$0xff]  }
 0x4d1   :  { %v4052_v17 = vpop.f32.mrb[122].mxu1  ;;  %5176 = vmatpush1.bf16.msra.mxu1 %v10972_v8  ;;  %v11006_v8 = vld [vmem:[%s14853_s2 + $0x768] ss:$12 sps:$4 sm:$0xff]   ;;  %v11041_v13 = vld [vmem:[%s14854_s4 + $0x1c4] ss:$8 sps:$4 sm:$0xff]  }
 0x4d2   :  { %v13458_v0 = vadd.f32 %v4052_v17, %v13275_v4  ;;  %v4054_v31 = vpop.f32.mrb[123].mxu1  ;;  %5177 = vmatprep.subr.bf16.mxu1 %v14889_v62  ;;  %v11044_v17 = vld [vmem:[%s14854_s4 + $0x1d4] ss:$8 sps:$4 sm:$0xff]  }
 0x4d3   :  { %v14902_v31 = vld [vmem:[#allocation14_spill] sm:$0xff] }
 0x4d4   :  { %5147 = vmatmul.mubr.bf16.gmra.mrb[12].mxu1 %v14898_v41 }
 0x4d5   :  { %9426 = vmatprep.mubr.msk.bf16.mxu1 %vm2467_vm3, %v13461_v30  ;;  %5178 = vmatpush1.bf16.msra.mxu1 %v10976_v42  ;;  %v14901_v42 = vld [vmem:[#allocation11_spill] sm:$0xff] }
 0x4d6   :  { %5179 = vmatprep.subr.bf16.mxu1 %v14889_v62 }
 0x4d7   :  { %v4057_v4 = vpop.f32.mrb[124].mxu1 }
 0x4d8   :  { %v13472_v26 = vadd.f32 %v4057_v4, %v13292_v6  ;;  %v4059_v48 = vpop.f32.mrb[125].mxu1  ;;  %v10981_v6 = vld [vmem:[%s14853_s2 + $0x6c4] ss:$12 sps:$4 sm:$0xff]  }
 0x4d9   :  { %v4060_v44 = vpop.f32.mrb[126].mxu1  ;;  %5180 = vmatpush1.bf16.msra.mxu1 %v10977_v20 }
 0x4da   :  { %v13480_v1 = vadd.f32 %v4060_v44, %v13300_v29  ;;  %v4062_v51 = vpop.f32.mrb[127].mxu1  ;;  %5181 = vmatprep.subr.bf16.mxu1 %v14889_v62  ;;  %v11017_v44 = vld [vmem:[%s14853_s2 + $0x6f8] ss:$12 sps:$4 sm:$0xff]  }
 0x4db   :  { %v14904_v51 = vld [vmem:[#allocation16_spill] sm:$0xff] }
 0x4dc   :  { %5157 = vmatmul.mubr.bf16.gmra.mrb[184].mxu1 %v13477_v21 }
 0x4dd   :  { %9427 = vmatprep.mubr.msk.bf16.mxu1 %vm2467_vm3, %v12666_v23  ;;  %5182 = vmatpush1.bf16.msra.mxu1 %v10978_v28 }
 0x4de   :  { %5470 = vmatprep.subr.bf16.mxu1 %v10981_v6 }
 0x4df   :  { %v4065_v61 = vpop.f32.mrb[128].mxu1 }
 0x4e0   :  { %v13490_v27 = vadd.f32 %v4065_v61, %v13310_v39  ;;  %v4067_v29 = vpop.f32.mrb[129].mxu1  ;;  %v11035_v39 = vld [vmem:[%s14854_s4 + $0x1a4] ss:$8 sps:$4 sm:$0xff]  }
 0x4e1   :  { %v4068_v60 = vpop.f32.mrb[130].mxu1  ;;  %6000 = vmatprep.subr.bf16.mxu0 %v11035_v39 }
 0x4e2   :  { %v13499_v52 = vadd.f32 %v4068_v60, %v13313_v14  ;;  %v4070_v23 = vpop.f32.mrb[131].mxu1  ;;  %v10982_v14 = vld [vmem:[%s14853_s2 + $0x6d8] ss:$12 sps:$4 sm:$0xff]   ;;  %6001 = vmatpush1.bf16.msra.mxu0 %v11033_v19  ;;  %v11019_v60 = vld [vmem:[%s14853_s2 + $0x728] ss:$12 sps:$4 sm:$0xff]   ;;  %v2229_v19 = vmax.f32 %v12811_v49, 0.0 }
 0x4e3   :  { %v14905_v23 = vld [vmem:[#allocation15_spill] sm:$0xff]  ;;  %v11025_v49 = vld [vmem:[%s14853_s2 + $0x770] ss:$12 sps:$4 sm:$0xff]  }
 0x4e4   :  { %5198 = vmatmul.mubr.bf16.vlgmr.msra.gmra.mrb[188].mxu1 %v14891_v37 }
 0x4e5   :  { %9428 = vmatprep.mubr.msk.bf16.mxu1 %vm2467_vm3, %v14892_v12  ;;  %5471 = vmatpush1.bf16.msra.mxu1 %v10979_v38  ;;  %v10988_v12 = vld [vmem:[%s14853_s2 + $0x6f0] ss:$12 sps:$4 sm:$0xff]  }
 0x4e6   :  { %5472 = vmatprep.subr.bf16.mxu1 %v10984_v59 }
 0x4e7   :  { %v4073_v53 = vpop.f32.mrb[132].mxu1 }
 0x4e8   :  { %v13517_v10 = vadd.f32 %v4073_v53, %v13337_v32  ;;  %v4075_v37 = vpop.f32.mrb[133].mxu1  ;;  %v10991_v32 = vld [vmem:[%s14853_s2 + $0x708] ss:$12 sps:$4 sm:$0xff]   ;;  %v11021_v53 = vld [vmem:[%s14853_s2 + $0x758] ss:$12 sps:$4 sm:$0xff]  }
 0x4e9   :  { %v4076_v58 = vpop.f32.mrb[134].mxu1  ;;  %5473 = vmatpush1.bf16.msra.mxu1 %v10982_v14 }
 0x4ea   :  { %v4077_v50 = vpop.f32.mrb[135].mxu1  ;;  %5474 = vmatprep.subr.bf16.mxu1 %v10990_v16 }
 0x4ec   :  { %5206 = vmatmul.mubr.bf16.gmra.mrb[192].mxu1 %v14893_v56  ;;  %v10999_v56 = vld [vmem:[%s14853_s2 + $0x73c] ss:$12 sps:$4 sm:$0xff]  }
 0x4ed   :  { %9429 = vmatprep.mubr.msk.bf16.mxu1 %vm2467_vm3, %v14894_v47  ;;  %5475 = vmatpush1.bf16.msra.mxu1 %v10988_v12  ;;  %v10997_v47 = vld [vmem:[%s14853_s2 + $0x738] ss:$12 sps:$4 sm:$0xff]   ;;  %v13644_v12 = vpack.c.bf16 %v2229_v19, %v2229_v19 }
 0x4ee   :  { %5476 = vmatprep.subr.bf16.mxu1 %v10993_v3 }
 0x4f1   :  { %5477 = vmatpush1.bf16.msra.mxu1 %v10991_v32 }
 0x4f2   :  { %5478 = vmatprep.subr.bf16.mxu1 %v10996_v33  ;;  %v11026_v33 = vld [vmem:[%s14853_s2 + $0x788] ss:$12 sps:$4 sm:$0xff]  }
 0x4f4   :  { %5214 = vmatmul.mubr.bf16.gmra.mrb[196].mxu1 %v14895_v25  ;;  %v11036_v25 = vld [vmem:[%s14854_s4 + $0x1b0] ss:$8 sps:$4 sm:$0xff]  }
 0x4f5   :  { %9430 = vmatprep.mubr.msk.bf16.mxu1 %vm2467_vm3, %v14896_v63  ;;  %5479 = vmatpush1.bf16.msra.mxu1 %v10994_v54  ;;  %v11038_v63 = vld [vmem:[%s14854_s4 + $0x1b4] ss:$8 sps:$4 sm:$0xff]  }
 0x4f6   :  { %5480 = vmatprep.subr.bf16.mxu1 %v10999_v56  ;;  %6002 = vmatprep.subr.bf16.mxu0 %v11038_v63 }
 0x4f7   :  { %6003 = vmatpush1.bf16.msra.mxu0 %v11036_v25 }
 0x4f8   :  { %6004 = vmatprep.subr.bf16.mxu0 %v11041_v13 }
 0x4f9   :  { %5481 = vmatpush1.bf16.msra.mxu1 %v10997_v47 }
 0x4fa   :  { %5482 = vmatprep.subr.bf16.mxu1 %v11002_v15 }
 0x4fb   :  { %6005 = vmatpush1.bf16.msra.mxu0 %v11039_v36  ;;  %v11062_v36 = vld [vmem:[%s14854_s4 + $0x1e4] ss:$8 sps:$4 sm:$0xff]  }
 0x4fc   :  { %5222 = vmatmul.mubr.bf16.gmra.mrb[200].mxu1 %v14898_v41  ;;  %v11042_v41 = vld [vmem:[%s14854_s4 + $0x1d0] ss:$8 sps:$4 sm:$0xff]   ;;  %6006 = vmatprep.subr.bf16.mxu0 %v11044_v17  ;;  %v11051_v17 = vld [vmem:[%s14854_s4 + $0x20] ss:$8 sps:$4 sm:$0xff]  }
 0x4fd   :  { %9431 = vmatprep.mubr.msk.bf16.mxu1 %vm2467_vm3, %v13461_v30  ;;  %5483 = vmatpush1.bf16.msra.mxu1 %v11000_v24  ;;  %v11013_v30 = vld [vmem:[%s14853_s2 + $0x6e0] ss:$12 sps:$4 sm:$0xff]  }
 0x4fe   :  { %5484 = vmatprep.subr.bf16.mxu1 %v11008_v34  ;;  %v11045_v34 = vld [vmem:[%s14854_s4] ss:$8 sps:$4 sm:$0xff]  }
 0x4ff   :  { %6007 = vmatpush1.bf16.msra.mxu0 %v11042_v41  ;;  %v11057_v41 = vld [vmem:[%s14854_s4 + $0x40] ss:$8 sps:$4 sm:$0xff]  }
 0x500   :  { %6008 = vmatprep.subr.bf16.mxu0 %v11062_v36 }
 0x501   :  { %5485 = vmatpush1.bf16.msra.mxu1 %v11006_v8  ;;  %v11050_v8 = vld [vmem:[%s14854_s4 + $0x14] ss:$8 sps:$4 sm:$0xff]  }
 0x502   :  { %5486 = vmatprep.subr.bf16.mxu1 %v11011_v9 }
 0x504   :  { %5230 = vmatmul.mubr.bf16.gmra.mrb[204].mxu1 %v13477_v21  ;;  %v14903_v21 = vld [vmem:[#allocation13_spill] sm:$0xff] }
 0x505   :  { %9495 = vmatprep.mubr.msk.bf16.mxu1 %vm2467_vm3, %v14900_v35  ;;  %5487 = vmatpush1.bf16.msra.mxu1 %v11009_v5 }
 0x506   :  { %5551 = vmatprep.subr.bf16.mxu1 %v14889_v62 }
 0x50c   :  { %5503 = vmatmul.mubr.bf16.vlgmr.msra.gmra.mrb[0].mxu1 %v14901_v42 }
 0x50d   :  { %9496 = vmatprep.mubr.msk.bf16.mxu1 %vm2467_vm3, %v14902_v31  ;;  %5552 = vmatpush1.bf16.msra.mxu1 %v11012_v46  ;;  %v11060_v46 = vld [vmem:[%s14854_s4 + $0x1e0] ss:$8 sps:$4 sm:$0xff]  }
 0x50e   :  { %5553 = vmatprep.subr.bf16.mxu1 %v14889_v62  ;;  %6009 = vmatpush1.bf16.msra.mxu0 %v11060_v46 }
 0x50f   :  { %v4386_v20 = vpop.f32.mrb[136].mxu1 }
 0x510   :  { %v13600_v7 = vadd.f32 %v4386_v20, %v13411_v57  ;;  %v4388_v22 = vpop.f32.mrb[137].mxu1  ;;  %v11018_v57 = vld [vmem:[%s14853_s2 + $0x710] ss:$12 sps:$4 sm:$0xff]  }
 0x511   :  { %v13603_v4 = vadd.f32 %v4388_v22, %v13414_v11  ;;  %v4390_v48 = vpop.f32.mrb[138].mxu1  ;;  %5554 = vmatpush1.bf16.msra.mxu1 %v11013_v30  ;;  %v11059_v30 = vld [vmem:[%s14854_s4 + $0x44] ss:$8 sps:$4 sm:$0xff]   ;;  %v11065_v20 = vld [vmem:[%s14854_s4 + $0x54] ss:$8 sps:$4 sm:$0xff]  }
 0x512   :  { %v4391_v28 = vpop.f32.mrb[139].mxu1  ;;  %5555 = vmatprep.subr.bf16.mxu1 %v14889_v62  ;;  %v11063_v22 = vld [vmem:[%s14854_s4 + $0x50] ss:$8 sps:$4 sm:$0xff]   ;;  %v11068_v48 = vld [vmem:[%s14854_s4 + $0x64] ss:$8 sps:$4 sm:$0xff]  }
 0x513   :  { %v11078_v28 = vld [vmem:[%s14854_s4 + $0x1f0] ss:$8 sps:$4 sm:$0xff]  }
 0x514   :  { %5513 = vmatmul.mubr.bf16.gmra.mrb[4].mxu1 %v14903_v21 }
 0x515   :  { %9497 = vmatprep.mubr.msk.bf16.mxu1 %vm2467_vm3, %v14904_v51  ;;  %5556 = vmatpush1.bf16.msra.mxu1 %v11017_v44  ;;  %v11066_v44 = vld [vmem:[%s14854_s4 + $0x60] ss:$8 sps:$4 sm:$0xff]  }
 0x516   :  { %5557 = vmatprep.subr.bf16.mxu1 %v14889_v62 }
 0x517   :  { %v4427_v11 = vpop.f32.mrb[140].mxu1 }
 0x518   :  { %v13617_v6 = vadd.f32 %v4427_v11, %v13428_v40  ;;  %v4429_v61 = vpop.f32.mrb[141].mxu1  ;;  %v11020_v40 = vld [vmem:[%s14853_s2 + $0x740] ss:$12 sps:$4 sm:$0xff]   ;;  %v11077_v11 = vld [vmem:[%s14854_s4 + $0x94] ss:$8 sps:$4 sm:$0xff]  }
 0x519   :  { %v4430_v29 = vpop.f32.mrb[142].mxu1  ;;  %5558 = vmatpush1.bf16.msra.mxu1 %v11018_v57  ;;  %v11074_v57 = vld [vmem:[%s14854_s4 + $0x84] ss:$8 sps:$4 sm:$0xff]   ;;  %v11075_v61 = vld [vmem:[%s14854_s4 + $0x90] ss:$8 sps:$4 sm:$0xff]  }
 0x51a   :  { %v13623_v38 = vadd.f32 %v4430_v29, %v13434_v18  ;;  %v4432_v59 = vpop.f32.mrb[143].mxu1  ;;  %5559 = vmatprep.subr.bf16.mxu1 %v14889_v62  ;;  %v11083_v29 = vld [vmem:[%s14854_s4 + $0xa4] ss:$8 sps:$4 sm:$0xff]  }
 0x51b   :  { %v11086_v59 = vld [vmem:[%s14854_s4 + $0xb4] ss:$8 sps:$4 sm:$0xff]  }
 0x51c   :  { %5523 = vmatmul.mubr.bf16.gmra.mrb[8].mxu1 %v14905_v23 }
 0x51d   :  { %9498 = vmatprep.mubr.msk.bf16.mxu1 %vm2467_vm3, %v12805_v43  ;;  %5560 = vmatpush1.bf16.msra.mxu1 %v11019_v60  ;;  %v11081_v60 = vld [vmem:[%s14854_s4 + $0xa0] ss:$8 sps:$4 sm:$0xff]  }
 0x51e   :  { %5561 = vmatprep.subr.bf16.mxu1 %v14889_v62 }
 0x51f   :  { %v4435_v39 = vpop.f32.mrb[144].mxu1 }
 0x520   :  { %v13635_v18 = vadd.f32 %v4435_v39, %v13452_v55  ;;  %v4437_v14 = vpop.f32.mrb[145].mxu1  ;;  %v2228_v55 = vmax.f32 %v12807_v2, 0.0  ;;  %v11047_v2 = vld [vmem:[%s14854_s4 + $0x4] ss:$8 sps:$4 sm:$0xff]  }
 0x521   :  { %v4438_v16 = vpop.f32.mrb[146].mxu1  ;;  %5562 = vmatpush1.bf16.msra.mxu1 %v11020_v40  ;;  %v11089_v40 = vld [vmem:[%s14854_s4 + $0xc4] ss:$8 sps:$4 sm:$0xff]  }
 0x522   :  { %v13641_v37 = vadd.f32 %v4438_v16, %v13458_v0  ;;  %v4440_v58 = vpop.f32.mrb[147].mxu1  ;;  %5563 = vmatprep.subr.bf16.mxu1 %v14889_v62  ;;  %v13660_v54 = vpack.c.bf16 %v2228_v55, %v2228_v55  ;;  %v11098_v16 = vld [vmem:[%s14854_s4 + $0x204] ss:$8 sps:$4 sm:$0xff]  }
 0x524   :  { %5533 = vmatmul.mubr.bf16.gmra.mrb[12].mxu1 %v12799_v45 }
 0x525   :  { %9499 = vmatprep.mubr.msk.bf16.mxu1 %vm2467_vm3, %v13644_v12  ;;  %5564 = vmatpush1.bf16.msra.mxu1 %v11021_v53 }
 0x526   :  { %5565 = vmatprep.subr.bf16.mxu1 %v14889_v62 }
 0x527   :  { %v4443_v0 = vpop.f32.mrb[148].mxu1 }
 0x528   :  { %v13655_v50 = vadd.f32 %v4443_v0, %v13472_v26  ;;  %v4445_v3 = vpop.f32.mrb[149].mxu1  ;;  %v11090_v0 = vld [vmem:[%s14854_s4 + $0xd0] ss:$8 sps:$4 sm:$0xff]  }
 0x529   :  { %v4446_v32 = vpop.f32.mrb[150].mxu1  ;;  %5566 = vmatpush1.bf16.msra.mxu1 %v11025_v49  ;;  %v11096_v49 = vld [vmem:[%s14854_s4 + $0x200] ss:$8 sps:$4 sm:$0xff]   ;;  %v11102_v3 = vld [vmem:[%s14854_s4 + $0x210] ss:$8 sps:$4 sm:$0xff]  }
 0x52a   :  { %v13663_v56 = vadd.f32 %v4446_v32, %v13480_v1  ;;  %v4448_v47 = vpop.f32.mrb[151].mxu1  ;;  %5567 = vmatprep.subr.bf16.mxu1 %v14889_v62  ;;  %v11095_v32 = vld [vmem:[%s14854_s4 + $0xe4] ss:$8 sps:$4 sm:$0xff]  }
 0x52c   :  { %5543 = vmatmul.mubr.bf16.gmra.mrb[208].mxu1 %v13660_v54 }
 0x52d   :  { %9500 = vmatprep.mubr.msk.bf16.mxu1 %vm2467_vm3, %v14900_v35  ;;  %5568 = vmatpush1.bf16.msra.mxu1 %v11026_v33 }
 0x52e   :  { %6249 = vmatprep.subr.bf16.mxu1 %v11047_v2 }
 0x52f   :  { %v4451_v26 = vpop.f32.mrb[152].mxu1 }
 0x530   :  { %v13673_v15 = vadd.f32 %v4451_v26, %v13490_v27  ;;  %v4453_v1 = vpop.f32.mrb[153].mxu1  ;;  %v11048_v27 = vld [vmem:[%s14854_s4 + $0x10] ss:$8 sps:$4 sm:$0xff]   ;;  %v11093_v26 = vld [vmem:[%s14854_s4 + $0xe0] ss:$8 sps:$4 sm:$0xff]  }
 0x531   :  { %v4454_v24 = vpop.f32.mrb[154].mxu1 }
 0x532   :  { %v13679_v25 = vadd.f32 %v4454_v24, %v13499_v52  ;;  %v4456_v63 = vpop.f32.mrb[155].mxu1  ;;  %v11053_v52 = vld [vmem:[%s14854_s4 + $0x24] ss:$8 sps:$4 sm:$0xff]  }
 0x533   :  { %v11107_v63 = vld [vmem:[%s14854_s4 + $0x364] ss:$8 sps:$4 sm:$0xff]  }
 0x534   :  { %5584 = vmatmul.mubr.bf16.vlgmr.msra.gmra.mrb[212].mxu1 %v14901_v42 }
 0x535   :  { %9501 = vmatprep.mubr.msk.bf16.mxu1 %vm2467_vm3, %v14902_v31  ;;  %6250 = vmatpush1.bf16.msra.mxu1 %v11045_v34  ;;  %v11054_v31 = vld [vmem:[%s14854_s4 + $0x30] ss:$8 sps:$4 sm:$0xff]   ;;  %v11101_v34 = vld [vmem:[%s14854_s4 + $0xf4] ss:$8 sps:$4 sm:$0xff]  }
 0x536   :  { %6251 = vmatprep.subr.bf16.mxu1 %v11050_v8 }
 0x537   :  { %v4459_v9 = vpop.f32.mrb[156].mxu1 }
 0x538   :  { %v13694_v5 = vadd.f32 %v4459_v9, %v13517_v10  ;;  %v4461_v35 = vpop.f32.mrb[157].mxu1  ;;  %v11056_v10 = vld [vmem:[%s14854_s4 + $0x34] ss:$8 sps:$4 sm:$0xff]  }
 0x539   :  { %v4462_v13 = vpop.f32.mrb[158].mxu1  ;;  %6252 = vmatpush1.bf16.msra.mxu1 %v11048_v27 }
 0x53a   :  { %v4463_v42 = vpop.f32.mrb[159].mxu1  ;;  %6253 = vmatprep.subr.bf16.mxu1 %v11053_v52 }
 0x53c   :  { %5592 = vmatmul.mubr.bf16.gmra.mrb[216].mxu1 %v14903_v21  ;;  %v11080_v21 = vld [vmem:[%s14854_s4 + $0x1f4] ss:$8 sps:$4 sm:$0xff]  }
 0x53d   :  { %9502 = vmatprep.mubr.msk.bf16.mxu1 %vm2467_vm3, %v14904_v51  ;;  %6254 = vmatpush1.bf16.msra.mxu1 %v11051_v17  ;;  %v11069_v51 = vld [vmem:[%s14854_s4 + $0x70] ss:$8 sps:$4 sm:$0xff]  }
 0x53e   :  { %6255 = vmatprep.subr.bf16.mxu1 %v11056_v10  ;;  %6010 = vmatprep.subr.bf16.mxu0 %v11080_v21 }
 0x53f   :  { %6011 = vmatpush1.bf16.msra.mxu0 %v11078_v28 }
 0x540   :  { %6012 = vmatprep.subr.bf16.mxu0 %v11098_v16 }
 0x541   :  { %6256 = vmatpush1.bf16.msra.mxu1 %v11054_v31 }
 0x542   :  { %6257 = vmatprep.subr.bf16.mxu1 %v11059_v30 }
 0x543   :  { %6013 = vmatpush1.bf16.msra.mxu0 %v11096_v49 }
 0x544   :  { %5600 = vmatmul.mubr.bf16.gmra.mrb[220].mxu1 %v14905_v23  ;;  %v11084_v23 = vld [vmem:[%s14854_s4 + $0xb0] ss:$8 sps:$4 sm:$0xff]  }
 0x545   :  { %9503 = vmatprep.mubr.msk.bf16.mxu1 %vm2467_vm3, %v12805_v43  ;;  %6258 = vmatpush1.bf16.msra.mxu1 %v11057_v41  ;;  %v11071_v43 = vld [vmem:[%s14854_s4 + $0x74] ss:$8 sps:$4 sm:$0xff]  }
 0x546   :  { %6259 = vmatprep.subr.bf16.mxu1 %v11065_v20 }
 0x549   :  { %6260 = vmatpush1.bf16.msra.mxu1 %v11063_v22 }
 0x54a   :  { %6261 = vmatprep.subr.bf16.mxu1 %v11068_v48 }
 0x54c   :  { %5608 = vmatmul.mubr.bf16.gmra.mrb[224].mxu1 %v12799_v45  ;;  %v11072_v45 = vld [vmem:[%s14854_s4 + $0x80] ss:$8 sps:$4 sm:$0xff]  }
 0x54d   :  { %9504 = vmatprep.mubr.msk.bf16.mxu1 %vm2467_vm3, %v13644_v12  ;;  %6262 = vmatpush1.bf16.msra.mxu1 %v11066_v44  ;;  %v11087_v12 = vld [vmem:[%s14854_s4 + $0xc0] ss:$8 sps:$4 sm:$0xff]  }
 0x54e   :  { %6263 = vmatprep.subr.bf16.mxu1 %v11071_v43 }
 0x551   :  { %6264 = vmatpush1.bf16.msra.mxu1 %v11069_v51 }
 0x552   :  { %6265 = vmatprep.subr.bf16.mxu1 %v11074_v57 }
 0x554   :  { %5616 = vmatmul.mubr.bf16.gmra.mrb[228].mxu1 %v13660_v54 }
 0x555   :  { %6266 = vmatpush1.bf16.msra.mxu1 %v11072_v45 }
 0x556   :  { %6267 = vmatprep.subr.bf16.mxu1 %v11077_v11 }
 0x559   :  { %6268 = vmatpush1.bf16.msra.mxu1 %v11075_v61 }
 0x55a   :  { %6269 = vmatprep.subr.bf16.mxu1 %v11083_v29 }
 0x55d   :  { %6270 = vmatpush1.bf16.msra.mxu1 %v11081_v60 }
 0x55e   :  { %6271 = vmatprep.subr.bf16.mxu1 %v11086_v59 }
 0x55f   :  { %v4772_v19 = vpop.f32.mrb[160].mxu1 }
 0x560   :  { %v13779_v39 = vadd.f32 %v4772_v19, %v13600_v7  ;;  %v4774_v14 = vpop.f32.mrb[161].mxu1  ;;  %v11092_v7 = vld [vmem:[%s14854_s4 + $0xd4] ss:$8 sps:$4 sm:$0xff]  }
 0x561   :  { %v4876_v53 = vadd.f32 %v4774_v14, %v13603_v4  ;;  %v4776_v58 = vpop.f32.mrb[162].mxu1  ;;  %6272 = vmatpush1.bf16.msra.mxu1 %v11084_v23  ;;  %v11104_v4 = vld [vmem:[%s14854_s4 + $0x214] ss:$8 sps:$4 sm:$0xff]  }
 0x562   :  { %v4777_v55 = vpop.f32.mrb[163].mxu1  ;;  %6273 = vmatprep.subr.bf16.mxu1 %v11089_v40  ;;  %6014 = vmatprep.subr.bf16.mxu0 %v11104_v4 }
 0x563   :  { %6015 = vmatpush1.bf16.msra.mxu0 %v11102_v3  ;;  %v5652_v3 = vlaneseq }
 0x565   :  { %6274 = vmatpush1.bf16.msra.mxu1 %v11087_v12 }
 0x566   :  { %6275 = vmatprep.subr.bf16.mxu1 %v11092_v7 }
 0x567   :  { %v4813_v33 = vpop.f32.mrb[164].mxu1 }
 0x568   :  { %v4853_v54 = vadd.f32 %v4813_v33, %v13617_v6  ;;  %v4815_v47 = vpop.f32.mrb[165].mxu1  ;;  %v11099_v6 = vld [vmem:[%s14854_s4 + $0xf0] ss:$8 sps:$4 sm:$0xff]  }
 0x569   :  { %v4816_v2 = vpop.f32.mrb[166].mxu1  ;;  %6276 = vmatpush1.bf16.msra.mxu1 %v11090_v0  ;;  %v13851_v47 = vshrl.u32 %v5652_v3, 7 }
 0x56a   :  { %v4856_v1 = vadd.f32 %v4816_v2, %v13623_v38  ;;  %v4818_v24 = vpop.f32.mrb[167].mxu1  ;;  %6277 = vmatprep.subr.bf16.mxu1 %v11095_v32 }
 0x56b   :  { %v5654_v24 = vsub.s32 0, %v13851_v47 }
 0x56d   :  { %6278 = vmatpush1.bf16.msra.mxu1 %v11093_v26 }
 0x56e   :  { %6279 = vmatprep.subr.bf16.mxu1 %v11101_v34 }
 0x56f   :  { %v4821_v8 = vpop.f32.mrb[168].mxu1 }
 0x570   :  { %v4859_v27 = vadd.f32 %v4821_v8, %v13635_v18  ;;  %v4823_v38 = vpop.f32.mrb[169].mxu1 }
 0x571   :  { %v4824_v52 = vpop.f32.mrb[170].mxu1  ;;  %6280 = vmatpush1.bf16.msra.mxu1 %v11099_v6  ;;  %v13859_v6 = vld [vmem:[%s14855_s3] sm:$0x7] }
 0x572   :  { %v4862_v9 = vadd.f32 %v4824_v52, %v13641_v37  ;;  %v4826_v35 = vpop.f32.mrb[171].mxu1  ;;  %6861 = vmatprep.subr.bf16.mxu1 %v11107_v63  ;;  %v5658_v63 = vsub.s32 1, %v13851_v47 }
 0x574   :  { %v13870_v38 = vrot.slane %v13859_v6, %v5658_v63 }
 0x577   :  { %v4829_v46 = vpop.f32.mrb[172].mxu1 }
 0x578   :  { %v4865_v36 = vadd.f32 %v4829_v46, %v13655_v50  ;;  %v4831_v13 = vpop.f32.mrb[173].mxu1  ;;  %v11134_v50 = vld [vmem:[%s14854_s4 + $0x224] ss:$8 sps:$4 sm:$0xff]  }
 0x579   :  { %v4832_v17 = vpop.f32.mrb[174].mxu1  ;;  %6025 = vmatprep.subr.bf16.mxu0 %v11134_v50  ;;  %v11132_v50 = vld [vmem:[%s14854_s4 + $0x220] ss:$8 sps:$4 sm:$0xff]  }
 0x57a   :  { %v4868_v42 = vadd.f32 %v4832_v17, %v13663_v56  ;;  %v4834_v10 = vpop.f32.mrb[175].mxu1 }
 0x57f   :  { %v4837_v31 = vpop.f32.mrb[176].mxu1 }
 0x580   :  { %v4871_v30 = vadd.f32 %v4837_v31, %v13673_v15  ;;  %v4839_v41 = vpop.f32.mrb[177].mxu1 }
 0x581   :  { %v4840_v18 = vpop.f32.mrb[178].mxu1 }
 0x582   :  { %v4874_v20 = vadd.f32 %v4840_v18, %v13679_v25  ;;  %v4842_v22 = vpop.f32.mrb[179].mxu1 }
 0x587   :  { %v4845_v48 = vpop.f32.mrb[180].mxu1 }
 0x588   :  { %v4877_v37 = vadd.f32 %v4845_v48, %v13694_v5  ;;  %v4847_v44 = vpop.f32.mrb[181].mxu1  ;;  %v11110_v48 = vld [vmem:[%s14854_s4 + $0x374] ss:$8 sps:$4 sm:$0xff]  }
 0x589   :  { %v4848_v43 = vpop.f32.mrb[182].mxu1 }
 0x58a   :  { %v4849_v28 = vpop.f32.mrb[183].mxu1 }
 0x5af   :  { %v5158_v56 = vpop.f32.mrb[184].mxu1 }
 0x5b0   :  { %v13831_v21 = vadd.f32 %v5158_v56, %v13779_v39  ;;  %v5160_v15 = vpop.f32.mrb[185].mxu1 }
 0x5b1   :  { %v13833_v51 = vadd.f32 %v5160_v15, %v4876_v53  ;;  %v5162_v25 = vpop.f32.mrb[186].mxu1  ;;  %v11140_v15 = vld [vmem:[%s14854_s4 + $0x234] ss:$8 sps:$4 sm:$0xff]  }
 0x5b2   :  { %v5163_v57 = vpop.f32.mrb[187].mxu1 }
 0x5b3   :  { %v11108_v57 = vld [vmem:[%s14854_s4 + $0x370] ss:$8 sps:$4 sm:$0xff]  }
 0x5b7   :  { %v5199_v45 = vpop.f32.mrb[188].mxu1 }
 0x5b8   :  { %v13835_v11 = vadd.f32 %v5199_v45, %v4853_v54  ;;  %v5201_v5 = vpop.f32.mrb[189].mxu1 }
 0x5b9   :  { %v5202_v61 = vpop.f32.mrb[190].mxu1 }
 0x5ba   :  { %v13837_v29 = vadd.f32 %v5202_v61, %v4856_v1  ;;  %v5204_v60 = vpop.f32.mrb[191].mxu1  ;;  %v11113_v61 = vld [vmem:[%s14854_s4 + $0x384] ss:$8 sps:$4 sm:$0xff]  }
 0x5bf   :  { %v5207_v59 = vpop.f32.mrb[192].mxu1 }
 0x5c0   :  { %v13839_v23 = vadd.f32 %v5207_v59, %v4859_v27  ;;  %v5209_v40 = vpop.f32.mrb[193].mxu1  ;;  %v13865_v27 = vrot.slane %v13859_v6, %v5654_v24  ;;  %v11138_v59 = vld [vmem:[%s14854_s4 + $0x230] ss:$8 sps:$4 sm:$0xff]  }
 0x5c1   :  { %v5210_v19 = vpop.f32.mrb[194].mxu1  ;;  %v11146_v40 = vld [vmem:[%s14854_s4 + $0x104] ss:$8 sps:$4 sm:$0xff]  }
 0x5c2   :  { %v13841_v39 = vadd.f32 %v5210_v19, %v4862_v9  ;;  %v5212_v14 = vpop.f32.mrb[195].mxu1 }
 0x5c3   :  { %v11111_v14 = vld [vmem:[%s14854_s4 + $0x380] ss:$8 sps:$4 sm:$0xff]  }
 0x5c7   :  { %v5215_v16 = vpop.f32.mrb[196].mxu1 }
 0x5c8   :  { %v13843_v53 = vadd.f32 %v5215_v16, %v4865_v36  ;;  %v5217_v58 = vpop.f32.mrb[197].mxu1  ;;  %v11116_v16 = vld [vmem:[%s14854_s4 + $0x394] ss:$8 sps:$4 sm:$0xff]  }
 0x5c9   :  { %v5218_v12 = vpop.f32.mrb[198].mxu1 }
 0x5ca   :  { %v13845_v49 = vadd.f32 %v5218_v12, %v4868_v42  ;;  %v5220_v55 = vpop.f32.mrb[199].mxu1 }
 0x5cf   :  { %v5223_v7 = vpop.f32.mrb[200].mxu1 }
 0x5d0   :  { %v13847_v4 = vadd.f32 %v5223_v7, %v4871_v30  ;;  %v5225_v0 = vpop.f32.mrb[201].mxu1 }
 0x5d1   :  { %v5226_v32 = vpop.f32.mrb[202].mxu1 }
 0x5d2   :  { %v13849_v33 = vadd.f32 %v5226_v32, %v4874_v20  ;;  %v5228_v54 = vpop.f32.mrb[203].mxu1  ;;  %v11105_v20 = vld [vmem:[%s14854_s4 + $0x360] ss:$8 sps:$4 sm:$0xff]   ;;  %v11114_v32 = vld [vmem:[%s14854_s4 + $0x390] ss:$8 sps:$4 sm:$0xff]  }
 0x5d7   :  { %v5231_v2 = vpop.f32.mrb[204].mxu1 }
 0x5d8   :  { %v13853_v26 = vadd.f32 %v5231_v2, %v4877_v37  ;;  %v5233_v1 = vpop.f32.mrb[205].mxu1 }
 0x5d9   :  { %v5234_v34 = vpop.f32.mrb[206].mxu1  ;;  %v11119_v1 = vld [vmem:[%s14854_s4 + $0x3a4] ss:$8 sps:$4 sm:$0xff]  }
 0x5da   :  { %v5235_v8 = vpop.f32.mrb[207].mxu1 }
 0x5db   :  { %v11117_v8 = vld [vmem:[%s14854_s4 + $0x3a0] ss:$8 sps:$4 sm:$0xff]  }
 0x5df   :  { %v5504_v52 = vpop.f32.mrb[0].mxu1 }
 0x5e0   :  { %v5667_v9 = vadd.f32 %v13865_v27, %v5504_v52  ;;  %v5506_v35 = vpop.f32.mrb[1].mxu1  ;;  %v11122_v52 = vld [vmem:[%s14854_s4 + $0x3b4] ss:$8 sps:$4 sm:$0xff]  }
 0x5e1   :  { %v5668_v46 = vadd.f32 %v13870_v38, %v5506_v35  ;;  %v5508_v36 = vpop.f32.mrb[2].mxu1 }
 0x5e2   :  { %v5694_v13 = vmax.f32 %v5667_v9, 0.0  ;;  %v5670_v17 = vadd.f32 %v13865_v27, %v5508_v36  ;;  %v5510_v42 = vpop.f32.mrb[3].mxu1 }
 0x5e3   :  { %v5695_v10 = vmax.f32 %v5668_v46, 0.0  ;;  %v5671_v31 = vadd.f32 %v13870_v38, %v5510_v42 }
 0x5e4   :  { %v5697_v30 = vmax.f32 %v5670_v17, 0.0  ;;  %v5721_v22 = vpack.c.bf16 %v5694_v13, %v5694_v13  ;;  %v11120_v17 = vld [vmem:[%s14854_s4 + $0x3b0] ss:$8 sps:$4 sm:$0xff]  }
 0x5e5   :  { %v5722_v41 = vpack.c.bf16 %v5695_v10, %v5695_v10  ;;  %v5698_v18 = vmax.f32 %v5671_v31, 0.0  ;;  %v11125_v31 = vld [vmem:[%s14854_s4 + $0x3c4] ss:$8 sps:$4 sm:$0xff]  }
 0x5e6   :  { %v5760_v43 = vpack.c.bf16 %v5697_v30, %v5697_v30 }
 0x5e7   :  { %v5761_v37 = vpack.c.bf16 %v5698_v18, %v5698_v18  ;;  %v5514_v44 = vpop.f32.mrb[4].mxu1  ;;  %6281 = vmatprep.mubr.bf16.mxu1 %v5722_v41  ;;  %v11123_v41 = vld [vmem:[%s14854_s4 + $0x3c0] ss:$8 sps:$4 sm:$0xff]   ;;  %v11128_v18 = vld [vmem:[%s14854_s4 + $0x3d4] ss:$8 sps:$4 sm:$0xff]  }
 0x5e8   :  { %v13886_v28 = vadd.f32 %v13865_v27, %v5514_v44  ;;  %v13888_v56 = vpop.f32.mrb[5].mxu1  ;;  %6282 = vmatmul.mubr.bf16.vlgmr.msra.gmra.mrb[232].mxu1 %v5721_v22 }
 0x5e9   :  { %6862 = vmatpush1.bf16.msra.mxu1 %v11105_v20  ;;  %v5518_v25 = vpop.f32.mrb[6].mxu1  ;;  %6016 = vmatprep.mubr.bf16.mxu0 %v5761_v37 }
 0x5ea   :  { %v13897_v45 = vadd.f32 %v13865_v27, %v5518_v25  ;;  %v5520_v5 = vpop.f32.mrb[7].mxu1  ;;  %6017 = vmatmul.mubr.bf16.vlgmr.msra.gmra.mrb[164].mxu0 %v5760_v43  ;;  %6863 = vmatprep.subr.bf16.mxu1 %v11110_v48  ;;  %v11131_v25 = vld [vmem:[%s14854_s4 + $0x3e4] ss:$8 sps:$4 sm:$0xff]  }
 0x5eb   :  { %v5677_v60 = vadd.f32 %v13870_v38, %v5520_v5  ;;  %6026 = vmatpush1.bf16.msra.mxu0 %v11132_v50  ;;  %6057 = vmatprep.mubr.bf16.mxu0 %v14889_v62  ;;  %v11126_v50 = vld [vmem:[%s14854_s4 + $0x3d0] ss:$8 sps:$4 sm:$0xff]  }
 0x5ec   :  { %6027 = vmatprep.subr.bf16.mxu0 %v11140_v15 }
 0x5ed   :  { %v5704_v19 = vmax.f32 %v5677_v60, 0.0  ;;  %6864 = vmatpush1.bf16.msra.mxu1 %v11108_v57  ;;  %v5662_v57 = vsub.s32 2, %v13851_v47 }
 0x5ee   :  { %6865 = vmatprep.subr.bf16.mxu1 %v11113_v61 }
 0x5ef   :  { %v6639_v58 = vpack.c.bf16 %v5704_v19, %v5704_v19  ;;  %v5524_v12 = vpop.f32.mrb[8].mxu1  ;;  %6028 = vmatpush1.bf16.msra.mxu0 %v11138_v59  ;;  %v13990_v19 = vrot.slane %v13859_v6, %v5662_v57  ;;  %v11149_v6 = vld [vmem:[%s14854_s4 + $0x414] ss:$8 sps:$4 sm:$0xff]  }
 0x5f0   :  { %v13917_v55 = vadd.f32 %v13865_v27, %v5524_v12  ;;  %v5526_v7 = vpop.f32.mrb[9].mxu1  ;;  %6290 = vmatprep.subr.bf16.mxu0 %v11146_v40  ;;  %v11135_v40 = vld [vmem:[%s14854_s4 + $0x3f0] ss:$8 sps:$4 sm:$0xff]   ;;  %v11141_v12 = vld [vmem:[%s14854_s4 + $0x400] ss:$8 sps:$4 sm:$0xff]  }
 0x5f1   :  { %v13920_v0 = vadd.f32 %v13870_v38, %v5526_v7  ;;  %6866 = vmatpush1.bf16.msra.mxu1 %v11111_v14  ;;  %v5528_v3 = vpop.f32.mrb[10].mxu1  ;;  %6893 = vmatprep.mubr.bf16.mxu1 %v6639_v58  ;;  %v11143_v58 = vld [vmem:[%s14854_s4 + $0x404] ss:$8 sps:$4 sm:$0xff]  }
 0x5f2   :  { %v13926_v54 = vadd.f32 %v13865_v27, %v5528_v3  ;;  %v5530_v2 = vpop.f32.mrb[11].mxu1  ;;  %6867 = vmatprep.subr.bf16.mxu1 %v11116_v16  ;;  %v11144_v3 = vld [vmem:[%s14854_s4 + $0x100] ss:$8 sps:$4 sm:$0xff]  }
 0x5f3   :  { %v13932_v34 = vadd.f32 %v13870_v38, %v5530_v2 }
 0x5f5   :  { %6868 = vmatpush1.bf16.msra.mxu1 %v11114_v32 }
 0x5f6   :  { %6869 = vmatprep.subr.bf16.mxu1 %v11119_v1 }
 0x5f7   :  { %v5534_v9 = vpop.f32.mrb[12].mxu1 }
 0x5f8   :  { %v13941_v35 = vadd.f32 %v13865_v27, %v5534_v9  ;;  %v5536_v46 = vpop.f32.mrb[13].mxu1  ;;  %v5674_v9 = vadd.f32 %v13870_v38, %v13888_v56 }
 0x5f9   :  { %v13944_v36 = vadd.f32 %v13870_v38, %v5536_v46  ;;  %6870 = vmatpush1.bf16.msra.mxu1 %v11117_v8  ;;  %v5538_v13 = vpop.f32.mrb[14].mxu1 }
 0x5fa   :  { %v13950_v42 = vadd.f32 %v13865_v27, %v5538_v13  ;;  %v5540_v10 = vpop.f32.mrb[15].mxu1  ;;  %6871 = vmatprep.subr.bf16.mxu1 %v11122_v52  ;;  %v11152_v52 = vld [vmem:[%s14854_s4 + $0x114] ss:$8 sps:$4 sm:$0xff]   ;;  %v11147_v13 = vld [vmem:[%s14854_s4 + $0x410] ss:$8 sps:$4 sm:$0xff]  }
 0x5fb   :  { %v13956_v30 = vadd.f32 %v13870_v38, %v5540_v10 }
 0x5fd   :  { %6872 = vmatpush1.bf16.msra.mxu1 %v11120_v17 }
 0x5fe   :  { %6873 = vmatprep.subr.bf16.mxu1 %v11125_v31  ;;  %v11155_v31 = vld [vmem:[%s14854_s4 + $0x424] ss:$8 sps:$4 sm:$0xff]  }
 0x5ff   :  { %v5544_v20 = vpop.f32.mrb[208].mxu1 }
 0x600   :  { %v5647_v22 = vadd.f32 %v5544_v20, %v13831_v21  ;;  %v5546_v48 = vpop.f32.mrb[209].mxu1  ;;  %v11153_v20 = vld [vmem:[%s14854_s4 + $0x420] ss:$8 sps:$4 sm:$0xff]  }
 0x601   :  { %v5648_v37 = vadd.f32 %v5546_v48, %v13833_v51  ;;  %6874 = vmatpush1.bf16.msra.mxu1 %v11123_v41  ;;  %v5548_v44 = vpop.f32.mrb[210].mxu1  ;;  %v11129_v51 = vld [vmem:[%s14854_s4 + $0x3e0] ss:$8 sps:$4 sm:$0xff]  }
 0x602   :  { %v13970_v43 = vadd.f32 %v13865_v27, %v5647_v22  ;;  %v5549_v15 = vpop.f32.mrb[211].mxu1  ;;  %6875 = vmatprep.subr.bf16.mxu1 %v11128_v18  ;;  %v11137_v27 = vld [vmem:[%s14854_s4 + $0x3f4] ss:$8 sps:$4 sm:$0xff]   ;;  %v5701_v18 = vmax.f32 %v5674_v9, 0.0 }
 0x603   :  { %v13976_v21 = vadd.f32 %v13870_v38, %v5648_v37  ;;  %v11150_v38 = vld [vmem:[%s14854_s4 + $0x110] ss:$8 sps:$4 sm:$0xff]   ;;  %v11161_v22 = vld [vmem:[%s14854_s4 + $0x434] ss:$8 sps:$4 sm:$0xff]   ;;  %v11156_v37 = vld [vmem:[%s14854_s4 + $0x240] ss:$8 sps:$4 sm:$0xff]  }
 0x605   :  { %6876 = vmatpush1.bf16.msra.mxu1 %v11126_v50 }
 0x606   :  { %6877 = vmatprep.subr.bf16.mxu1 %v11131_v25  ;;  %v11164_v25 = vld [vmem:[%s14854_s4 + $0x254] ss:$8 sps:$4 sm:$0xff]  }
 0x607   :  { %v5585_v5 = vpop.f32.mrb[212].mxu1 }
 0x608   :  { %v5625_v61 = vadd.f32 %v5585_v5, %v13835_v11  ;;  %v5587_v60 = vpop.f32.mrb[213].mxu1 }
 0x609   :  { %6878 = vmatpush1.bf16.msra.mxu1 %v11129_v51  ;;  %v5588_v59 = vpop.f32.mrb[214].mxu1  ;;  %v6332_v51 = vpack.c.bf16 %v5701_v18, %v5701_v18  ;;  %v11162_v60 = vld [vmem:[%s14854_s4 + $0x250] ss:$8 sps:$4 sm:$0xff]  }
 0x60a   :  { %v5628_v14 = vadd.f32 %v5588_v59, %v13837_v29  ;;  %v5590_v16 = vpop.f32.mrb[215].mxu1  ;;  %6879 = vmatprep.subr.bf16.mxu1 %v11137_v27  ;;  %v5669_v32 = vadd.f32 %v13990_v19, %v5625_v61  ;;  %v11159_v27 = vld [vmem:[%s14854_s4 + $0x430] ss:$8 sps:$4 sm:$0xff]  }
 0x60b   :  { %v11183_v18 = vld [vmem:[%s14854_s4 + $0x590] ss:$8 sps:$4 sm:$0xff]  }
 0x60c   :  { %v5672_v11 = vadd.f32 %v13990_v19, %v5628_v14  ;;  %v5696_v56 = vmax.f32 %v5669_v32, 0.0  ;;  %v11173_v14 = vld [vmem:[%s14854_s4 + $0x454] ss:$8 sps:$4 sm:$0xff]  }
 0x60d   :  { %6880 = vmatpush1.bf16.msra.mxu1 %v11135_v40  ;;  %v11165_v40 = vld [vmem:[%s14854_s4 + $0x440] ss:$8 sps:$4 sm:$0xff]  }
 0x60e   :  { %v5699_v7 = vmax.f32 %v5672_v11, 0.0  ;;  %6881 = vmatprep.subr.bf16.mxu1 %v11143_v58  ;;  %v5723_v44 = vpack.c.bf16 %v5696_v56, %v5696_v56  ;;  %v11168_v58 = vld [vmem:[%s14854_s4 + $0x260] ss:$8 sps:$4 sm:$0xff]   ;;  %v11188_v56 = vld [vmem:[%s14854_s4 + $0x294] ss:$8 sps:$4 sm:$0xff]  }
 0x60f   :  { %v5593_v29 = vpop.f32.mrb[216].mxu1 }
 0x610   :  { %v5762_v2 = vpack.c.bf16 %v5699_v7, %v5699_v7  ;;  %v5631_v1 = vadd.f32 %v5593_v29, %v13839_v23  ;;  %v5595_v8 = vpop.f32.mrb[217].mxu1  ;;  %v11176_v7 = vld [vmem:[%s14854_s4 + $0x274] ss:$8 sps:$4 sm:$0xff]   ;;  %v11171_v29 = vld [vmem:[%s14854_s4 + $0x450] ss:$8 sps:$4 sm:$0xff]  }
 0x611   :  { %6882 = vmatpush1.bf16.msra.mxu1 %v11141_v12  ;;  %v5596_v46 = vpop.f32.mrb[218].mxu1  ;;  %v11174_v8 = vld [vmem:[%s14854_s4 + $0x270] ss:$8 sps:$4 sm:$0xff]  }
 0x612   :  { %v14017_v17 = vadd.f32 %v13990_v19, %v5631_v1  ;;  %v5634_v10 = vadd.f32 %v5596_v46, %v13841_v39  ;;  %v5598_v23 = vpop.f32.mrb[219].mxu1  ;;  %9577 = vmatmul.mubr.msk.bf16.vlgmr.msra.gmra.mrb[168].mxu0 %vm5980_vm4, %v5762_v2  ;;  %6883 = vmatprep.subr.bf16.mxu1 %v11149_v6  ;;  %v11158_v39 = vld [vmem:[%s14854_s4 + $0x244] ss:$8 sps:$4 sm:$0xff]  }
 0x613   :  { %6291 = vmatpush1.bf16.msra.mxu0 %v11144_v3  ;;  %6322 = vmatprep.mubr.bf16.mxu0 %v14889_v62  ;;  %v5703_v3 = vmax.f32 %v13897_v45, 0.0  ;;  %v11179_v1 = vld [vmem:[%s14854_s4 + $0x584] ss:$8 sps:$4 sm:$0xff]   ;;  %v11180_v23 = vld [vmem:[%s14854_s4 + $0x280] ss:$8 sps:$4 sm:$0xff]  }
 0x614   :  { %v14029_v41 = vadd.f32 %v13990_v19, %v5634_v10  ;;  %6292 = vmatprep.subr.bf16.mxu0 %v11152_v52  ;;  %v11182_v45 = vld [vmem:[%s14854_s4 + $0x284] ss:$8 sps:$4 sm:$0xff]  }
 0x615   :  { %6884 = vmatpush1.bf16.msra.mxu1 %v11147_v13  ;;  %v6638_v9 = vpack.c.bf16 %v5703_v3, %v5703_v3  ;;  %v11185_v13 = vld [vmem:[%s14854_s4 + $0x594] ss:$8 sps:$4 sm:$0xff]  }
 0x616   :  { %6885 = vmatprep.subr.bf16.mxu1 %v11155_v31  ;;  %v11224_v3 = vld [vmem:[%s14854_s4 + $0x2f4] ss:$8 sps:$4 sm:$0xff]  }
 0x617   :  { %6293 = vmatpush1.bf16.msra.mxu0 %v11150_v38  ;;  %v5601_v48 = vpop.f32.mrb[220].mxu1 }
 0x618   :  { %v5637_v50 = vadd.f32 %v5601_v48, %v13843_v53  ;;  %v5603_v15 = vpop.f32.mrb[221].mxu1  ;;  %6554 = vmatprep.subr.bf16.mxu0 %v11158_v39  ;;  %v11167_v53 = vld [vmem:[%s14854_s4 + $0x444] ss:$8 sps:$4 sm:$0xff]  }
 0x619   :  { %6886 = vmatpush1.bf16.msra.mxu1 %v11153_v20  ;;  %v5604_v57 = vpop.f32.mrb[222].mxu1  ;;  %v11191_v48 = vld [vmem:[%s14854_s4 + $0x5a4] ss:$8 sps:$4 sm:$0xff]  }
 0x61a   :  { %v5640_v5 = vadd.f32 %v5604_v57, %v13845_v49  ;;  %v5606_v61 = vpop.f32.mrb[223].mxu1  ;;  %9614 = vmatmul.mubr.msk.bf16.vlgmr.msra.gmra.mrb[172].mxu0 %vm5980_vm4, %v5723_v44  ;;  %6887 = vmatprep.subr.bf16.mxu1 %v11161_v22  ;;  %v11170_v49 = vld [vmem:[%s14854_s4 + $0x264] ss:$8 sps:$4 sm:$0xff]   ;;  %v5681_v46 = vadd.f32 %v13990_v19, %v5637_v50  ;;  %v11186_v44 = vld [vmem:[%s14854_s4 + $0x290] ss:$8 sps:$4 sm:$0xff]  }
 0x61b   :  { %6555 = vmatpush1.bf16.msra.mxu0 %v11156_v37  ;;  %6586 = vmatprep.mubr.bf16.mxu0 %v6332_v51  ;;  %v5710_v37 = vmax.f32 %v13932_v34, 0.0  ;;  %v11194_v50 = vld [vmem:[%s14854_s4 + $0x2a4] ss:$8 sps:$4 sm:$0xff]   ;;  %v11197_v34 = vld [vmem:[%s14854_s4 + $0x5b4] ss:$8 sps:$4 sm:$0xff]  }
 0x61c   :  { %v14059_v59 = vadd.f32 %v13990_v19, %v5640_v5  ;;  %6556 = vmatprep.subr.bf16.mxu0 %v11164_v25  ;;  %v5708_v20 = vmax.f32 %v5681_v46, 0.0  ;;  %v11192_v51 = vld [vmem:[%s14854_s4 + $0x2a0] ss:$8 sps:$4 sm:$0xff]   ;;  %v11200_v57 = vld [vmem:[%s14854_s4 + $0x2b4] ss:$8 sps:$4 sm:$0xff]  }
 0x61d   :  { %6888 = vmatpush1.bf16.msra.mxu1 %v11159_v27  ;;  %v7253_v25 = vpack.c.bf16 %v5710_v37, %v5710_v37  ;;  %v11195_v27 = vld [vmem:[%s14854_s4 + $0x5b0] ss:$8 sps:$4 sm:$0xff]   ;;  %v11203_v5 = vld [vmem:[%s14854_s4 + $0x5c4] ss:$8 sps:$4 sm:$0xff]   ;;  %v11236_v46 = vld [vmem:[%s14854_s4 + $0x314] ss:$8 sps:$4 sm:$0xff]  }
 0x61e   :  { %6889 = vmatprep.subr.bf16.mxu1 %v11167_v53  ;;  %v6947_v15 = vpack.c.bf16 %v5708_v20, %v5708_v20  ;;  %v11198_v61 = vld [vmem:[%s14854_s4 + $0x2b0] ss:$8 sps:$4 sm:$0xff]   ;;  %v11206_v53 = vld [vmem:[%s14854_s4 + $0x2c4] ss:$8 sps:$4 sm:$0xff]   ;;  %v5700_v37 = vmax.f32 %v13886_v28, 0.0 }
 0x61f   :  { %6557 = vmatpush1.bf16.msra.mxu0 %v11162_v60  ;;  %v5609_v16 = vpop.f32.mrb[224].mxu1  ;;  %v11201_v60 = vld [vmem:[%s14854_s4 + $0x5c0] ss:$8 sps:$4 sm:$0xff]   ;;  %v11243_v20 = vld [vmem:[%s14854_s4 + $0x630] ss:$8 sps:$4 sm:$0xff]  }
 0x620   :  { %v5643_v11 = vadd.f32 %v5609_v16, %v13847_v4  ;;  %v5611_v12 = vpop.f32.mrb[225].mxu1  ;;  %6558 = vmatprep.subr.bf16.mxu0 %v11170_v49  ;;  %v11209_v49 = vld [vmem:[%s14854_s4 + $0x5d4] ss:$8 sps:$4 sm:$0xff]   ;;  %v11207_v16 = vld [vmem:[%s14854_s4 + $0x5d0] ss:$8 sps:$4 sm:$0xff]  }
 0x621   :  { %6890 = vmatpush1.bf16.msra.mxu1 %v11165_v40  ;;  %v5612_v6 = vpop.f32.mrb[226].mxu1  ;;  %v11204_v40 = vld [vmem:[%s14854_s4 + $0x2c0] ss:$8 sps:$4 sm:$0xff]   ;;  %v11218_v12 = vld [vmem:[%s14854_s4 + $0x2e4] ss:$8 sps:$4 sm:$0xff]  }
 0x622   :  { %v14082_v32 = vadd.f32 %v13990_v19, %v5643_v11  ;;  %v5646_v2 = vadd.f32 %v5612_v6, %v13849_v33  ;;  %v5614_v4 = vpop.f32.mrb[227].mxu1  ;;  %6891 = vmatprep.subr.bf16.mxu1 %v11173_v14  ;;  %v11177_v33 = vld [vmem:[%s14854_s4 + $0x580] ss:$8 sps:$4 sm:$0xff]   ;;  %v11212_v14 = vld [vmem:[%s14854_s4 + $0x2d4] ss:$8 sps:$4 sm:$0xff]  }
 0x623   :  { %6559 = vmatpush1.bf16.msra.mxu0 %v11168_v58  ;;  %v11215_v58 = vld [vmem:[%s14854_s4 + $0x5e4] ss:$8 sps:$4 sm:$0xff]   ;;  %v11210_v11 = vld [vmem:[%s14854_s4 + $0x2d0] ss:$8 sps:$4 sm:$0xff]   ;;  %v11221_v6 = vld [vmem:[%s14854_s4 + $0x5f4] ss:$8 sps:$4 sm:$0xff]  }
 0x624   :  { %v14092_v52 = vadd.f32 %v13990_v19, %v5646_v2  ;;  %6560 = vmatprep.subr.bf16.mxu0 %v11176_v7  ;;  %v11213_v7 = vld [vmem:[%s14854_s4 + $0x5e0] ss:$8 sps:$4 sm:$0xff]   ;;  %v11219_v2 = vld [vmem:[%s14854_s4 + $0x5f0] ss:$8 sps:$4 sm:$0xff]   ;;  %v11227_v4 = vld [vmem:[%s14854_s4 + $0x604] ss:$8 sps:$4 sm:$0xff]  }
 0x625   :  { %6892 = vmatpush1.bf16.msra.mxu1 %v11171_v29  ;;  %v11216_v29 = vld [vmem:[%s14854_s4 + $0x2e0] ss:$8 sps:$4 sm:$0xff]  }
 0x626   :  { %7209 = vmatprep.subr.bf16.mxu1 %v11179_v1  ;;  %v11222_v1 = vld [vmem:[%s14854_s4 + $0x2f0] ss:$8 sps:$4 sm:$0xff]   ;;  %v11252_v28 = vld [vmem:[%s14854_s4 + $0x340] ss:$8 sps:$4 sm:$0xff]  }
 0x627   :  { %6561 = vmatpush1.bf16.msra.mxu0 %v11174_v8  ;;  %v5617_v10 = vpop.f32.mrb[228].mxu1  ;;  %v11230_v8 = vld [vmem:[%s14854_s4 + $0x304] ss:$8 sps:$4 sm:$0xff]  }
 0x628   :  { %v5649_v31 = vadd.f32 %v5617_v10, %v13853_v26  ;;  %6894 = vmatmul.mubr.bf16.vlgmr.msra.gmra.mrb[236].mxu1 %v6638_v9  ;;  %v5619_v38 = vpop.f32.mrb[229].mxu1  ;;  %6562 = vmatprep.subr.bf16.mxu0 %v11182_v45  ;;  %v11225_v45 = vld [vmem:[%s14854_s4 + $0x600] ss:$8 sps:$4 sm:$0xff]   ;;  %v11239_v10 = vld [vmem:[%s14854_s4 + $0x624] ss:$8 sps:$4 sm:$0xff]  }
 0x629   :  { %7210 = vmatpush1.bf16.msra.mxu1 %v11177_v33  ;;  %v5620_v39 = vpop.f32.mrb[230].mxu1  ;;  %7241 = vmatprep.mubr.bf16.mxu1 %v14889_v62  ;;  %v11233_v33 = vld [vmem:[%s14854_s4 + $0x614] ss:$8 sps:$4 sm:$0xff]   ;;  %v11228_v9 = vld [vmem:[%s14854_s4 + $0x300] ss:$8 sps:$4 sm:$0xff]  }
 0x62a   :  { %v14116_v22 = vadd.f32 %v13990_v19, %v5649_v31  ;;  %v5621_v26 = vpop.f32.mrb[231].mxu1  ;;  %7211 = vmatprep.subr.bf16.mxu1 %v11185_v13  ;;  %v11189_v19 = vld [vmem:[%s14854_s4 + $0x5a0] ss:$8 sps:$4 sm:$0xff]   ;;  %v11231_v13 = vld [vmem:[%s14854_s4 + $0x610] ss:$8 sps:$4 sm:$0xff]  }
 0x62b   :  { %6563 = vmatpush1.bf16.msra.mxu0 %v11180_v23  ;;  %v11234_v23 = vld [vmem:[%s14854_s4 + $0x310] ss:$8 sps:$4 sm:$0xff]   ;;  %v11242_v31 = vld [vmem:[%s14854_s4 + $0x324] ss:$8 sps:$4 sm:$0xff]   ;;  %v11237_v38 = vld [vmem:[%s14854_s4 + $0x620] ss:$8 sps:$4 sm:$0xff]  }
 0x62c   :  { %6564 = vmatprep.subr.bf16.mxu0 %v11188_v56  ;;  %v11245_v56 = vld [vmem:[%s14854_s4 + $0x634] ss:$8 sps:$4 sm:$0xff]   ;;  %v11240_v39 = vld [vmem:[%s14854_s4 + $0x320] ss:$8 sps:$4 sm:$0xff]   ;;  %v11251_v26 = vld [vmem:[%s14854_s4 + $0x644] ss:$8 sps:$4 sm:$0xff]  }
 0x62d   :  { %7212 = vmatpush1.bf16.msra.mxu1 %v11183_v18  ;;  %v11248_v18 = vld [vmem:[%s14854_s4 + $0x334] ss:$8 sps:$4 sm:$0xff]  }
 0x62e   :  { %7475 = vmatprep.subr.bf16.mxu1 %v11191_v48  ;;  %v11246_v48 = vld [vmem:[%s14854_s4 + $0x330] ss:$8 sps:$4 sm:$0xff]  }
 0x62f   :  { %6565 = vmatpush1.bf16.msra.mxu0 %v11186_v44  ;;  %v11254_v44 = vld [vmem:[%s14854_s4 + $0x344] ss:$8 sps:$4 sm:$0xff]  }
 0x630   :  { %9833 = vmatmul.mubr.msk.bf16.vlgmr.msra.gmra.mrb[240].mxu1 %vm5980_vm4, %v6947_v15  ;;  %6566 = vmatprep.subr.bf16.mxu0 %v11194_v50  ;;  %v11249_v50 = vld [vmem:[%s14854_s4 + $0x640] ss:$8 sps:$4 sm:$0xff]   ;;  %v6331_v15 = vpack.c.bf16 %v5700_v37, %v5700_v37  ;;  %v11303_v37 = vld [vmem:[%s14854_s4 + $0x7f0] ss:$8 sps:$4 sm:$0xff]  }
 0x631   :  { %7476 = vmatpush1.bf16.msra.mxu1 %v11189_v19  ;;  %7507 = vmatprep.mubr.bf16.mxu1 %v7253_v25  ;;  %v11257_v19 = vld [vmem:[%s14854_s4 + $0x654] ss:$8 sps:$4 sm:$0xff]   ;;  %v11255_v25 = vld [vmem:[%s14854_s4 + $0x650] ss:$8 sps:$4 sm:$0xff]  }
 0x632   :  { %7477 = vmatprep.subr.bf16.mxu1 %v11197_v34  ;;  %v11260_v34 = vld [vmem:[%s14854_s4 + $0x354] ss:$8 sps:$4 sm:$0xff]  }
 0x633   :  { %6567 = vmatpush1.bf16.msra.mxu0 %v11192_v51  ;;  %v11263_v51 = vld [vmem:[%s14854_s4 + $0x664] ss:$8 sps:$4 sm:$0xff]  }
 0x634   :  { %6568 = vmatprep.subr.bf16.mxu0 %v11200_v57  ;;  %v11258_v57 = vld [vmem:[%s14854_s4 + $0x350] ss:$8 sps:$4 sm:$0xff]  }
 0x635   :  { %7478 = vmatpush1.bf16.msra.mxu1 %v11195_v27  ;;  %v5702_v27 = vmax.f32 %v14017_v17, 0.0  ;;  %v11264_v17 = vld [vmem:[%s14854_s4 + $0x460] ss:$8 sps:$4 sm:$0xff]  }
 0x636   :  { %7479 = vmatprep.subr.bf16.mxu1 %v11203_v5  ;;  %v11266_v5 = vld [vmem:[%s14854_s4 + $0x464] ss:$8 sps:$4 sm:$0xff]  }
 0x637   :  { %6569 = vmatpush1.bf16.msra.mxu0 %v11198_v61  ;;  %v11261_v61 = vld [vmem:[%s14854_s4 + $0x660] ss:$8 sps:$4 sm:$0xff]  }
 0x638   :  { %6570 = vmatprep.subr.bf16.mxu0 %v11206_v53  ;;  %v11269_v53 = vld [vmem:[%s14854_s4 + $0x674] ss:$8 sps:$4 sm:$0xff]  }
 0x639   :  { %7480 = vmatpush1.bf16.msra.mxu1 %v11201_v60  ;;  %v6333_v60 = vpack.c.bf16 %v5702_v27, %v5702_v27  ;;  %v11318_v27 = vld [vmem:[%s14854_s4 + $0x4f0] ss:$8 sps:$4 sm:$0xff]  }
 0x63a   :  { %7481 = vmatprep.subr.bf16.mxu1 %v11209_v49  ;;  %v11272_v49 = vld [vmem:[%s14854_s4 + $0x474] ss:$8 sps:$4 sm:$0xff]  }
 0x63b   :  { %6571 = vmatpush1.bf16.msra.mxu0 %v11204_v40  ;;  %v11267_v40 = vld [vmem:[%s14854_s4 + $0x670] ss:$8 sps:$4 sm:$0xff]  }
 0x63c   :  { %6572 = vmatprep.subr.bf16.mxu0 %v11212_v14  ;;  %v11275_v14 = vld [vmem:[%s14854_s4 + $0x684] ss:$8 sps:$4 sm:$0xff]  }
 0x63d   :  { %7482 = vmatpush1.bf16.msra.mxu1 %v11207_v16  ;;  %v11270_v16 = vld [vmem:[%s14854_s4 + $0x470] ss:$8 sps:$4 sm:$0xff]  }
 0x63e   :  { %7483 = vmatprep.subr.bf16.mxu1 %v11215_v58  ;;  %v5705_v58 = vmax.f32 %v14029_v41, 0.0  ;;  %v11276_v41 = vld [vmem:[%s14854_s4 + $0x480] ss:$8 sps:$4 sm:$0xff]  }
 0x63f   :  { %6573 = vmatpush1.bf16.msra.mxu0 %v11210_v11  ;;  %v11278_v11 = vld [vmem:[%s14854_s4 + $0x484] ss:$8 sps:$4 sm:$0xff]  }
 0x640   :  { %6574 = vmatprep.subr.bf16.mxu0 %v11218_v12  ;;  %v5707_v12 = vmax.f32 %v13920_v0, 0.0  ;;  %v11284_v0 = vld [vmem:[%s14854_s4 + $0x494] ss:$8 sps:$4 sm:$0xff]  }
 0x641   :  { %7484 = vmatpush1.bf16.msra.mxu1 %v11213_v7  ;;  %v11273_v7 = vld [vmem:[%s14854_s4 + $0x680] ss:$8 sps:$4 sm:$0xff]  }
 0x642   :  { %7485 = vmatprep.subr.bf16.mxu1 %v11221_v6  ;;  %v11281_v6 = vld [vmem:[%s14854_s4 + $0x694] ss:$8 sps:$4 sm:$0xff]  }
 0x643   :  { %6575 = vmatpush1.bf16.msra.mxu0 %v11216_v29  ;;  %v6640_v29 = vpack.c.bf16 %v5705_v58, %v5705_v58  ;;  %v11333_v58 = vld [vmem:[%s14854_s4 + $0x840] ss:$8 sps:$4 sm:$0xff]  }
 0x644   :  { %6576 = vmatprep.subr.bf16.mxu0 %v11224_v3  ;;  %v6946_v3 = vpack.c.bf16 %v5707_v12, %v5707_v12  ;;  %v11336_v12 = vld [vmem:[%s14854_s4 + $0x520] ss:$8 sps:$4 sm:$0xff]  }
 0x645   :  { %7486 = vmatpush1.bf16.msra.mxu1 %v11219_v2  ;;  %v11279_v2 = vld [vmem:[%s14854_s4 + $0x690] ss:$8 sps:$4 sm:$0xff]  }
 0x646   :  { %7487 = vmatprep.subr.bf16.mxu1 %v11227_v4  ;;  %v5709_v4 = vmax.f32 %v13926_v54, 0.0  ;;  %v11285_v54 = vld [vmem:[%s14854_s4 + $0x7c0] ss:$8 sps:$4 sm:$0xff]  }
 0x647   :  { %6577 = vmatpush1.bf16.msra.mxu0 %v11222_v1  ;;  %v11287_v1 = vld [vmem:[%s14854_s4 + $0x7c4] ss:$8 sps:$4 sm:$0xff]  }
 0x648   :  { %6578 = vmatprep.subr.bf16.mxu0 %v11230_v8  ;;  %v11282_v8 = vld [vmem:[%s14854_s4 + $0x490] ss:$8 sps:$4 sm:$0xff]  }
 0x649   :  { %7488 = vmatpush1.bf16.msra.mxu1 %v11225_v45  ;;  %v11290_v45 = vld [vmem:[%s14854_s4 + $0x4a4] ss:$8 sps:$4 sm:$0xff]  }
 0x64a   :  { %7489 = vmatprep.subr.bf16.mxu1 %v11233_v33  ;;  %v7252_v33 = vpack.c.bf16 %v5709_v4, %v5709_v4  ;;  %v11348_v4 = vld [vmem:[%s14854_s4 + $0x540] ss:$8 sps:$4 sm:$0xff]  }
 0x64b   :  { %6579 = vmatpush1.bf16.msra.mxu0 %v11228_v9  ;;  %v11293_v9 = vld [vmem:[%s14854_s4 + $0x7d4] ss:$8 sps:$4 sm:$0xff]  }
 0x64c   :  { %6580 = vmatprep.subr.bf16.mxu0 %v11236_v46  ;;  %v11288_v46 = vld [vmem:[%s14854_s4 + $0x4a0] ss:$8 sps:$4 sm:$0xff]  }
 0x64d   :  { %7490 = vmatpush1.bf16.msra.mxu1 %v11231_v13  ;;  %v11296_v13 = vld [vmem:[%s14854_s4 + $0x4b4] ss:$8 sps:$4 sm:$0xff]  }
 0x64e   :  { %7491 = vmatprep.subr.bf16.mxu1 %v11239_v10  ;;  %v11291_v10 = vld [vmem:[%s14854_s4 + $0x7d0] ss:$8 sps:$4 sm:$0xff]  }
 0x64f   :  { %6581 = vmatpush1.bf16.msra.mxu0 %v11234_v23  ;;  %v5714_v23 = vmax.f32 %v14082_v32, 0.0  ;;  %v11297_v32 = vld [vmem:[%s14854_s4 + $0x7e0] ss:$8 sps:$4 sm:$0xff]  }
 0x650   :  { %6582 = vmatprep.subr.bf16.mxu0 %v11242_v31  ;;  %v11299_v31 = vld [vmem:[%s14854_s4 + $0x7e4] ss:$8 sps:$4 sm:$0xff]  }
 0x651   :  { %7492 = vmatpush1.bf16.msra.mxu1 %v11237_v38  ;;  %v5716_v38 = vmax.f32 %v13956_v30, 0.0  ;;  %v11305_v30 = vld [vmem:[%s14854_s4 + $0x7f4] ss:$8 sps:$4 sm:$0xff]  }
 0x652   :  { %7493 = vmatprep.subr.bf16.mxu1 %v11245_v56  ;;  %v11294_v56 = vld [vmem:[%s14854_s4 + $0x4b0] ss:$8 sps:$4 sm:$0xff]  }
 0x653   :  { %6583 = vmatpush1.bf16.msra.mxu0 %v11240_v39  ;;  %v11302_v39 = vld [vmem:[%s14854_s4 + $0x4c4] ss:$8 sps:$4 sm:$0xff]  }
 0x654   :  { %6584 = vmatprep.subr.bf16.mxu0 %v11248_v18  ;;  %v7561_v18 = vpack.c.bf16 %v5714_v23, %v5714_v23  ;;  %v11363_v23 = vld [vmem:[%s14854_s4 + $0x890] ss:$8 sps:$4 sm:$0xff]  }
 0x655   :  { %7494 = vmatpush1.bf16.msra.mxu1 %v11243_v20  ;;  %v7867_v20 = vpack.c.bf16 %v5716_v38, %v5716_v38  ;;  %v11366_v38 = vld [vmem:[%s14854_s4 + $0x570] ss:$8 sps:$4 sm:$0xff]  }
 0x656   :  { %7495 = vmatprep.subr.bf16.mxu1 %v11251_v26  ;;  %v11300_v26 = vld [vmem:[%s14854_s4 + $0x4c0] ss:$8 sps:$4 sm:$0xff]  }
 0x657   :  { %6585 = vmatpush1.bf16.msra.mxu0 %v11246_v48  ;;  %v11308_v48 = vld [vmem:[%s14854_s4 + $0x4d4] ss:$8 sps:$4 sm:$0xff]  }
 0x658   :  { %6595 = vmatprep.subr.bf16.mxu0 %v11254_v44  ;;  %v11311_v44 = vld [vmem:[%s14854_s4 + $0x804] ss:$8 sps:$4 sm:$0xff]  }
 0x659   :  { %7496 = vmatpush1.bf16.msra.mxu1 %v11249_v50  ;;  %v11306_v50 = vld [vmem:[%s14854_s4 + $0x4d0] ss:$8 sps:$4 sm:$0xff]  }
 0x65a   :  { %6587 = vmatmul.mubr.bf16.vlgmr.msra.gmra.mrb[176].mxu0 %v6331_v15  ;;  %7497 = vmatprep.subr.bf16.mxu1 %v11257_v19  ;;  %v11314_v19 = vld [vmem:[%s14854_s4 + $0x4e4] ss:$8 sps:$4 sm:$0xff]   ;;  %v11317_v15 = vld [vmem:[%s14854_s4 + $0x814] ss:$8 sps:$4 sm:$0xff]  }
 0x65b   :  { %6596 = vmatpush1.bf16.msra.mxu0 %v11252_v28  ;;  %6627 = vmatprep.mubr.bf16.mxu0 %v14889_v62  ;;  %v11309_v28 = vld [vmem:[%s14854_s4 + $0x800] ss:$8 sps:$4 sm:$0xff]  }
 0x65c   :  { %6597 = vmatprep.subr.bf16.mxu0 %v11260_v34  ;;  %v11312_v34 = vld [vmem:[%s14854_s4 + $0x4e0] ss:$8 sps:$4 sm:$0xff]  }
 0x65d   :  { %7498 = vmatpush1.bf16.msra.mxu1 %v11255_v25  ;;  %v11320_v25 = vld [vmem:[%s14854_s4 + $0x4f4] ss:$8 sps:$4 sm:$0xff]  }
 0x65e   :  { %7499 = vmatprep.subr.bf16.mxu1 %v11263_v51  ;;  %v11315_v51 = vld [vmem:[%s14854_s4 + $0x810] ss:$8 sps:$4 sm:$0xff]  }
 0x65f   :  { %6598 = vmatpush1.bf16.msra.mxu0 %v11258_v57  ;;  %v11323_v57 = vld [vmem:[%s14854_s4 + $0x824] ss:$8 sps:$4 sm:$0xff]  }
 0x660   :  { %6902 = vmatprep.subr.bf16.mxu0 %v11266_v5  ;;  %v11326_v5 = vld [vmem:[%s14854_s4 + $0x504] ss:$8 sps:$4 sm:$0xff]  }
 0x661   :  { %7500 = vmatpush1.bf16.msra.mxu1 %v11261_v61  ;;  %v11321_v61 = vld [vmem:[%s14854_s4 + $0x820] ss:$8 sps:$4 sm:$0xff]  }
 0x662   :  { %9687 = vmatmul.mubr.msk.bf16.vlgmr.msra.gmra.mrb[180].mxu0 %vm5980_vm4, %v6333_v60  ;;  %7501 = vmatprep.subr.bf16.mxu1 %v11269_v53  ;;  %v11329_v53 = vld [vmem:[%s14854_s4 + $0x834] ss:$8 sps:$4 sm:$0xff]  }
 0x663   :  { %6903 = vmatpush1.bf16.msra.mxu0 %v11264_v17  ;;  %6934 = vmatprep.mubr.bf16.mxu0 %v14889_v62  ;;  %v11324_v17 = vld [vmem:[%s14854_s4 + $0x500] ss:$8 sps:$4 sm:$0xff]   ;;  %v11332_v60 = vld [vmem:[%s14854_s4 + $0x514] ss:$8 sps:$4 sm:$0xff]  }
 0x664   :  { %6904 = vmatprep.subr.bf16.mxu0 %v11272_v49  ;;  %v11327_v49 = vld [vmem:[%s14854_s4 + $0x830] ss:$8 sps:$4 sm:$0xff]  }
 0x665   :  { %7502 = vmatpush1.bf16.msra.mxu1 %v11267_v40  ;;  %v11335_v40 = vld [vmem:[%s14854_s4 + $0x844] ss:$8 sps:$4 sm:$0xff]  }
 0x666   :  { %7503 = vmatprep.subr.bf16.mxu1 %v11275_v14  ;;  %v11330_v14 = vld [vmem:[%s14854_s4 + $0x510] ss:$8 sps:$4 sm:$0xff]  }
 0x667   :  { %6905 = vmatpush1.bf16.msra.mxu0 %v11270_v16  ;;  %v11338_v16 = vld [vmem:[%s14854_s4 + $0x524] ss:$8 sps:$4 sm:$0xff]  }
 0x668   :  { %7168 = vmatprep.subr.bf16.mxu0 %v11278_v11  ;;  %v11341_v11 = vld [vmem:[%s14854_s4 + $0x854] ss:$8 sps:$4 sm:$0xff]  }
 0x669   :  { %7504 = vmatpush1.bf16.msra.mxu1 %v11273_v7  ;;  %v11344_v7 = vld [vmem:[%s14854_s4 + $0x534] ss:$8 sps:$4 sm:$0xff]  }
 0x66a   :  { %9760 = vmatmul.mubr.msk.bf16.vlgmr.msra.gmra.mrb[184].mxu0 %vm5980_vm4, %v6640_v29  ;;  %7505 = vmatprep.subr.bf16.mxu1 %v11281_v6  ;;  %v11339_v6 = vld [vmem:[%s14854_s4 + $0x850] ss:$8 sps:$4 sm:$0xff]  }
 0x66b   :  { %7169 = vmatpush1.bf16.msra.mxu0 %v11276_v41  ;;  %7200 = vmatprep.mubr.bf16.mxu0 %v6946_v3  ;;  %v11347_v41 = vld [vmem:[%s14854_s4 + $0x864] ss:$8 sps:$4 sm:$0xff]   ;;  %v11342_v29 = vld [vmem:[%s14854_s4 + $0x530] ss:$8 sps:$4 sm:$0xff]   ;;  %v11345_v3 = vld [vmem:[%s14854_s4 + $0x860] ss:$8 sps:$4 sm:$0xff]  }
 0x66c   :  { %7170 = vmatprep.subr.bf16.mxu0 %v11284_v0  ;;  %v11350_v0 = vld [vmem:[%s14854_s4 + $0x544] ss:$8 sps:$4 sm:$0xff]  }
 0x66d   :  { %7506 = vmatpush1.bf16.msra.mxu1 %v11279_v2  ;;  %v11353_v2 = vld [vmem:[%s14854_s4 + $0x874] ss:$8 sps:$4 sm:$0xff]  }
 0x66e   :  { %7823 = vmatprep.subr.bf16.mxu1 %v11287_v1  ;;  %v11356_v1 = vld [vmem:[%s14854_s4 + $0x554] ss:$8 sps:$4 sm:$0xff]  }
 0x66f   :  { %7171 = vmatpush1.bf16.msra.mxu0 %v11282_v8  ;;  %v11351_v8 = vld [vmem:[%s14854_s4 + $0x870] ss:$8 sps:$4 sm:$0xff]  }
 0x670   :  { %7508 = vmatmul.mubr.bf16.vlgmr.msra.gmra.mrb[244].mxu1 %v7252_v33  ;;  %7172 = vmatprep.subr.bf16.mxu0 %v11290_v45  ;;  %v11359_v45 = vld [vmem:[%s14854_s4 + $0x884] ss:$8 sps:$4 sm:$0xff]  }
 0x671   :  { %7824 = vmatpush1.bf16.msra.mxu1 %v11285_v54  ;;  %7855 = vmatprep.mubr.bf16.mxu1 %v14889_v62  ;;  %v11354_v54 = vld [vmem:[%s14854_s4 + $0x550] ss:$8 sps:$4 sm:$0xff]   ;;  %v11362_v33 = vld [vmem:[%s14854_s4 + $0x564] ss:$8 sps:$4 sm:$0xff]  }
 0x672   :  { %7825 = vmatprep.subr.bf16.mxu1 %v11293_v9  ;;  %v11357_v9 = vld [vmem:[%s14854_s4 + $0x880] ss:$8 sps:$4 sm:$0xff]  }
 0x673   :  { %7173 = vmatpush1.bf16.msra.mxu0 %v11288_v46  ;;  %v11365_v46 = vld [vmem:[%s14854_s4 + $0x894] ss:$8 sps:$4 sm:$0xff]  }
 0x674   :  { %7174 = vmatprep.subr.bf16.mxu0 %v11296_v13  ;;  %v11360_v13 = vld [vmem:[%s14854_s4 + $0x560] ss:$8 sps:$4 sm:$0xff]  }
 0x675   :  { %7826 = vmatpush1.bf16.msra.mxu1 %v11291_v10  ;;  %v11368_v10 = vld [vmem:[%s14854_s4 + $0x574] ss:$8 sps:$4 sm:$0xff]  }
 0x676   :  { %8089 = vmatprep.subr.bf16.mxu1 %v11299_v31  ;;  %v11371_v31 = vld [vmem:[%s14854_s4 + $0x8a4] ss:$8 sps:$4 sm:$0xff]  }
 0x677   :  { %7175 = vmatpush1.bf16.msra.mxu0 %v11294_v56  ;;  %v5706_v56 = vmax.f32 %v13917_v55, 0.0  ;;  %v11372_v55 = vld [vmem:[%s14854_s4 + $0x6a0] ss:$8 sps:$4 sm:$0xff]  }
 0x678   :  { %9979 = vmatmul.mubr.msk.bf16.vlgmr.msra.gmra.mrb[248].mxu1 %vm5980_vm4, %v7561_v18  ;;  %7176 = vmatprep.subr.bf16.mxu0 %v11302_v39  ;;  %v11374_v39 = vld [vmem:[%s14854_s4 + $0x6a4] ss:$8 sps:$4 sm:$0xff]   ;;  %v11377_v18 = vld [vmem:[%s14854_s4 + $0x8b4] ss:$8 sps:$4 sm:$0xff]  }
 0x679   :  { %8090 = vmatpush1.bf16.msra.mxu1 %v11297_v32  ;;  %8121 = vmatprep.mubr.bf16.mxu1 %v7867_v20  ;;  %v11369_v32 = vld [vmem:[%s14854_s4 + $0x8a0] ss:$8 sps:$4 sm:$0xff]   ;;  %v11380_v20 = vld [vmem:[%s14854_s4 + $0x6b4] ss:$8 sps:$4 sm:$0xff]  }
 0x67a   :  { %8091 = vmatprep.subr.bf16.mxu1 %v11305_v30  ;;  %v6945_v30 = vpack.c.bf16 %v5706_v56, %v5706_v56  ;;  %v11426_v56 = vld [vmem:[%s14854_s4 + $0x770] ss:$8 sps:$4 sm:$0xff]  }
 0x67b   :  { %7177 = vmatpush1.bf16.msra.mxu0 %v11300_v26  ;;  %v11375_v26 = vld [vmem:[%s14854_s4 + $0x8b0] ss:$8 sps:$4 sm:$0xff]  }
 0x67c   :  { %7178 = vmatprep.subr.bf16.mxu0 %v11308_v48  ;;  %v11383_v48 = vld [vmem:[%s14854_s4 + $0x8c4] ss:$8 sps:$4 sm:$0xff]  }
 0x67d   :  { %8092 = vmatpush1.bf16.msra.mxu1 %v11303_v37  ;;  %v11378_v37 = vld [vmem:[%s14854_s4 + $0x6b0] ss:$8 sps:$4 sm:$0xff]  }
 0x67e   :  { %8093 = vmatprep.subr.bf16.mxu1 %v11311_v44  ;;  %v5711_v44 = vmax.f32 %v14059_v59, 0.0  ;;  %v11384_v59 = vld [vmem:[%s14854_s4 + $0x6c0] ss:$8 sps:$4 sm:$0xff]  }
 0x67f   :  { %7179 = vmatpush1.bf16.msra.mxu0 %v11306_v50  ;;  %v11386_v50 = vld [vmem:[%s14854_s4 + $0x6c4] ss:$8 sps:$4 sm:$0xff]  }
 0x680   :  { %7180 = vmatprep.subr.bf16.mxu0 %v11314_v19  ;;  %v5713_v19 = vmax.f32 %v13944_v36, 0.0  ;;  %v11392_v36 = vld [vmem:[%s14854_s4 + $0x6d4] ss:$8 sps:$4 sm:$0xff]  }
 0x681   :  { %8094 = vmatpush1.bf16.msra.mxu1 %v11309_v28  ;;  %v11381_v28 = vld [vmem:[%s14854_s4 + $0x8c0] ss:$8 sps:$4 sm:$0xff]  }
 0x682   :  { %8095 = vmatprep.subr.bf16.mxu1 %v11317_v15  ;;  %v11389_v15 = vld [vmem:[%s14854_s4 + $0x8d4] ss:$8 sps:$4 sm:$0xff]  }
 0x683   :  { %7181 = vmatpush1.bf16.msra.mxu0 %v11312_v34  ;;  %v7254_v34 = vpack.c.bf16 %v5711_v44, %v5711_v44 }
 0x684   :  { %7182 = vmatprep.subr.bf16.mxu0 %v11320_v25  ;;  %v7560_v25 = vpack.c.bf16 %v5713_v19, %v5713_v19 }
 0x685   :  { %8096 = vmatpush1.bf16.msra.mxu1 %v11315_v51  ;;  %v11387_v51 = vld [vmem:[%s14854_s4 + $0x8d0] ss:$8 sps:$4 sm:$0xff]  }
 0x686   :  { %8097 = vmatprep.subr.bf16.mxu1 %v11323_v57  ;;  %v5715_v57 = vmax.f32 %v13950_v42, 0.0  ;;  %v11393_v42 = vld [vmem:[%s14854_s4 + $0xa00] ss:$8 sps:$4 sm:$0xff]  }
 0x687   :  { %7183 = vmatpush1.bf16.msra.mxu0 %v11318_v27  ;;  %v11395_v27 = vld [vmem:[%s14854_s4 + $0xa04] ss:$8 sps:$4 sm:$0xff]  }
 0x688   :  { %7184 = vmatprep.subr.bf16.mxu0 %v11326_v5  ;;  %v11390_v5 = vld [vmem:[%s14854_s4 + $0x6d0] ss:$8 sps:$4 sm:$0xff]  }
 0x689   :  { %8098 = vmatpush1.bf16.msra.mxu1 %v11321_v61  ;;  %v11398_v61 = vld [vmem:[%s14854_s4 + $0x6e4] ss:$8 sps:$4 sm:$0xff]  }
 0x68a   :  { %8099 = vmatprep.subr.bf16.mxu1 %v11329_v53  ;;  %v7866_v53 = vpack.c.bf16 %v5715_v57, %v5715_v57 }
 0x68b   :  { %7185 = vmatpush1.bf16.msra.mxu0 %v11324_v17  ;;  %v11401_v17 = vld [vmem:[%s14854_s4 + $0xa14] ss:$8 sps:$4 sm:$0xff]  }
 0x68c   :  { %7186 = vmatprep.subr.bf16.mxu0 %v11332_v60  ;;  %v11396_v60 = vld [vmem:[%s14854_s4 + $0x6e0] ss:$8 sps:$4 sm:$0xff]  }
 0x68d   :  { %8100 = vmatpush1.bf16.msra.mxu1 %v11327_v49  ;;  %v11404_v49 = vld [vmem:[%s14854_s4 + $0x6f4] ss:$8 sps:$4 sm:$0xff]  }
 0x68e   :  { %8101 = vmatprep.subr.bf16.mxu1 %v11335_v40  ;;  %v11399_v40 = vld [vmem:[%s14854_s4 + $0xa10] ss:$8 sps:$4 sm:$0xff]  }
 0x68f   :  { %7187 = vmatpush1.bf16.msra.mxu0 %v11330_v14  ;;  %v5720_v14 = vmax.f32 %v14116_v22, 0.0 }
 0x690   :  { %7188 = vmatprep.subr.bf16.mxu0 %v11338_v16 }
 0x691   :  { %8102 = vmatpush1.bf16.msra.mxu1 %v11333_v58  ;;  %v11402_v58 = vld [vmem:[%s14854_s4 + $0x6f0] ss:$8 sps:$4 sm:$0xff]  }
 0x692   :  { %8103 = vmatprep.subr.bf16.mxu1 %v11341_v11 }
 0x693   :  { %7189 = vmatpush1.bf16.msra.mxu0 %v11336_v12  ;;  %v11407_v12 = vld [vmem:[%s14854_s4 + $0x704] ss:$8 sps:$4 sm:$0xff]  }
 0x694   :  { %7190 = vmatprep.subr.bf16.mxu0 %v11344_v7 }
 0x695   :  { %8104 = vmatpush1.bf16.msra.mxu1 %v11339_v6 }
 0x696   :  { %8105 = vmatprep.subr.bf16.mxu1 %v11347_v41  ;;  %v8175_v41 = vpack.c.bf16 %v5720_v14, %v5720_v14  ;;  %v5719_v14 = vmax.f32 %v13976_v21, 0.0  ;;  %v11450_v21 = vld [vmem:[%s14854_s4 + $0x910] ss:$8 sps:$4 sm:$0xff]  }
 0x697   :  { %7191 = vmatpush1.bf16.msra.mxu0 %v11342_v29 }
 0x698   :  { %7192 = vmatprep.subr.bf16.mxu0 %v11350_v0 }
 0x699   :  { %8106 = vmatpush1.bf16.msra.mxu1 %v11345_v3  ;;  %v11405_v3 = vld [vmem:[%s14854_s4 + $0x700] ss:$8 sps:$4 sm:$0xff]  }
 0x69a   :  { %8107 = vmatprep.subr.bf16.mxu1 %v11353_v2 }
 0x69b   :  { %7193 = vmatpush1.bf16.msra.mxu0 %v11348_v4  ;;  %v11410_v4 = vld [vmem:[%s14854_s4 + $0x714] ss:$8 sps:$4 sm:$0xff]  }
 0x69c   :  { %7194 = vmatprep.subr.bf16.mxu0 %v11356_v1  ;;  %v11408_v1 = vld [vmem:[%s14854_s4 + $0x710] ss:$8 sps:$4 sm:$0xff]  }
 0x69d   :  { %8108 = vmatpush1.bf16.msra.mxu1 %v11351_v8  ;;  %v11413_v8 = vld [vmem:[%s14854_s4 + $0x724] ss:$8 sps:$4 sm:$0xff]  }
 0x69e   :  { %8109 = vmatprep.subr.bf16.mxu1 %v11359_v45  ;;  %v11411_v45 = vld [vmem:[%s14854_s4 + $0x720] ss:$8 sps:$4 sm:$0xff]  }
 0x69f   :  { %7195 = vmatpush1.bf16.msra.mxu0 %v11354_v54  ;;  %v11416_v54 = vld [vmem:[%s14854_s4 + $0x734] ss:$8 sps:$4 sm:$0xff]  }
 0x6a0   :  { %7196 = vmatprep.subr.bf16.mxu0 %v11362_v33  ;;  %v11414_v33 = vld [vmem:[%s14854_s4 + $0x730] ss:$8 sps:$4 sm:$0xff]  }
 0x6a1   :  { %8110 = vmatpush1.bf16.msra.mxu1 %v11357_v9  ;;  %v11419_v9 = vld [vmem:[%s14854_s4 + $0x744] ss:$8 sps:$4 sm:$0xff]  }
 0x6a2   :  { %8111 = vmatprep.subr.bf16.mxu1 %v11365_v46  ;;  %v11417_v46 = vld [vmem:[%s14854_s4 + $0x740] ss:$8 sps:$4 sm:$0xff]  }
 0x6a3   :  { %7197 = vmatpush1.bf16.msra.mxu0 %v11360_v13  ;;  %v11422_v13 = vld [vmem:[%s14854_s4 + $0x754] ss:$8 sps:$4 sm:$0xff]  }
 0x6a4   :  { %7198 = vmatprep.subr.bf16.mxu0 %v11368_v10  ;;  %v11420_v10 = vld [vmem:[%s14854_s4 + $0x750] ss:$8 sps:$4 sm:$0xff]  }
 0x6a5   :  { %8112 = vmatpush1.bf16.msra.mxu1 %v11363_v23  ;;  %v11425_v23 = vld [vmem:[%s14854_s4 + $0x764] ss:$8 sps:$4 sm:$0xff]  }
 0x6a6   :  { %8113 = vmatprep.subr.bf16.mxu1 %v11371_v31  ;;  %v11423_v31 = vld [vmem:[%s14854_s4 + $0x760] ss:$8 sps:$4 sm:$0xff]  }
 0x6a7   :  { %7199 = vmatpush1.bf16.msra.mxu0 %v11366_v38  ;;  %v11428_v38 = vld [vmem:[%s14854_s4 + $0x774] ss:$8 sps:$4 sm:$0xff]  }
 0x6a8   :  { %7516 = vmatprep.subr.bf16.mxu0 %v11374_v39  ;;  %v11431_v39 = vld [vmem:[%s14854_s4 + $0x784] ss:$8 sps:$4 sm:$0xff]  }
 0x6a9   :  { %8114 = vmatpush1.bf16.msra.mxu1 %v11369_v32  ;;  %v11429_v32 = vld [vmem:[%s14854_s4 + $0x780] ss:$8 sps:$4 sm:$0xff]  }
 0x6aa   :  { %7201 = vmatmul.mubr.bf16.vlgmr.msra.gmra.mrb[188].mxu0 %v6945_v30  ;;  %8115 = vmatprep.subr.bf16.mxu1 %v11377_v18  ;;  %v11434_v18 = vld [vmem:[%s14854_s4 + $0x794] ss:$8 sps:$4 sm:$0xff]   ;;  %v11437_v30 = vld [vmem:[%s14854_s4 + $0x7a4] ss:$8 sps:$4 sm:$0xff]  }
 0x6ab   :  { %7517 = vmatpush1.bf16.msra.mxu0 %v11372_v55  ;;  %7548 = vmatprep.mubr.bf16.mxu0 %v14889_v62  ;;  %v11432_v55 = vld [vmem:[%s14854_s4 + $0x790] ss:$8 sps:$4 sm:$0xff]  }
 0x6ac   :  { %7518 = vmatprep.subr.bf16.mxu0 %v11380_v20 }
 0x6ad   :  { %8116 = vmatpush1.bf16.msra.mxu1 %v11375_v26 }
 0x6ae   :  { %8117 = vmatprep.subr.bf16.mxu1 %v11383_v48 }
 0x6af   :  { %7519 = vmatpush1.bf16.msra.mxu0 %v11378_v37 }
 0x6b0   :  { %7782 = vmatprep.subr.bf16.mxu0 %v11386_v50  ;;  %v11435_v50 = vld [vmem:[%s14854_s4 + $0x7a0] ss:$8 sps:$4 sm:$0xff]  }
 0x6b1   :  { %8118 = vmatpush1.bf16.msra.mxu1 %v11381_v28 }
 0x6b2   :  { %9906 = vmatmul.mubr.msk.bf16.vlgmr.msra.gmra.mrb[192].mxu0 %vm5980_vm4, %v7254_v34  ;;  %8119 = vmatprep.subr.bf16.mxu1 %v11389_v15  ;;  %v11440_v15 = vld [vmem:[%s14854_s4 + $0x7b4] ss:$8 sps:$4 sm:$0xff]   ;;  %v11438_v34 = vld [vmem:[%s14854_s4 + $0x7b0] ss:$8 sps:$4 sm:$0xff]  }
 0x6b3   :  { %7783 = vmatpush1.bf16.msra.mxu0 %v11384_v59  ;;  %7814 = vmatprep.mubr.bf16.mxu0 %v7560_v25  ;;  %v11443_v25 = vld [vmem:[%s14854_s4 + $0x8e4] ss:$8 sps:$4 sm:$0xff]  }
 0x6b4   :  { %7784 = vmatprep.subr.bf16.mxu0 %v11392_v36  ;;  %v5712_v36 = vmax.f32 %v13941_v35, 0.0  ;;  %v11446_v35 = vld [vmem:[%s14854_s4 + $0x8f4] ss:$8 sps:$4 sm:$0xff]  }
 0x6b5   :  { %8120 = vmatpush1.bf16.msra.mxu1 %v11387_v51 }
 0x6b6   :  { %8437 = vmatprep.subr.bf16.mxu1 %v11395_v27 }
 0x6b7   :  { %7785 = vmatpush1.bf16.msra.mxu0 %v11390_v5 }
 0x6b8   :  { %8122 = vmatmul.mubr.bf16.vlgmr.msra.gmra.mrb[252].mxu1 %v7866_v53  ;;  %7786 = vmatprep.subr.bf16.mxu0 %v11398_v61  ;;  %v7559_v53 = vpack.c.bf16 %v5712_v36, %v5712_v36  ;;  %v5718_v36 = vmax.f32 %v13970_v43, 0.0 }
 0x6b9   :  { %8438 = vmatpush1.bf16.msra.mxu1 %v11393_v42  ;;  %8469 = vmatprep.mubr.bf16.mxu1 %v14889_v62  ;;  %v11441_v42 = vld [vmem:[%s14854_s4 + $0x8e0] ss:$8 sps:$4 sm:$0xff]  }
 0x6ba   :  { %8439 = vmatprep.subr.bf16.mxu1 %v11401_v17 }
 0x6bb   :  { %7787 = vmatpush1.bf16.msra.mxu0 %v11396_v60  ;;  %v14573_v16 = vpop.f32.mrb[232].mxu1  ;;  %v11444_v60 = vld [vmem:[%s14854_s4 + $0x8f0] ss:$8 sps:$4 sm:$0xff]  }
 0x6bc   :  { %v14578_v11 = vpop.f32.mrb[233].mxu1  ;;  %7788 = vmatprep.subr.bf16.mxu0 %v11404_v49  ;;  %v5717_v49 = vmax.f32 %v14092_v52, 0.0 }
 0x6bd   :  { %8440 = vmatpush1.bf16.msra.mxu1 %v11399_v40  ;;  %v6018_v7 = vpop.f32.mrb[164].mxu0  ;;  %v6287_v6 = vpop.f32.mrb[234].mxu1  ;;  %v11449_v40 = vld [vmem:[%s14854_s4 + $0x904] ss:$8 sps:$4 sm:$0xff]  }
 0x6be   :  { %v6020_v22 = vpop.f32.mrb[165].mxu0  ;;  %v6288_v29 = vpop.f32.mrb[235].mxu1 }
 0x6bf   :  { %7789 = vmatpush1.bf16.msra.mxu0 %v11402_v58  ;;  %v6022_v0 = vpop.f32.mrb[166].mxu0  ;;  %v7868_v58 = vpack.c.bf16 %v5717_v49, %v5717_v49  ;;  %v11458_v29 = vld [vmem:[%s14854_s4 + $0x934] ss:$8 sps:$4 sm:$0xff]  }
 0x6c0   :  { %10125 = vmatmul.mubr.msk.bf16.vlgmr.msra.gmra.mrb[16].mxu1 %vm5980_vm4, %v8175_v41  ;;  %v6023_v2 = vpop.f32.mrb[167].mxu0  ;;  %7790 = vmatprep.subr.bf16.mxu0 %v11407_v12 }
 0x6c3   :  { %7791 = vmatpush1.bf16.msra.mxu0 %v11405_v3  ;;  %v11456_v3 = vld [vmem:[%s14854_s4 + $0x930] ss:$8 sps:$4 sm:$0xff]  }
 0x6c4   :  { %7792 = vmatprep.subr.bf16.mxu0 %v11410_v4  ;;  %v11461_v4 = vld [vmem:[%s14854_s4 + $0x944] ss:$8 sps:$4 sm:$0xff]  }
 0x6c7   :  { %7793 = vmatpush1.bf16.msra.mxu0 %v11408_v1 }
 0x6c8   :  { %7794 = vmatprep.subr.bf16.mxu0 %v11413_v8 }
 0x6cb   :  { %7795 = vmatpush1.bf16.msra.mxu0 %v11411_v45  ;;  %v11459_v45 = vld [vmem:[%s14854_s4 + $0x940] ss:$8 sps:$4 sm:$0xff]  }
 0x6cc   :  { %7796 = vmatprep.subr.bf16.mxu0 %v11416_v54  ;;  %v11464_v54 = vld [vmem:[%s14854_s4 + $0x954] ss:$8 sps:$4 sm:$0xff]  }
 0x6cf   :  { %7797 = vmatpush1.bf16.msra.mxu0 %v11414_v33  ;;  %v11462_v33 = vld [vmem:[%s14854_s4 + $0x950] ss:$8 sps:$4 sm:$0xff]  }
 0x6d0   :  { %7798 = vmatprep.subr.bf16.mxu0 %v11419_v9  ;;  %v11467_v9 = vld [vmem:[%s14854_s4 + $0x964] ss:$8 sps:$4 sm:$0xff]  }
 0x6d3   :  { %7799 = vmatpush1.bf16.msra.mxu0 %v11417_v46  ;;  %v11465_v46 = vld [vmem:[%s14854_s4 + $0x960] ss:$8 sps:$4 sm:$0xff]  }
 0x6d4   :  { %7800 = vmatprep.subr.bf16.mxu0 %v11422_v13  ;;  %v11470_v13 = vld [vmem:[%s14854_s4 + $0x974] ss:$8 sps:$4 sm:$0xff]  }
 0x6d7   :  { %7801 = vmatpush1.bf16.msra.mxu0 %v11420_v10  ;;  %v11468_v10 = vld [vmem:[%s14854_s4 + $0x970] ss:$8 sps:$4 sm:$0xff]  }
 0x6d8   :  { %7802 = vmatprep.subr.bf16.mxu0 %v11425_v23  ;;  %v11473_v23 = vld [vmem:[%s14854_s4 + $0x984] ss:$8 sps:$4 sm:$0xff]  }
 0x6db   :  { %7803 = vmatpush1.bf16.msra.mxu0 %v11423_v31  ;;  %v11471_v31 = vld [vmem:[%s14854_s4 + $0x980] ss:$8 sps:$4 sm:$0xff]  }
 0x6dc   :  { %7804 = vmatprep.subr.bf16.mxu0 %v11428_v38  ;;  %v11476_v38 = vld [vmem:[%s14854_s4 + $0x994] ss:$8 sps:$4 sm:$0xff]  }
 0x6df   :  { %7805 = vmatpush1.bf16.msra.mxu0 %v11426_v56  ;;  %v11474_v56 = vld [vmem:[%s14854_s4 + $0x990] ss:$8 sps:$4 sm:$0xff]  }
 0x6e0   :  { %7806 = vmatprep.subr.bf16.mxu0 %v11431_v39  ;;  %v11479_v39 = vld [vmem:[%s14854_s4 + $0x9a4] ss:$8 sps:$4 sm:$0xff]  }
 0x6e3   :  { %7807 = vmatpush1.bf16.msra.mxu0 %v11429_v32  ;;  %v11477_v32 = vld [vmem:[%s14854_s4 + $0x9a0] ss:$8 sps:$4 sm:$0xff]  }
 0x6e4   :  { %7808 = vmatprep.subr.bf16.mxu0 %v11434_v18  ;;  %v11482_v18 = vld [vmem:[%s14854_s4 + $0x9b4] ss:$8 sps:$4 sm:$0xff]  }
 0x6e5   :  { %v6059_v20 = vpop.f32.mrb[168].mxu0 }
 0x6e6   :  { %v6060_v26 = vadd.f32 %v6059_v20, %v6018_v7  ;;  %v6061_v48 = vpop.f32.mrb[169].mxu0  ;;  %v11455_v7 = vld [vmem:[%s14854_s4 + $0x924] ss:$8 sps:$4 sm:$0xff]   ;;  %v11483_v20 = vld [vmem:[%s14854_s4 + $0x9c0] ss:$8 sps:$4 sm:$0xff]  }
 0x6e7   :  { %v6062_v37 = vadd.f32 %v6061_v48, %v6020_v22  ;;  %7809 = vmatpush1.bf16.msra.mxu0 %v11432_v55  ;;  %v6063_v44 = vpop.f32.mrb[170].mxu0  ;;  %v11453_v22 = vld [vmem:[%s14854_s4 + $0x920] ss:$8 sps:$4 sm:$0xff]   ;;  %v11480_v55 = vld [vmem:[%s14854_s4 + $0x9b0] ss:$8 sps:$4 sm:$0xff]  }
 0x6e8   :  { %v6064_v19 = vpop.f32.mrb[171].mxu0  ;;  %7810 = vmatprep.subr.bf16.mxu0 %v11437_v30  ;;  %v6284_v28 = vadd.f32 %v14573_v16, %v6060_v26  ;;  %v11447_v16 = vld [vmem:[%s14854_s4 + $0x900] ss:$8 sps:$4 sm:$0xff]   ;;  %v11485_v30 = vld [vmem:[%s14854_s4 + $0x9c4] ss:$8 sps:$4 sm:$0xff]  }
 0x6e9   :  { %v6286_v59 = vadd.f32 %v14578_v11, %v6062_v37  ;;  %v8174_v11 = vpack.c.bf16 %v5719_v14, %v5719_v14  ;;  %v11488_v26 = vld [vmem:[%s14854_s4 + $0x9d4] ss:$8 sps:$4 sm:$0xff]   ;;  %v11486_v48 = vld [vmem:[%s14854_s4 + $0x9d0] ss:$8 sps:$4 sm:$0xff]   ;;  %v11491_v37 = vld [vmem:[%s14854_s4 + $0x9e4] ss:$8 sps:$4 sm:$0xff]  }
 0x6eb   :  { %7811 = vmatpush1.bf16.msra.mxu0 %v11435_v50 }
 0x6ec   :  { %7812 = vmatprep.subr.bf16.mxu0 %v11440_v15 }
 0x6ed   :  { %v6324_v51 = vpop.f32.mrb[172].mxu0 }
 0x6ee   :  { %v14659_v57 = vadd.f32 %v6324_v51, %v6284_v28  ;;  %v6326_v27 = vpop.f32.mrb[173].mxu0  ;;  %v11489_v28 = vld [vmem:[%s14854_s4 + $0x9e0] ss:$8 sps:$4 sm:$0xff]  }
 0x6ef   :  { %v14661_v5 = vadd.f32 %v6326_v27, %v6286_v59  ;;  %7813 = vmatpush1.bf16.msra.mxu0 %v11438_v34  ;;  %v6328_v61 = vpop.f32.mrb[174].mxu0  ;;  %v11494_v59 = vld [vmem:[%s14854_s4 + $0x9f4] ss:$8 sps:$4 sm:$0xff]   ;;  %v11492_v34 = vld [vmem:[%s14854_s4 + $0x9f0] ss:$8 sps:$4 sm:$0xff]  }
 0x6f0   :  { %v6329_v17 = vpop.f32.mrb[175].mxu0  ;;  %8130 = vmatprep.subr.bf16.mxu0 %v11443_v25 }
 0x6f2   :  { %7815 = vmatmul.mubr.bf16.vlgmr.msra.gmra.mrb[196].mxu0 %v7559_v53  ;;  %v8173_v53 = vpack.c.bf16 %v5718_v36, %v5718_v36 }
 0x6f3   :  { %8131 = vmatpush1.bf16.msra.mxu0 %v11441_v42  ;;  %8162 = vmatprep.mubr.bf16.mxu0 %v14889_v62  ;;  %v11452_v62 = vld [vmem:[%s14854_s4 + $0x914] ss:$8 sps:$4 sm:$0xff]  }
 0x6f4   :  { %8132 = vmatprep.subr.bf16.mxu0 %v11446_v35 }
 0x6f7   :  { %8133 = vmatpush1.bf16.msra.mxu0 %v11444_v60 }
 0x6f8   :  { %8396 = vmatprep.subr.bf16.mxu0 %v11449_v40 }
 0x6fa   :  { %10052 = vmatmul.mubr.msk.bf16.vlgmr.msra.gmra.mrb[200].mxu0 %vm5980_vm4, %v7868_v58 }
 0x6fb   :  { %v14685_v52 = vpop.f32.mrb[236].mxu1  ;;  %8397 = vmatpush1.bf16.msra.mxu0 %v11447_v16  ;;  %8428 = vmatprep.mubr.bf16.mxu0 %v8174_v11 }
 0x6fc   :  { %v14690_v12 = vpop.f32.mrb[237].mxu1  ;;  %8398 = vmatprep.subr.bf16.mxu0 %v11452_v62 }
 0x6fd   :  { %v6899_v6 = vpop.f32.mrb[238].mxu1 }
 0x6fe   :  { %v6900_v41 = vpop.f32.mrb[239].mxu1 }
 0x6ff   :  { %8399 = vmatpush1.bf16.msra.mxu0 %v11450_v21 }
 0x700   :  { %8400 = vmatprep.subr.bf16.mxu0 %v11455_v7 }
 0x703   :  { %v14701_v0 = vpop.f32.mrb[240].mxu1  ;;  %8401 = vmatpush1.bf16.msra.mxu0 %v11453_v22 }
 0x704   :  { %v14706_v2 = vpop.f32.mrb[241].mxu1  ;;  %8402 = vmatprep.subr.bf16.mxu0 %v11458_v29 }
 0x705   :  { %v7247_v1 = vpop.f32.mrb[242].mxu1 }
 0x706   :  { %v7248_v8 = vpop.f32.mrb[243].mxu1  ;;  %v11499_v1 = vld [vmem:[%s14856_s6 + $0x50] sm:$0xff]  }
 0x707   :  { %8403 = vmatpush1.bf16.msra.mxu0 %v11456_v3  ;;  %v11497_v3 = vld [vmem:[%s14856_s6 + $0x48] sm:$0xff]   ;;  %v11500_v8 = vld [vmem:[%s14856_s6 + $0x10] sm:$0xff]  }
 0x708   :  { %8404 = vmatprep.subr.bf16.mxu0 %v11461_v4  ;;  %v11498_v4 = vld [vmem:[%s14856_s6 + $0x8] sm:$0xff]  }
 0x70b   :  { %8405 = vmatpush1.bf16.msra.mxu0 %v11459_v45  ;;  %v11501_v45 = vld [vmem:[%s14856_s6 + $0x58] sm:$0xff]  }
 0x70c   :  { %8406 = vmatprep.subr.bf16.mxu0 %v11464_v54  ;;  %v11502_v54 = vld [vmem:[%s14856_s6 + $0x18] sm:$0xff]  }
 0x70f   :  { %8407 = vmatpush1.bf16.msra.mxu0 %v11462_v33  ;;  %v11503_v33 = vld [vmem:[%s14856_s6 + $0x60] sm:$0xff]  }
 0x710   :  { %8408 = vmatprep.subr.bf16.mxu0 %v11467_v9  ;;  %v11504_v9 = vld [vmem:[%s14856_s6 + $0x20] sm:$0xff]  }
 0x713   :  { %8409 = vmatpush1.bf16.msra.mxu0 %v11465_v46 }
 0x714   :  { %8410 = vmatprep.subr.bf16.mxu0 %v11470_v13 }
 0x717   :  { %8411 = vmatpush1.bf16.msra.mxu0 %v11468_v10 }
 0x718   :  { %8412 = vmatprep.subr.bf16.mxu0 %v11473_v23 }
 0x71b   :  { %8413 = vmatpush1.bf16.msra.mxu0 %v11471_v31 }
 0x71c   :  { %8414 = vmatprep.subr.bf16.mxu0 %v11476_v38 }
 0x71f   :  { %8415 = vmatpush1.bf16.msra.mxu0 %v11474_v56 }
 0x720   :  { %8416 = vmatprep.subr.bf16.mxu0 %v11479_v39 }
 0x723   :  { %8417 = vmatpush1.bf16.msra.mxu0 %v11477_v32 }
 0x724   :  { %8418 = vmatprep.subr.bf16.mxu0 %v11482_v18 }
 0x727   :  { %8419 = vmatpush1.bf16.msra.mxu0 %v11480_v55 }
 0x728   :  { %8420 = vmatprep.subr.bf16.mxu0 %v11485_v30 }
 0x72b   :  { %8421 = vmatpush1.bf16.msra.mxu0 %v11483_v20 }
 0x72c   :  { %8422 = vmatprep.subr.bf16.mxu0 %v11488_v26 }
 0x72d   :  { %v6588_v44 = vpop.f32.mrb[176].mxu0 }
 0x72e   :  { %v6590_v50 = vpop.f32.mrb[177].mxu0 }
 0x72f   :  { %v6592_v19 = vpop.f32.mrb[178].mxu0  ;;  %8423 = vmatpush1.bf16.msra.mxu0 %v11486_v48 }
 0x730   :  { %v6593_v15 = vpop.f32.mrb[179].mxu0  ;;  %8424 = vmatprep.subr.bf16.mxu0 %v11491_v37 }
 0x731   :  { %v11507_v15 = vld [vmem:[%s14856_s6 + $0x70] sm:$0xff]  }
 0x733   :  { %8425 = vmatpush1.bf16.msra.mxu0 %v11489_v28 }
 0x734   :  { %8426 = vmatprep.subr.bf16.mxu0 %v11494_v59  ;;  %v11508_v59 = vld [vmem:[%s14856_s6 + $0x30] sm:$0xff]  }
 0x735   :  { %v6629_v25 = vpop.f32.mrb[180].mxu0 }
 0x736   :  { %v6630_v51 = vadd.f32 %v6629_v25, %v6588_v44  ;;  %v6631_v27 = vpop.f32.mrb[181].mxu0  ;;  %v11509_v25 = vld [vmem:[%s14856_s6 + $0x78] sm:$0xff]  }
 0x737   :  { %v6632_v61 = vadd.f32 %v6631_v27, %v6590_v50  ;;  %v6633_v42 = vpop.f32.mrb[182].mxu0  ;;  %8427 = vmatpush1.bf16.msra.mxu0 %v11492_v34  ;;  %v11510_v27 = vld [vmem:[%s14856_s6 + $0x38] sm:$0xff]  }
 0x738   :  { %v6636_v17 = vadd.f32 %v6630_v51, %v14659_v57  ;;  %v6634_v35 = vpop.f32.mrb[183].mxu0 }
 0x739   :  { %v6637_v60 = vadd.f32 %v6632_v61, %v14661_v5 }
 0x73a   :  { %8429 = vmatmul.mubr.bf16.vlgmr.msra.gmra.mrb[204].mxu0 %v8173_v53 }
 0x73d   :  { %v6936_v49 = vpop.f32.mrb[184].mxu0 }
 0x73e   :  { %v6937_v40 = vadd.f32 %v6936_v49, %v14685_v52  ;;  %v6938_v14 = vpop.f32.mrb[185].mxu0  ;;  %v11495_v52 = vld [vmem:[%s14856_s6 + $0x40] sm:$0xff]  }
 0x73f   :  { %v6939_v43 = vadd.f32 %v6938_v14, %v14690_v12  ;;  %v6940_v16 = vpop.f32.mrb[186].mxu0  ;;  %v11496_v12 = vld [vmem:[%s14856_s6] sm:$0xff]   ;;  %10143 = vmatprep.subr.bf16.mxu1 %v11495_v52 }
 0x740   :  { %v6943_v58 = vadd.f32 %v6937_v40, %v6636_v17  ;;  %v6941_v62 = vpop.f32.mrb[187].mxu0  ;;  %10144 = vmatpush3.bf16.msra.mxu1 %v11496_v12 }
 0x741   :  { %v6944_v11 = vadd.f32 %v6939_v43, %v6637_v60  ;;  %10145 = vmatprep.subr.bf16.mxu1 %v11497_v3 }
 0x743   :  { %v7509_v21 = vpop.f32.mrb[244].mxu1 }
 0x744   :  { %v7511_v7 = vpop.f32.mrb[245].mxu1  ;;  %10146 = vmatpush3.bf16.msra.mxu1 %v11498_v4 }
 0x745   :  { %v7513_v6 = vpop.f32.mrb[246].mxu1  ;;  %10147 = vmatprep.subr.bf16.mxu1 %v11499_v1 }
 0x746   :  { %v7514_v41 = vpop.f32.mrb[247].mxu1 }
 0x747   :  { %v8480_v41 = vld [vmem:[%s14857_s5] sm:$0x3] }
 0x748   :  { %10148 = vmatpush3.bf16.msra.mxu1 %v11500_v8  ;;  %v8489_v12 = vrot.slane %v8480_v41, %v5658_v63 }
 0x749   :  { %10149 = vmatprep.subr.bf16.mxu1 %v11501_v45 }
 0x74b   :  { %v7857_v22 = vpop.f32.mrb[248].mxu1 }
 0x74c   :  { %v14785_v57 = vpop.f32.mrb[249].mxu1  ;;  %10150 = vmatpush3.bf16.msra.mxu1 %v11502_v54 }
 0x74d   :  { %v7861_v29 = vpop.f32.mrb[250].mxu1  ;;  %10151 = vmatprep.subr.bf16.mxu1 %v11503_v33 }
 0x74e   :  { %v7862_v5 = vpop.f32.mrb[251].mxu1 }
 0x750   :  { %10152 = vmatpush3.bf16.msra.mxu1 %v11504_v9 }
 0x77d   :  { %v7202_v46 = vpop.f32.mrb[188].mxu0 }
 0x77e   :  { %v7244_v13 = vadd.f32 %v14701_v0, %v7202_v46  ;;  %v7204_v10 = vpop.f32.mrb[189].mxu0  ;;  %v11505_v0 = vld [vmem:[%s14856_s6 + $0x68] sm:$0xff]  }
 0x77f   :  { %v7246_v23 = vadd.f32 %v14706_v2, %v7204_v10  ;;  %v7206_v31 = vpop.f32.mrb[190].mxu0  ;;  %v11506_v2 = vld [vmem:[%s14856_s6 + $0x28] sm:$0xff]   ;;  %10153 = vmatprep.subr.bf16.mxu1 %v11505_v0 }
 0x780   :  { %v7250_v38 = vadd.f32 %v7244_v13, %v6943_v58  ;;  %v7207_v56 = vpop.f32.mrb[191].mxu0  ;;  %10154 = vmatpush3.bf16.msra.mxu1 %v11506_v2 }
 0x781   :  { %v7251_v39 = vadd.f32 %v7246_v23, %v6944_v11  ;;  %10155 = vmatprep.subr.bf16.mxu1 %v11507_v15 }
 0x784   :  { %10156 = vmatpush3.bf16.msra.mxu1 %v11508_v59 }
 0x785   :  { %v7550_v32 = vpop.f32.mrb[192].mxu0  ;;  %10157 = vmatprep.subr.bf16.mxu1 %v11509_v25 }
 0x786   :  { %v7551_v18 = vadd.f32 %v7550_v32, %v7509_v21  ;;  %v7552_v55 = vpop.f32.mrb[193].mxu0 }
 0x787   :  { %v7553_v30 = vadd.f32 %v7552_v55, %v7511_v7  ;;  %v7554_v20 = vpop.f32.mrb[194].mxu0 }
 0x788   :  { %v7557_v26 = vadd.f32 %v7551_v18, %v7250_v38  ;;  %v7555_v48 = vpop.f32.mrb[195].mxu0  ;;  %10158 = vmatpush3.bf16.msra.mxu1 %v11510_v27 }
 0x789   :  { %v7558_v37 = vadd.f32 %v7553_v30, %v7251_v39 }
 0x78b   :  { %v8123_v44 = vpop.f32.mrb[252].mxu1 }
 0x78c   :  { %v8125_v50 = vpop.f32.mrb[253].mxu1 }
 0x78d   :  { %v8127_v19 = vpop.f32.mrb[254].mxu1 }
 0x78e   :  { %v8128_v28 = vpop.f32.mrb[255].mxu1 }
 0x793   :  { %v8471_v34 = vpop.f32.mrb[16].mxu1 }
 0x794   :  { %v8473_v36 = vpop.f32.mrb[17].mxu1 }
 0x795   :  { %v8475_v51 = vpop.f32.mrb[18].mxu1 }
 0x796   :  { %v8476_v61 = vpop.f32.mrb[19].mxu1 }
 0x7c5   :  { %v7816_v42 = vpop.f32.mrb[196].mxu0 }
 0x7c6   :  { %v7858_v53 = vadd.f32 %v7857_v22, %v7816_v42  ;;  %v7818_v17 = vpop.f32.mrb[197].mxu0 }
 0x7c7   :  { %v7860_v35 = vadd.f32 %v14785_v57, %v7818_v17  ;;  %v7820_v60 = vpop.f32.mrb[198].mxu0  ;;  %v8485_v57 = vrot.slane %v8480_v41, %v5654_v24  ;;  %v10126_v24 = vld [vmem:[%s14858_s7] ss:$0 sm:$0xff] }
 0x7c8   :  { %v7864_v49 = vadd.f32 %v7858_v53, %v7557_v26  ;;  %v7821_v40 = vpop.f32.mrb[199].mxu0 }
 0x7c9   :  { %v7865_v14 = vadd.f32 %v7860_v35, %v7558_v37 }
 0x7cd   :  { %v8164_v43 = vpop.f32.mrb[200].mxu0 }
 0x7ce   :  { %v8165_v16 = vadd.f32 %v8164_v43, %v8123_v44  ;;  %v8166_v58 = vpop.f32.mrb[201].mxu0 }
 0x7cf   :  { %v8167_v62 = vadd.f32 %v8166_v58, %v8125_v50  ;;  %v8168_v11 = vpop.f32.mrb[202].mxu0 }
 0x7d0   :  { %v8171_v21 = vadd.f32 %v8165_v16, %v7864_v49  ;;  %v8169_v7 = vpop.f32.mrb[203].mxu0 }
 0x7d1   :  { %v8172_v6 = vadd.f32 %v8167_v62, %v7865_v14 }
 0x80d   :  { %v8430_v22 = vpop.f32.mrb[204].mxu0 }
 0x80e   :  { %v8472_v29 = vadd.f32 %v8471_v34, %v8430_v22  ;;  %v8432_v5 = vpop.f32.mrb[205].mxu0 }
 0x80f   :  { %v8474_v52 = vadd.f32 %v8473_v36, %v8432_v5  ;;  %v8434_v3 = vpop.f32.mrb[206].mxu0 }
 0x810   :  { %v8478_v4 = vadd.f32 %v8472_v29, %v8171_v21  ;;  %v8435_v1 = vpop.f32.mrb[207].mxu0 }
 0x811   :  { %v8479_v8 = vadd.f32 %v8474_v52, %v8172_v6 }
 0x812   :  { %v8492_v45 = vadd.f32 %v8485_v57, %v8478_v4 }
 0x813   :  { %v8493_v54 = vadd.f32 %v8489_v12, %v8479_v8 }
 0x814   :  { %v8494_v33 = vmax.f32 %v8492_v45, 0.0 }
 0x815   :  { %v8495_v9 = vmax.f32 %v8493_v54, 0.0 }
 0x816   :  { %v8496_v13 = vpack.c.bf16 %v8494_v33, %v8494_v33 }
 0x817   :  { %v8497_v46 = vpack.c.bf16 %v8495_v9, %v8495_v9 }
 0x819   :  { %8665 = vmatprep.mubr.bf16.mxu1 %v8497_v46 }
 0x81a   :  { %8666 = vmatmul.mubr.bf16.vlgmr.msra.gmra.mrb[20].mxu1 %v8496_v13 }
 0x8ed   :  { %v10159_v10 = vpop.f32.mrb[20].mxu1 }
 0x8ee   :  { %v10160_v23 = vpop.f32.mrb[21].mxu1 }
 0x8ef   :  { %v10161_v47 = vadd.f32 %v10160_v23, %v10159_v10  ;;  %v10162_v63 = vpop.f32.mrb[22].mxu1 }
 0x8f0   :  { %v10163_v31 = vpop.f32.mrb[23].mxu1 }
 0x8f1   :  { %v8668_v38 = vadd.f32 %v10161_v47, %v10126_v24 }
 0x8f3   :  { %8673 = vst [vmem:[%s14859_s8] sm:$0xff] %v8668_v38 }

</bundles_post_ra>
